<compile_context>
chip_gen: v7x
topology: tpu7x:2x2x1
jax: 0.10.0
libtpu: 0.0.40
codegen_flags: <defaults>
</compile_context>

<pallas_src>
import functools

import jax
import jax.numpy as jnp
from jax.experimental import pallas as pl
from jax.experimental.pallas import tpu as pltpu


# -----------------------------------------------------------------------------
# Fused kernel: one (batch, q-tile) per grid step; everything stays in VMEM.
# -----------------------------------------------------------------------------
def _cross_attn_kernel(x1_ref, x2_ref, wq_ref, bq_ref, wkv_ref, bkv_ref,
                       wo_ref, bo_ref, o_ref, kv_ref, attn_ref,
                       *, num_heads, head_dim):
    C = num_heads * head_dim

    # ---- K/V projection: once per batch element, reused across q tiles. ------
    @pl.when(pl.program_id(1) == 0)
    def _():
        x2b = x2_ref[0].astype(jnp.bfloat16)                          # (C, HW)
        kv = jnp.dot(wkv_ref[...], x2b,
                     preferred_element_type=jnp.float32) + bkv_ref[...]
        kv_ref[...] = kv.astype(jnp.bfloat16)                         # (2C, HW)

    # ---- Q projection for this q-token tile (scale pre-folded into wq/bq). ---
    x1b = x1_ref[0].astype(jnp.bfloat16)                              # (C, TQ)
    q = jnp.dot(wq_ref[...], x1b,
                preferred_element_type=jnp.float32) + bq_ref[...]     # (C, TQ) f32
    qb = q.astype(jnp.bfloat16)

    TN = (((0,), (0,)), ((), ()))   # contract head axis (sublanes) of both: K^T·Q

    # ---- Per-head attention; each head's result goes straight to scratch. ----
    for h in range(num_heads):
        sl = slice(h * head_dim, (h + 1) * head_dim)   # multiples of 16 sublanes
        qh = qb[sl]                                     # (hd, TQ)  bf16
        kh = kv_ref[sl, :]                              # (hd, HW)  bf16
        vh = kv_ref[C + h * head_dim:C + (h + 1) * head_dim, :]       # (hd, HW)

        # scores, transposed: st[j, i] = K[:, j] . Q_scaled[:, i]  -> (HW_k, TQ)
        st = jax.lax.dot_general(kh, qh, TN,
                                 preferred_element_type=jnp.float32)
        # softmax over k tokens (sublane axis), fp32 math on VPU/EUP.
        m = jnp.max(st, axis=0, keepdims=True)                        # (1, TQ)
        p = jnp.exp(st - m)
        p = p * pl.reciprocal(jnp.sum(p, axis=0, keepdims=True), approx=True)
        # PV is a plain NN matmul: (hd, HW_k) @ (HW_k, TQ) -> (hd, TQ), f32 acc.
        pv = jnp.dot(vh, p.astype(jnp.bfloat16),
                     preferred_element_type=jnp.float32)
        attn_ref[sl, :] = pv.astype(jnp.bfloat16)       # bounded live range

    # ---- Output projection from the scratch, lane-dense (TQ) store. ----------
    out = jnp.dot(wo_ref[...], attn_ref[...],
                  preferred_element_type=jnp.float32) + bo_ref[...]   # (C, TQ)
    o_ref[0] = out.astype(o_ref.dtype)


# -----------------------------------------------------------------------------
# Forward pass: NCHW in, NCHW out, one pallas_call.
# -----------------------------------------------------------------------------
def cross_attention_forward(params, x1, x2, num_heads, tq=128):
    """x1, x2: (B, C, H, W) NCHW fp32. Returns (B, C, H, W)."""
    B, C, H, W = x1.shape
    HW = H * W
    head_dim = C // num_heads
    assert head_dim * num_heads == C
    tq = min(tq, HW)
    assert HW % tq == 0
    nq = HW // tq

    # Free reshapes only — the kernel works channel-major on (C, HW).
    x1c = x1.reshape(B, C, HW)
    x2c = x2.reshape(B, C, HW)

    kern = functools.partial(_cross_attn_kernel,
                             num_heads=num_heads, head_dim=head_dim)

    out = pl.pallas_call(
        kern,
        out_shape=jax.ShapeDtypeStruct((B, C, HW), x1.dtype),
        grid_spec=pltpu.PrefetchScalarGridSpec(
            num_scalar_prefetch=0,
            grid=(B, nq),
            in_specs=[
                pl.BlockSpec((1, C, tq), lambda b, q: (b, 0, q)),   # x1 q-tile
                pl.BlockSpec((1, C, HW), lambda b, q: (b, 0, 0)),   # x2 (all toks)
                pl.BlockSpec((C, C), lambda b, q: (0, 0)),          # wq (bf16, *scale)
                pl.BlockSpec((C, 1), lambda b, q: (0, 0)),          # bq (f32, *scale)
                pl.BlockSpec((2 * C, C), lambda b, q: (0, 0)),      # wkv (bf16)
                pl.BlockSpec((2 * C, 1), lambda b, q: (0, 0)),      # bkv (f32)
                pl.BlockSpec((C, C), lambda b, q: (0, 0)),          # wo (bf16)
                pl.BlockSpec((C, 1), lambda b, q: (0, 0)),          # bo (f32)
            ],
            out_specs=pl.BlockSpec((1, C, tq), lambda b, q: (b, 0, q)),
            scratch_shapes=[
                pltpu.VMEM((2 * C, HW), jnp.bfloat16),  # K/V, persists over q tiles
                pltpu.VMEM((C, tq), jnp.bfloat16),      # per-head attn accumulation
            ],
        ),
        compiler_params=pltpu.CompilerParams(
            # batch -> megacore split on v7x; q-tile axis is sequential because it
            # reuses the per-batch K/V scratch computed at q-tile 0.
            dimension_semantics=("parallel", "arbitrary")),
    )(x1c, x2c, params["wq"], params["bq"], params["wkv"], params["bkv"],
      params["wo"], params["bo"])

    return out.reshape(B, C, H, W)


# -----------------------------------------------------------------------------
# Deterministic parameter init (nn.Linear(dim, dim) x 4, PyTorch (out, in) layout)
# -----------------------------------------------------------------------------
def init_params(key, dim):
    keys = jax.random.split(key, 8)
    s = 1.0 / float(dim) ** 0.5

    def lin(kw, kb):
        w = jax.random.uniform(kw, (dim, dim), jnp.float32, -s, s)   # (out, in)
        b = jax.random.uniform(kb, (dim, 1), jnp.float32, -s, s)     # column bias
        return w, b

    wq, bq = lin(keys[0], keys[1])
    wk, bk = lin(keys[2], keys[3])
    wv, bv = lin(keys[4], keys[5])
    wo, bo = lin(keys[6], keys[7])
    return dict(wq=wq, bq=bq, wk=wk, bk=bk, wv=wv, bv=bv, wo=wo, bo=bo)


def prepare_params(params, num_heads):
    """One-time host transform: fold softmax scale into wq/bq, merge K/V into one
    projection, cast weights to bf16 for the MXU (biases stay fp32)."""
    dim = params["wq"].shape[0]
    head_dim = dim // num_heads
    scale = float(head_dim) ** -0.5
    wq = (params["wq"] * scale).astype(jnp.bfloat16)
    bq = params["bq"] * scale
    wkv = jnp.concatenate([params["wk"], params["wv"]], axis=0).astype(jnp.bfloat16)
    bkv = jnp.concatenate([params["bk"], params["bv"]], axis=0)
    wo = params["wo"].astype(jnp.bfloat16)
    bo = params["bo"]
    return dict(wq=wq, bq=bq, wkv=wkv, bkv=bkv, wo=wo, bo=bo)


# -----------------------------------------------------------------------------
# Pure-JAX reference (mirrors the PyTorch module exactly, fp32)
# -----------------------------------------------------------------------------
def reference_forward(params, x1, x2, num_heads):
    B, C, H, W = x1.shape
    HW = H * W
    hd = C // num_heads
    scale = float(hd) ** -0.5
    x1_t = x1.reshape(B, C, HW).transpose(0, 2, 1)
    x2_t = x2.reshape(B, C, HW).transpose(0, 2, 1)
    q = x1_t @ params["wq"].T + params["bq"][:, 0]
    k = x2_t @ params["wk"].T + params["bk"][:, 0]
    v = x2_t @ params["wv"].T + params["bv"][:, 0]
    q = q.reshape(B, HW, num_heads, hd).transpose(0, 2, 1, 3)
    k = k.reshape(B, HW, num_heads, hd).transpose(0, 2, 1, 3)
    v = v.reshape(B, HW, num_heads, hd).transpose(0, 2, 1, 3)
    s = jnp.einsum("bhqd,bhkd->bhqk", q, k) * scale
    p = jax.nn.softmax(s, axis=-1)
    o = jnp.einsum("bhqk,bhkd->bhqd", p, v)
    o = o.transpose(0, 2, 1, 3).reshape(B, HW, C)
    o = o @ params["wo"].T + params["bo"][:, 0]
    return o.transpose(0, 2, 1).reshape(B, C, H, W)


if __name__ == "__main__":
    # dim = 64, heads = 4 -> head_dim = 16 (whole packed-bf16 tiles per head);
    # H = W = 16 -> HW = 256 tokens, TQ = 128 (lane-dense), grid = (2, 2).
    B, C, H, W = 2, 64, 16, 16
    num_heads = 4

    key = jax.random.PRNGKey(0)
    kp, k1, k2 = jax.random.split(key, 3)
    raw_params = init_params(kp, C)
    kparams = prepare_params(raw_params, num_heads)

    x1 = jax.random.normal(k1, (B, C, H, W), jnp.float32)
    x2 = jax.random.normal(k2, (B, C, H, W), jnp.float32)

    fwd = jax.jit(cross_attention_forward, static_argnums=(3,))
    out = jax.block_until_ready(fwd(kparams, x1, x2, num_heads))

    ref = reference_forward(raw_params, x1, x2, num_heads)
    assert out.shape == (B, C, H, W)
    # Relaxed tolerance: MXU operands are bf16 (fp32 accumulation) and the softmax
    # denominator uses the EUP approximate reciprocal; observed error is ~1e-3-1e-2.
    max_err = float(jnp.max(jnp.abs(out - ref)))
    assert jnp.allclose(out, ref, atol=5e-2, rtol=5e-2), (
        f"mismatch vs reference (max abs err {max_err})")

    print("KERNEL_OK")
</pallas_src>

<mosaic_0001>
module attributes {stable_mosaic.version = 11 : i64} {
  func.func @_cross_attn_kernel(%arg0: i32, %arg1: i32, %arg2: memref<1x64x128xf32, #tpu.memory_space<vmem>>, %arg3: memref<1x64x256xf32, #tpu.memory_space<vmem>>, %arg4: memref<64x64xbf16, #tpu.memory_space<vmem>>, %arg5: memref<64x1xf32, #tpu.memory_space<vmem>>, %arg6: memref<128x64xbf16, #tpu.memory_space<vmem>>, %arg7: memref<128x1xf32, #tpu.memory_space<vmem>>, %arg8: memref<64x64xbf16, #tpu.memory_space<vmem>>, %arg9: memref<64x1xf32, #tpu.memory_space<vmem>>, %arg10: memref<1x64x128xf32, #tpu.memory_space<vmem>>, %arg11: memref<128x256xbf16, #tpu.memory_space<vmem>>, %arg12: memref<64x128xbf16, #tpu.memory_space<vmem>>) attributes {dimension_semantics = [#tpu.dimension_semantics<parallel>, #tpu.dimension_semantics<arbitrary>], iteration_bounds = array<i64: 2, 2>, scalar_prefetch = 0 : i64, scratch_operands = 2 : i64, tpu.core_type = #tpu.core_type<tc>, window_params = [{transform_indices = @transform_0, window_bounds = array<i64: 1, 64, 128>}, {transform_indices = @transform_1, window_bounds = array<i64: 1, 64, 256>}, {pipeline_mode = #tpu.pipeline_mode<synchronous>, transform_indices = @transform_2, window_bounds = array<i64: 64, 64>}, {pipeline_mode = #tpu.pipeline_mode<synchronous>, transform_indices = @transform_3, window_bounds = array<i64: 64, 1>}, {pipeline_mode = #tpu.pipeline_mode<synchronous>, transform_indices = @transform_4, window_bounds = array<i64: 128, 64>}, {pipeline_mode = #tpu.pipeline_mode<synchronous>, transform_indices = @transform_5, window_bounds = array<i64: 128, 1>}, {pipeline_mode = #tpu.pipeline_mode<synchronous>, transform_indices = @transform_6, window_bounds = array<i64: 64, 64>}, {pipeline_mode = #tpu.pipeline_mode<synchronous>, transform_indices = @transform_7, window_bounds = array<i64: 64, 1>}, {transform_indices = @transform_8, window_bounds = array<i64: 1, 64, 128>}]} {
    %c0_i32 = arith.constant 0 : i32
    %0 = arith.cmpi eq, %arg1, %c0_i32 : i32
    %1 = arith.extui %0 : i1 to i32
    %c0_i32_0 = arith.constant 0 : i32
    %2 = arith.cmpi ne, %1, %c0_i32_0 : i32
    scf.if %2 {
      %c0_50 = arith.constant 0 : index
      %c0_51 = arith.constant 0 : index
      %c0_52 = arith.constant 0 : index
      %93 = vector.load %arg3[%c0_50, %c0_51, %c0_52] : memref<1x64x256xf32, #tpu.memory_space<vmem>>, vector<1x64x256xf32>
      %94 = vector.shape_cast %93 : vector<1x64x256xf32> to vector<64x256xf32>
      %95 = arith.truncf %94 : vector<64x256xf32> to vector<64x256xbf16>
      %c0_53 = arith.constant 0 : index
      %c0_54 = arith.constant 0 : index
      %96 = vector.load %arg6[%c0_53, %c0_54] : memref<128x64xbf16, #tpu.memory_space<vmem>>, vector<128x64xbf16>
      %cst_55 = arith.constant dense<0.000000e+00> : vector<128x256xf32>
      %97 = tpu.matmul %96, %95, %cst_55 {dimension_numbers = #tpu.dot_dimension_numbers<[1], [0], [0], [1], [0, 0, 1, 1], [], []>} : vector<128x64xbf16>, vector<64x256xbf16>, vector<128x256xf32> -> vector<128x256xf32>
      %c0_56 = arith.constant 0 : index
      %c0_57 = arith.constant 0 : index
      %98 = vector.load %arg7[%c0_56, %c0_57] : memref<128x1xf32, #tpu.memory_space<vmem>>, vector<128x1xf32>
      %99 = vector.broadcast %98 : vector<128x1xf32> to vector<128x256xf32>
      %100 = arith.addf %97, %99 : vector<128x256xf32>
      %101 = arith.truncf %100 : vector<128x256xf32> to vector<128x256xbf16>
      %c0_58 = arith.constant 0 : index
      %c0_59 = arith.constant 0 : index
      %102 = vector.load %arg11[%c0_58, %c0_59] : memref<128x256xbf16, #tpu.memory_space<vmem>>, vector<128x256xbf16>
      tpu.vector_store %arg11[%c0_58, %c0_59], %101 {strides = array<i32>} : memref<128x256xbf16, #tpu.memory_space<vmem>>, vector<128x256xbf16>,
    } else {
    }
    %c0 = arith.constant 0 : index
    %c0_1 = arith.constant 0 : index
    %c0_2 = arith.constant 0 : index
    %3 = vector.load %arg2[%c0, %c0_1, %c0_2] : memref<1x64x128xf32, #tpu.memory_space<vmem>>, vector<1x64x128xf32>
    %4 = vector.shape_cast %3 : vector<1x64x128xf32> to vector<64x128xf32>
    %5 = arith.truncf %4 : vector<64x128xf32> to vector<64x128xbf16>
    %c0_3 = arith.constant 0 : index
    %c0_4 = arith.constant 0 : index
    %6 = vector.load %arg4[%c0_3, %c0_4] : memref<64x64xbf16, #tpu.memory_space<vmem>>, vector<64x64xbf16>
    %cst = arith.constant dense<0.000000e+00> : vector<64x128xf32>
    %7 = tpu.matmul %6, %5, %cst {dimension_numbers = #tpu.dot_dimension_numbers<[1], [0], [0], [1], [0, 0, 1, 1], [], []>} : vector<64x64xbf16>, vector<64x128xbf16>, vector<64x128xf32> -> vector<64x128xf32>
    %c0_5 = arith.constant 0 : index
    %c0_6 = arith.constant 0 : index
    %8 = vector.load %arg5[%c0_5, %c0_6] : memref<64x1xf32, #tpu.memory_space<vmem>>, vector<64x1xf32>
    %9 = vector.broadcast %8 : vector<64x1xf32> to vector<64x128xf32>
    %10 = arith.addf %7, %9 : vector<64x128xf32>
    %11 = arith.truncf %10 : vector<64x128xf32> to vector<64x128xbf16>
    %12 = vector.extract_strided_slice %11 {offsets = [0, 0], sizes = [16, 128], strides = [1, 1]} : vector<64x128xbf16> to vector<16x128xbf16>
    %c0_7 = arith.constant 0 : index
    %c0_8 = arith.constant 0 : index
    %13 = vector.load %arg11[%c0_7, %c0_8] : memref<128x256xbf16, #tpu.memory_space<vmem>>, vector<16x256xbf16>
    %c64 = arith.constant 64 : index
    %c0_9 = arith.constant 0 : index
    %14 = vector.load %arg11[%c64, %c0_9] : memref<128x256xbf16, #tpu.memory_space<vmem>>, vector<16x256xbf16>
    %cst_10 = arith.constant dense<0.000000e+00> : vector<256x128xf32>
    %15 = tpu.matmul %13, %12, %cst_10 {dimension_numbers = #tpu.dot_dimension_numbers<[0], [0], [1], [1], [0, 1, 1, 1], [], []>} : vector<16x256xbf16>, vector<16x128xbf16>, vector<256x128xf32> -> vector<256x128xf32>
    %cst_11 = arith.constant dense<0xFF800000> : vector<128xf32>
    %16 = vector.multi_reduction <maximumf>, %15, %cst_11 [0] : vector<256x128xf32> to vector<128xf32>
    %17 = vector.shape_cast %16 : vector<128xf32> to vector<1x128xf32>
    %18 = vector.broadcast %17 : vector<1x128xf32> to vector<256x128xf32>
    %19 = arith.subf %15, %18 : vector<256x128xf32>
    %20 = math.exp %19 : vector<256x128xf32>
    %cst_12 = arith.constant dense<0.000000e+00> : vector<128xf32>
    %21 = vector.multi_reduction <add>, %20, %cst_12 [0] : vector<256x128xf32> to vector<128xf32>
    %22 = vector.shape_cast %21 : vector<128xf32> to vector<1x128xf32>
    %23 = tpu.reciprocal %22 {approx = true} : vector<1x128xf32> -> vector<1x128xf32>
    %24 = vector.broadcast %23 : vector<1x128xf32> to vector<256x128xf32>
    %25 = arith.mulf %20, %24 : vector<256x128xf32>
    %26 = arith.truncf %25 : vector<256x128xf32> to vector<256x128xbf16>
    %cst_13 = arith.constant dense<0.000000e+00> : vector<16x128xf32>
    %27 = tpu.matmul %14, %26, %cst_13 {dimension_numbers = #tpu.dot_dimension_numbers<[1], [0], [0], [1], [0, 0, 1, 1], [], []>} : vector<16x256xbf16>, vector<256x128xbf16>, vector<16x128xf32> -> vector<16x128xf32>
    %28 = arith.truncf %27 : vector<16x128xf32> to vector<16x128xbf16>
    %c0_14 = arith.constant 0 : index
    %c0_15 = arith.constant 0 : index
    %29 = vector.load %arg12[%c0_14, %c0_15] : memref<64x128xbf16, #tpu.memory_space<vmem>>, vector<16x128xbf16>
    tpu.vector_store %arg12[%c0_14, %c0_15], %28 {strides = array<i32>} : memref<64x128xbf16, #tpu.memory_space<vmem>>, vector<16x128xbf16>,
    %30 = vector.extract_strided_slice %11 {offsets = [16, 0], sizes = [16, 128], strides = [1, 1]} : vector<64x128xbf16> to vector<16x128xbf16>
    %c16 = arith.constant 16 : index
    %c0_16 = arith.constant 0 : index
    %31 = vector.load %arg11[%c16, %c0_16] : memref<128x256xbf16, #tpu.memory_space<vmem>>, vector<16x256xbf16>
    %c80 = arith.constant 80 : index
    %c0_17 = arith.constant 0 : index
    %32 = vector.load %arg11[%c80, %c0_17] : memref<128x256xbf16, #tpu.memory_space<vmem>>, vector<16x256xbf16>
    %cst_18 = arith.constant dense<0.000000e+00> : vector<256x128xf32>
    %33 = tpu.matmul %31, %30, %cst_18 {dimension_numbers = #tpu.dot_dimension_numbers<[0], [0], [1], [1], [0, 1, 1, 1], [], []>} : vector<16x256xbf16>, vector<16x128xbf16>, vector<256x128xf32> -> vector<256x128xf32>
    %cst_19 = arith.constant dense<0xFF800000> : vector<128xf32>
    %34 = vector.multi_reduction <maximumf>, %33, %cst_19 [0] : vector<256x128xf32> to vector<128xf32>
    %35 = vector.shape_cast %34 : vector<128xf32> to vector<1x128xf32>
    %36 = vector.broadcast %35 : vector<1x128xf32> to vector<256x128xf32>
    %37 = arith.subf %33, %36 : vector<256x128xf32>
    %38 = math.exp %37 : vector<256x128xf32>
    %cst_20 = arith.constant dense<0.000000e+00> : vector<128xf32>
    %39 = vector.multi_reduction <add>, %38, %cst_20 [0] : vector<256x128xf32> to vector<128xf32>
    %40 = vector.shape_cast %39 : vector<128xf32> to vector<1x128xf32>
    %41 = tpu.reciprocal %40 {approx = true} : vector<1x128xf32> -> vector<1x128xf32>
    %42 = vector.broadcast %41 : vector<1x128xf32> to vector<256x128xf32>
    %43 = arith.mulf %38, %42 : vector<256x128xf32>
    %44 = arith.truncf %43 : vector<256x128xf32> to vector<256x128xbf16>
    %cst_21 = arith.constant dense<0.000000e+00> : vector<16x128xf32>
    %45 = tpu.matmul %32, %44, %cst_21 {dimension_numbers = #tpu.dot_dimension_numbers<[1], [0], [0], [1], [0, 0, 1, 1], [], []>} : vector<16x256xbf16>, vector<256x128xbf16>, vector<16x128xf32> -> vector<16x128xf32>
    %46 = arith.truncf %45 : vector<16x128xf32> to vector<16x128xbf16>
    %c16_22 = arith.constant 16 : index
    %c0_23 = arith.constant 0 : index
    %47 = vector.load %arg12[%c16_22, %c0_23] : memref<64x128xbf16, #tpu.memory_space<vmem>>, vector<16x128xbf16>
    tpu.vector_store %arg12[%c16_22, %c0_23], %46 {strides = array<i32>} : memref<64x128xbf16, #tpu.memory_space<vmem>>, vector<16x128xbf16>,
    %48 = vector.extract_strided_slice %11 {offsets = [32, 0], sizes = [16, 128], strides = [1, 1]} : vector<64x128xbf16> to vector<16x128xbf16>
    %c32 = arith.constant 32 : index
    %c0_24 = arith.constant 0 : index
    %49 = vector.load %arg11[%c32, %c0_24] : memref<128x256xbf16, #tpu.memory_space<vmem>>, vector<16x256xbf16>
    %c96 = arith.constant 96 : index
    %c0_25 = arith.constant 0 : index
    %50 = vector.load %arg11[%c96, %c0_25] : memref<128x256xbf16, #tpu.memory_space<vmem>>, vector<16x256xbf16>
    %cst_26 = arith.constant dense<0.000000e+00> : vector<256x128xf32>
    %51 = tpu.matmul %49, %48, %cst_26 {dimension_numbers = #tpu.dot_dimension_numbers<[0], [0], [1], [1], [0, 1, 1, 1], [], []>} : vector<16x256xbf16>, vector<16x128xbf16>, vector<256x128xf32> -> vector<256x128xf32>
    %cst_27 = arith.constant dense<0xFF800000> : vector<128xf32>
    %52 = vector.multi_reduction <maximumf>, %51, %cst_27 [0] : vector<256x128xf32> to vector<128xf32>
    %53 = vector.shape_cast %52 : vector<128xf32> to vector<1x128xf32>
    %54 = vector.broadcast %53 : vector<1x128xf32> to vector<256x128xf32>
    %55 = arith.subf %51, %54 : vector<256x128xf32>
    %56 = math.exp %55 : vector<256x128xf32>
    %cst_28 = arith.constant dense<0.000000e+00> : vector<128xf32>
    %57 = vector.multi_reduction <add>, %56, %cst_28 [0] : vector<256x128xf32> to vector<128xf32>
    %58 = vector.shape_cast %57 : vector<128xf32> to vector<1x128xf32>
    %59 = tpu.reciprocal %58 {approx = true} : vector<1x128xf32> -> vector<1x128xf32>
    %60 = vector.broadcast %59 : vector<1x128xf32> to vector<256x128xf32>
    %61 = arith.mulf %56, %60 : vector<256x128xf32>
    %62 = arith.truncf %61 : vector<256x128xf32> to vector<256x128xbf16>
    %cst_29 = arith.constant dense<0.000000e+00> : vector<16x128xf32>
    %63 = tpu.matmul %50, %62, %cst_29 {dimension_numbers = #tpu.dot_dimension_numbers<[1], [0], [0], [1], [0, 0, 1, 1], [], []>} : vector<16x256xbf16>, vector<256x128xbf16>, vector<16x128xf32> -> vector<16x128xf32>
    %64 = arith.truncf %63 : vector<16x128xf32> to vector<16x128xbf16>
    %c32_30 = arith.constant 32 : index
    %c0_31 = arith.constant 0 : index
    %65 = vector.load %arg12[%c32_30, %c0_31] : memref<64x128xbf16, #tpu.memory_space<vmem>>, vector<16x128xbf16>
    tpu.vector_store %arg12[%c32_30, %c0_31], %64 {strides = array<i32>} : memref<64x128xbf16, #tpu.memory_space<vmem>>, vector<16x128xbf16>,
    %66 = vector.extract_strided_slice %11 {offsets = [48, 0], sizes = [16, 128], strides = [1, 1]} : vector<64x128xbf16> to vector<16x128xbf16>
    %c48 = arith.constant 48 : index
    %c0_32 = arith.constant 0 : index
    %67 = vector.load %arg11[%c48, %c0_32] : memref<128x256xbf16, #tpu.memory_space<vmem>>, vector<16x256xbf16>
    %c112 = arith.constant 112 : index
    %c0_33 = arith.constant 0 : index
    %68 = vector.load %arg11[%c112, %c0_33] : memref<128x256xbf16, #tpu.memory_space<vmem>>, vector<16x256xbf16>
    %cst_34 = arith.constant dense<0.000000e+00> : vector<256x128xf32>
    %69 = tpu.matmul %67, %66, %cst_34 {dimension_numbers = #tpu.dot_dimension_numbers<[0], [0], [1], [1], [0, 1, 1, 1], [], []>} : vector<16x256xbf16>, vector<16x128xbf16>, vector<256x128xf32> -> vector<256x128xf32>
    %cst_35 = arith.constant dense<0xFF800000> : vector<128xf32>
    %70 = vector.multi_reduction <maximumf>, %69, %cst_35 [0] : vector<256x128xf32> to vector<128xf32>
    %71 = vector.shape_cast %70 : vector<128xf32> to vector<1x128xf32>
    %72 = vector.broadcast %71 : vector<1x128xf32> to vector<256x128xf32>
    %73 = arith.subf %69, %72 : vector<256x128xf32>
    %74 = math.exp %73 : vector<256x128xf32>
    %cst_36 = arith.constant dense<0.000000e+00> : vector<128xf32>
    %75 = vector.multi_reduction <add>, %74, %cst_36 [0] : vector<256x128xf32> to vector<128xf32>
    %76 = vector.shape_cast %75 : vector<128xf32> to vector<1x128xf32>
    %77 = tpu.reciprocal %76 {approx = true} : vector<1x128xf32> -> vector<1x128xf32>
    %78 = vector.broadcast %77 : vector<1x128xf32> to vector<256x128xf32>
    %79 = arith.mulf %74, %78 : vector<256x128xf32>
    %80 = arith.truncf %79 : vector<256x128xf32> to vector<256x128xbf16>
    %cst_37 = arith.constant dense<0.000000e+00> : vector<16x128xf32>
    %81 = tpu.matmul %68, %80, %cst_37 {dimension_numbers = #tpu.dot_dimension_numbers<[1], [0], [0], [1], [0, 0, 1, 1], [], []>} : vector<16x256xbf16>, vector<256x128xbf16>, vector<16x128xf32> -> vector<16x128xf32>
    %82 = arith.truncf %81 : vector<16x128xf32> to vector<16x128xbf16>
    %c48_38 = arith.constant 48 : index
    %c0_39 = arith.constant 0 : index
    %83 = vector.load %arg12[%c48_38, %c0_39] : memref<64x128xbf16, #tpu.memory_space<vmem>>, vector<16x128xbf16>
    tpu.vector_store %arg12[%c48_38, %c0_39], %82 {strides = array<i32>} : memref<64x128xbf16, #tpu.memory_space<vmem>>, vector<16x128xbf16>,
    %c0_40 = arith.constant 0 : index
    %c0_41 = arith.constant 0 : index
    %84 = vector.load %arg8[%c0_40, %c0_41] : memref<64x64xbf16, #tpu.memory_space<vmem>>, vector<64x64xbf16>
    %c0_42 = arith.constant 0 : index
    %c0_43 = arith.constant 0 : index
    %85 = vector.load %arg12[%c0_42, %c0_43] : memref<64x128xbf16, #tpu.memory_space<vmem>>, vector<64x128xbf16>
    %cst_44 = arith.constant dense<0.000000e+00> : vector<64x128xf32>
    %86 = tpu.matmul %84, %85, %cst_44 {dimension_numbers = #tpu.dot_dimension_numbers<[1], [0], [0], [1], [0, 0, 1, 1], [], []>} : vector<64x64xbf16>, vector<64x128xbf16>, vector<64x128xf32> -> vector<64x128xf32>
    %c0_45 = arith.constant 0 : index
    %c0_46 = arith.constant 0 : index
    %87 = vector.load %arg9[%c0_45, %c0_46] : memref<64x1xf32, #tpu.memory_space<vmem>>, vector<64x1xf32>
    %88 = vector.broadcast %87 : vector<64x1xf32> to vector<64x128xf32>
    %89 = arith.addf %86, %88 : vector<64x128xf32>
    %c0_47 = arith.constant 0 : index
    %c0_48 = arith.constant 0 : index
    %c0_49 = arith.constant 0 : index
    %90 = vector.load %arg10[%c0_47, %c0_48, %c0_49] : memref<1x64x128xf32, #tpu.memory_space<vmem>>, vector<1x64x128xf32>
    %91 = vector.shape_cast %90 : vector<1x64x128xf32> to vector<64x128xf32>
    %92 = vector.shape_cast %89 : vector<64x128xf32> to vector<1x64x128xf32>
    tpu.vector_store %arg10[%c0_47, %c0_48, %c0_49], %92 {strides = array<i32>} : memref<1x64x128xf32, #tpu.memory_space<vmem>>, vector<1x64x128xf32>,
    return
  }
  func.func @transform_0(%arg0: i32, %arg1: i32) -> (i32, i32, i32) {
    %c0_i32 = arith.constant 0 : i32
    %c0_i32_0 = arith.constant 0 : i32
    return %arg0, %c0_i32, %arg1 : i32, i32, i32
  }
  func.func @transform_1(%arg0: i32, %arg1: i32) -> (i32, i32, i32) {
    %c0_i32 = arith.constant 0 : i32
    %c0_i32_0 = arith.constant 0 : i32
    %c0_i32_1 = arith.constant 0 : i32
    return %arg0, %c0_i32, %c0_i32_0 : i32, i32, i32
  }
  func.func @transform_2(%arg0: i32, %arg1: i32) -> (i32, i32) {
    %c0_i32 = arith.constant 0 : i32
    %c0_i32_0 = arith.constant 0 : i32
    %c0_i32_1 = arith.constant 0 : i32
    return %c0_i32, %c0_i32_0 : i32, i32
  }
  func.func @transform_3(%arg0: i32, %arg1: i32) -> (i32, i32) {
    %c0_i32 = arith.constant 0 : i32
    %c0_i32_0 = arith.constant 0 : i32
    %c0_i32_1 = arith.constant 0 : i32
    return %c0_i32, %c0_i32_0 : i32, i32
  }
  func.func @transform_4(%arg0: i32, %arg1: i32) -> (i32, i32) {
    %c0_i32 = arith.constant 0 : i32
    %c0_i32_0 = arith.constant 0 : i32
    %c0_i32_1 = arith.constant 0 : i32
    return %c0_i32, %c0_i32_0 : i32, i32
  }
  func.func @transform_5(%arg0: i32, %arg1: i32) -> (i32, i32) {
    %c0_i32 = arith.constant 0 : i32
    %c0_i32_0 = arith.constant 0 : i32
    %c0_i32_1 = arith.constant 0 : i32
    return %c0_i32, %c0_i32_0 : i32, i32
  }
  func.func @transform_6(%arg0: i32, %arg1: i32) -> (i32, i32) {
    %c0_i32 = arith.constant 0 : i32
    %c0_i32_0 = arith.constant 0 : i32
    %c0_i32_1 = arith.constant 0 : i32
    return %c0_i32, %c0_i32_0 : i32, i32
  }
  func.func @transform_7(%arg0: i32, %arg1: i32) -> (i32, i32) {
    %c0_i32 = arith.constant 0 : i32
    %c0_i32_0 = arith.constant 0 : i32
    %c0_i32_1 = arith.constant 0 : i32
    return %c0_i32, %c0_i32_0 : i32, i32
  }
  func.func @transform_8(%arg0: i32, %arg1: i32) -> (i32, i32, i32) {
    %c0_i32 = arith.constant 0 : i32
    %c0_i32_0 = arith.constant 0 : i32
    return %arg0, %c0_i32, %arg1 : i32, i32, i32
  }
}

</mosaic_0001>

<bundles_post_ra>
// kernel: cross_attention_forward.1
= control target key start
LH: loop header
LB: loop body
LE: loop exit
PB: predicated region body
PF: predicated region fallthrough
CT: control target
= control target key end

     0   :  { %s4178_s27 = smov 0   ;;  %s4180_s28 = smov 0   ;;  %s5849_s0 = inlined_call_operand.vmem [shape: f32[2,64,256], index: 0, kind: input, shape index: {}]   ;;  %s5850_s1 = inlined_call_operand.vmem [shape: f32[2,64,256], index: 1, kind: input, shape index: {}]   ;;  %s5851_s2 = inlined_call_operand.vmem [shape: bf16[64,64], index: 2, kind: input, shape index: {}]   ;;  %s5852_s3 = inlined_call_operand.vmem [shape: f32[64,1], index: 3, kind: input, shape index: {}]   ;;  %s5853_s4 = inlined_call_operand.vmem [shape: bf16[128,64], index: 4, kind: input, shape index: {}]   ;;  %s5854_s5 = inlined_call_operand.vmem [shape: f32[128,1], index: 5, kind: input, shape index: {}]   ;;  %s5855_s6 = inlined_call_operand.vmem [shape: bf16[64,64], index: 6, kind: input, shape index: {}]   ;;  %s5856_s7 = inlined_call_operand.vmem [shape: f32[64,1], index: 7, kind: input, shape index: {}]   ;;  %s5857_s8 = inlined_call_operand.vmem [shape: f32[2,64,256], index: 8, kind: output, shape index: {}]  }
   0x1   :  { %s4182_s29 = smov 0   ;;  %s4184_s30 = smov 0  }
   0x2   :  { %s4186_s9 = smov 0   ;;  %s4188_s10 = smov 0  }
   0x3   :  { %s4190_s11 = smov 0  }
   0x4 LB: > { %s27_s12 = sadd.s32 1, %s4121_s9  ;;  %s30_s13 = sadd.s32 1, %s4125_s10  ;;  %s4129_s11 = sphi %s4190_s11, %s18_s11   ;;  %s4125_s10 = sphi %s4188_s10, %s5918_s10   ;;  %s4121_s9 = sphi %s4186_s9, %s5917_s9   ;;  %s4117_s30 = sphi %s4184_s30, %s5916_s30   ;;  %s4113_s29 = sphi %s4182_s29, %s5915_s29   ;;  %s4109_s28 = sphi %s4180_s28, %s5914_s28   ;;  %s4105_s27 = sphi %s4178_s27, %s5913_s27  }
   0x5   : > { %p28_p0 = scmp.ge.s32.totalorder %s27_s12, 2  ;;  %s3270_s14 = sadd.s32 4294967295, %s4129_s11  }
   0x6   : > { %p46_p1 = scmp.ne.s32.totalorder %s4109_s28, %s4105_s27  ;;  %p47_p2 = scmp.eq.s32.totalorder %s4129_s11, 0 }
   0x7   : > { %s5920_s12 = smov (%p28_p0, %s27_s12), 0  ;;  %s5922_s13 = smov (!%p28_p0, %s30_s13), %s4125_s10 }
   0x8   : > { %p32_p3 = scmp.ge.s32.totalorder %s5922_s13, 2  ;;  %p230_p4 = scmp.eq.s32.totalorder %s3270_s14, 3 }
   0x9   : > { %s35_s15 = ssub.s32 %s4121_s9, %s5920_s12  ;;  %p48_p5 = por %p47_p2, %p46_p1 }
   0xa   : > { %s5924_s13 = smov (%p32_p3, %s5922_s13), 0  ;;  %p4226_p6 = por %p230_p4, %p46_p1 }
   0xb   : > { %s34_s17 = ssub.s32 %s4125_s10, %s5924_s13  ;;  %s39_s19 = sadd.s32 1, %s4109_s28 }
   0xc   : > { %s36_s18 = sor.u32 %s35_s15, %s34_s17  ;;  %p3273_p8 = scmp.ge.s32.totalorder %s4129_s11, 4 }
   0xd   : > { %p37_p7 = scmp.eq.s32.totalorder %s36_s18, 0 }
   0xe   : > { %270 = sbr.rel (%p3273_p8) target bundleno = 31 (0x1f), region = 40 }
   0xf   : > { %s4234_s20 = scalar_select %p37_p7, %s4109_s28, %s39_s19  }
  0x15   : > { %273 = sbr.rel (!%p48_p5) target bundleno = 31 (0x1f), region = 44  ;;  %s275_s21 = sand.u32 (%p48_p5), 1, %s4109_s28  }
  0x16   : > { %s3275_s22 = sshll.u32 (%p48_p5), %s4125_s10, 4  ;;  %s3274_s23 = sshll.u32 (%p48_p5), %s275_s21, 6 }
  0x17   : > { %s279_s24 = sadd.s32 (%p48_p5), %s4121_s9, %s3275_s22  ;;  %s277_s17 = scalar_lea.vmem (%p48_p5), [#allocation4], %s3274_s23 }
  0x18   : > { %s3276_s25 = sshll.u32 (%p48_p5), %s279_s24, 3 }
  0x19   : > { %s281_s15 = scalar_lea.vmem (%p48_p5), %s5849_s0, %s3276_s25 }
  0x1a   : > { %v323_v0 = vld [vmem:[%s281_s15] sm:$0xff] (%p48_p5)  ;;  %v325_v1 = vld [vmem:[%s281_s15 + $0x10] sm:$0xff] (%p48_p5) }
  0x1b   : > { %v327_v2 = vld [vmem:[%s281_s15 + $0x20] sm:$0xff] (%p48_p5)  ;;  %324 = vst [vmem:[%s277_s17] sm:$0xff] (%p48_p5), %v323_v0  ;;  %326 = vst [vmem:[%s277_s17 + $0x8] sm:$0xff] (%p48_p5), %v325_v1  ;;  %v329_v3 = vld [vmem:[%s281_s15 + $0x30] sm:$0xff] (%p48_p5) }
  0x1c   : > { %328 = vst [vmem:[%s277_s17 + $0x10] sm:$0xff] %v327_v2  ;;  %v331_v4 = vld [vmem:[%s281_s15 + $0x40] sm:$0xff]  ;;  %v333_v5 = vld [vmem:[%s281_s15 + $0x50] sm:$0xff]  ;;  %330 = vst [vmem:[%s277_s17 + $0x18] sm:$0xff] %v329_v3 }
  0x1d   : > { %332 = vst [vmem:[%s277_s17 + $0x20] sm:$0xff] %v331_v4  ;;  %334 = vst [vmem:[%s277_s17 + $0x28] sm:$0xff] %v333_v5  ;;  %v335_v6 = vld [vmem:[%s281_s15 + $0x60] sm:$0xff]  ;;  %v337_v7 = vld [vmem:[%s281_s15 + $0x70] sm:$0xff] }
  0x1e   : > { %336 = vst [vmem:[%s277_s17 + $0x30] sm:$0xff] %v335_v6  ;;  %338 = vst [vmem:[%s277_s17 + $0x38] sm:$0xff] %v337_v7 }
  0x1f PF: > { %p3277_p9 = scmp.ge.s32.totalorder %s4129_s11, 1  ;;  %p351_p10 = scmp.lt.s32.totalorder %s4129_s11, 5 }
  0x21   : > { %p352_p11 = pnand %p3277_p9, %p351_p10 }
  0x23   : > { %355 = sbr.rel (%p352_p11) target bundleno = 2761 (0xac9), region = 86 }
  0x2a   : > { %s358_s18 = sand.u32 1, %s4105_s27   ;;  %p395_p12 = scmp.lt.s32.totalorder %s4117_s30, 1 }
  0x2b   : > { %s3278_s19 = sshll.u32 %s358_s18, 6  ;;  %p3282_p13 = scmp.ne.s32.totalorder %s4113_s29, 0 }
  0x2c   : > { %s396_s21 = scalar_select %p395_p12, %s4117_s30, 1 }
  0x2d   : > { %s4253_s26 = scalar_lea.vmem [#allocation4], %s3278_s19  ;;  %s4255_s14 = scalar_lea.vmem [#allocation5], %s3278_s19  ;;  %v4131_v15 = vmov (!%p3282_p13), 0   ;;  %v447_v33 = vld [vmem:[%s5854_s5 + $0x10] sm:$0xff] (!%p3282_p13)  ;;  %v445_v34 = vld [vmem:[%s5854_s5] sm:$0xff] (!%p3282_p13)  ;;  %v448_v37 = vld [vmem:[%s5854_s5 + $0x18] sm:$0xff] (!%p3282_p13) }
  0x2e   : > { %s3384_s22 = sshll.u32 %s396_s21, 7  ;;  %404 = sbr.rel (%p3282_p13) target bundleno = 311 (0x137), region = 94  ;;  %638 = vmatprep.mubr.bf16.mxu0 (!%p3282_p13), %v4131_v15  ;;  %678 = vmatprep.mubr.bf16.mxu1 (!%p3282_p13), %v4131_v15  ;;  %v3793_v35 = vld [vmem:[%s5853_s4] sm:$0xff] (!%p3282_p13)   ;;  %v446_v38 = vld [vmem:[%s5854_s5 + $0x8] sm:$0xff] (!%p3282_p13)  ;;  %vm581_vm0 = vcmask (!%p3282_p13), 523264   ;;  %v452_v43 = vld [vmem:[%s5854_s5 + $0x38] sm:$0xff] (!%p3282_p13) }
  0x2f   : > { %s4251_s25 = scalar_lea.vmem %s5850_s1, %s3384_s22  ;;  %3792 = vset.pattern.permute.xlu1 (!%p3282_p13), %v4131_v15  ;;  %3791 = vset.pattern.permute.xlu0 (!%p3282_p13), %v4131_v15  ;;  %v3794_v36 = vld [vmem:[%s5853_s4 + $0x20] sm:$0xff] (!%p3282_p13)   ;;  %v450_v39 = vld [vmem:[%s5854_s5 + $0x28] sm:$0xff] (!%p3282_p13)  ;;  %v451_v44 = vld [vmem:[%s5854_s5 + $0x30] sm:$0xff] (!%p3282_p13) }
  0x30   : > { %v406_v8 = vld [vmem:[%s4251_s25 + $0x8] sm:$0xff] (!%p3282_p13)  ;;  %v408_v9 = vld [vmem:[%s4251_s25 + $0x18] sm:$0xff] (!%p3282_p13)  ;;  %v405_v10 = vld [vmem:[%s4251_s25] sm:$0xff] (!%p3282_p13)  ;;  %473 = vperm.xlu1 (!%p3282_p13), %3792, %v447_v33   ;;  %463 = vperm.xlu0 (!%p3282_p13), %3791, %v445_v34  }
  0x31   : > { %v422_v11 = vpack.c.bf16 (!%p3282_p13), %v408_v9, %v406_v8  ;;  %v407_v12 = vld [vmem:[%s4251_s25 + $0x10] sm:$0xff] (!%p3282_p13)  ;;  %v410_v13 = vld [vmem:[%s4251_s25 + $0x28] sm:$0xff] (!%p3282_p13)  ;;  %v412_v14 = vld [vmem:[%s4251_s25 + $0x38] sm:$0xff] (!%p3282_p13) }
  0x32   : > { %v421_v16 = vpack.c.bf16 (!%p3282_p13), %v407_v12, %v405_v10  ;;  %v424_v17 = vpack.c.bf16 (!%p3282_p13), %v412_v14, %v410_v13  ;;  %v409_v18 = vld [vmem:[%s4251_s25 + $0x20] sm:$0xff] (!%p3282_p13)  ;;  %v411_v19 = vld [vmem:[%s4251_s25 + $0x30] sm:$0xff] (!%p3282_p13)  ;;  %v414_v20 = vld [vmem:[%s4251_s25 + $0x48] sm:$0xff] (!%p3282_p13) }
  0x33   : > { %606 = vmatprep.subr.bf16.mxu0 (!%p3282_p13), %v422_v11  ;;  %3725 = vmatprep.subr.bf16.mxu1 (!%p3282_p13), %v422_v11  ;;  %v416_v21 = vld [vmem:[%s4251_s25 + $0x58] sm:$0xff] (!%p3282_p13)  ;;  %v423_v22 = vpack.c.bf16 (!%p3282_p13), %v411_v19, %v409_v18  ;;  %v413_v23 = vld [vmem:[%s4251_s25 + $0x40] sm:$0xff] (!%p3282_p13)  ;;  %v415_v24 = vld [vmem:[%s4251_s25 + $0x50] sm:$0xff] (!%p3282_p13) }
  0x34   : > { %607 = vmatpush1.bf16.msra.mxu0 (!%p3282_p13), %v421_v16  ;;  %3729 = vmatpush1.bf16.msra.mxu1 (!%p3282_p13), %v421_v16  ;;  %v426_v25 = vpack.c.bf16 (!%p3282_p13), %v416_v21, %v414_v20  ;;  %v418_v26 = vld [vmem:[%s4251_s25 + $0x68] sm:$0xff] (!%p3282_p13)  ;;  %v420_v27 = vld [vmem:[%s4251_s25 + $0x78] sm:$0xff] (!%p3282_p13)  ;;  %v425_v28 = vpack.c.bf16 (!%p3282_p13), %v415_v24, %v413_v23  ;;  %v417_v29 = vld [vmem:[%s4251_s25 + $0x60] sm:$0xff] (!%p3282_p13) }
  0x35   : > { %608 = vmatprep.subr.bf16.mxu0 %v424_v17  ;;  %3726 = vmatprep.subr.bf16.mxu1 %v424_v17  ;;  %v428_v30 = vpack.c.bf16 %v420_v27, %v418_v26  ;;  %v419_v31 = vld [vmem:[%s4251_s25 + $0x70] sm:$0xff]  ;;  %v449_v40 = vld [vmem:[%s5854_s5 + $0x20] sm:$0xff]  ;;  %v3795_v41 = vld [vmem:[%s5853_s4 + $0x8] sm:$0xff]  }
  0x36   : > { %v427_v32 = vpack.c.bf16 %v419_v31, %v417_v29  ;;  %478 = vperm.xlu1 %3792, %v448_v37   ;;  %468 = vperm.xlu0 %3791, %v446_v38   ;;  %v3796_v42 = vld [vmem:[%s5853_s4 + $0x28] sm:$0xff]   ;;  %v453_v46 = vld [vmem:[%s5854_s5 + $0x40] sm:$0xff]  ;;  %v3797_v47 = vld [vmem:[%s5853_s4 + $0x10] sm:$0xff]  }
  0x37   : > { %v454_v45 = vld [vmem:[%s5854_s5 + $0x48] sm:$0xff]  ;;  %v3798_v48 = vld [vmem:[%s5853_s4 + $0x30] sm:$0xff]   ;;  %v456_v49 = vld [vmem:[%s5854_s5 + $0x58] sm:$0xff] }
  0x38   : > { %609 = vmatpush1.bf16.msra.mxu0 %v423_v22  ;;  %3730 = vmatpush1.bf16.msra.mxu1 %v423_v22  ;;  %v455_v50 = vld [vmem:[%s5854_s5 + $0x50] sm:$0xff]  ;;  %v458_v51 = vld [vmem:[%s5854_s5 + $0x68] sm:$0xff]  ;;  %v457_v52 = vld [vmem:[%s5854_s5 + $0x60] sm:$0xff] }
  0x39   : > { %610 = vmatprep.subr.bf16.mxu0 %v426_v25  ;;  %3727 = vmatprep.subr.bf16.mxu1 %v426_v25  ;;  %v3799_v53 = vld [vmem:[%s5853_s4 + $0x18] sm:$0xff]   ;;  %v459_v56 = vld [vmem:[%s5854_s5 + $0x70] sm:$0xff] }
  0x3a   : > { %488 = vperm.xlu1 %3792, %v450_v39   ;;  %483 = vperm.xlu0 %3791, %v449_v40   ;;  %v3800_v54 = vld [vmem:[%s5853_s4 + $0x38] sm:$0xff]  }
  0x3b   : > { %v460_v55 = vld [vmem:[%s5854_s5 + $0x78] sm:$0xff] }
  0x3c   : > { %611 = vmatpush1.bf16.msra.mxu0 %v425_v28  ;;  %3731 = vmatpush1.bf16.msra.mxu1 %v425_v28 }
  0x3d   : > { %612 = vmatprep.subr.bf16.mxu0 %v428_v30  ;;  %3728 = vmatprep.subr.bf16.mxu1 %v428_v30 }
  0x3e   : > { %498 = vperm.xlu1 %3792, %v452_v43   ;;  %493 = vperm.xlu0 %3791, %v451_v44  }
  0x40   : > { %613 = vmatpush1.bf16.msra.mxu0 %v427_v32  ;;  %3732 = vmatpush1.bf16.msra.mxu1 %v427_v32 }
  0x42   : > { %508 = vperm.xlu1 %3792, %v454_v45   ;;  %503 = vperm.xlu0 %3791, %v453_v46  }
  0x43   : > { %3291 = vmatmul.mubr.msk.bf16.vlgmr.msra.gmra.mrb[0].mxu0 %vm581_vm0, %v3793_v35  ;;  %3295 = vmatmul.mubr.msk.bf16.vlgmr.msra.gmra.mrb[0].mxu1 %vm581_vm0, %v3794_v36 }
  0x44   : > { %648 = vmatprep.mubr.bf16.mxu0 %v4131_v15  ;;  %688 = vmatprep.mubr.bf16.mxu1 %v4131_v15 }
  0x46   : > { %518 = vperm.xlu1 %3792, %v456_v49   ;;  %513 = vperm.xlu0 %3791, %v455_v50  }
  0x4a   : > { %528 = vperm.xlu1 %3792, %v458_v51   ;;  %523 = vperm.xlu0 %3791, %v457_v52  }
  0x4b   : > { %3292 = vmatmul.mubr.msk.bf16.gmra.mrb[4].mxu0 %vm581_vm0, %v3795_v41  ;;  %3296 = vmatmul.mubr.msk.bf16.gmra.mrb[4].mxu1 %vm581_vm0, %v3796_v42 }
  0x4c   : > { %658 = vmatprep.mubr.bf16.mxu0 %v4131_v15  ;;  %698 = vmatprep.mubr.bf16.mxu1 %v4131_v15 }
  0x4e   : > { %538 = vperm.xlu1 %3792, %v460_v55   ;;  %533 = vperm.xlu0 %3791, %v459_v56  }
  0x53   : > { %3293 = vmatmul.mubr.msk.bf16.gmra.mrb[8].mxu0 %vm581_vm0, %v3797_v47  ;;  %3297 = vmatmul.mubr.msk.bf16.gmra.mrb[8].mxu1 %vm581_vm0, %v3798_v48 }
  0x54   : > { %668 = vmatprep.mubr.bf16.mxu0 %v4131_v15  ;;  %708 = vmatprep.mubr.bf16.mxu1 %v4131_v15 }
  0x5b   : > { %3294 = vmatmul.mubr.msk.bf16.gmra.mrb[12].mxu0 %vm581_vm0, %v3799_v53  ;;  %3298 = vmatmul.mubr.msk.bf16.gmra.mrb[12].mxu1 %vm581_vm0, %v3800_v54 }
  0xaf   : > { %v474_v57 = vpop.permute.xlu1 %473  ;;  %v464_v58 = vpop.permute.xlu0 %463 }
  0xb5   : > { %v479_v59 = vpop.permute.xlu1 %478  ;;  %v469_v60 = vpop.permute.xlu0 %468 }
  0xb9   : > { %v4364_v61 = vpop.permute.xlu1 %488  ;;  %v4366_v62 = vpop.permute.xlu0 %483 }
  0xbd   : > { %v4368_v63 = vpop.permute.xlu1 %498  ;;  %v4370_v0 = vpop.permute.xlu0 %493 }
  0xc1   : > { %v509_v1 = vpop.permute.xlu1 %508  ;;  %v504_v2 = vpop.permute.xlu0 %503 }
  0xc5   : > { %v519_v23 = vpop.permute.xlu1 %518  ;;  %v514_v24 = vpop.permute.xlu0 %513 }
  0xc9   : > { %v529_v45 = vpop.permute.xlu1 %528  ;;  %v524_v46 = vpop.permute.xlu0 %523 }
 0x116   : > { %v640_v3 = vpop.f32.mrb[0].mxu0  ;;  %v680_v4 = vpop.f32.mrb[0].mxu1 }
 0x117   : > { %v642_v5 = vpop.f32.mrb[1].mxu0  ;;  %v682_v6 = vpop.f32.mrb[1].mxu1  ;;  %v641_v9 = vadd.f32 %v640_v3, %v464_v58  ;;  %v681_v10 = vadd.f32 %v680_v4, %v504_v2 }
 0x118   : > { %v644_v7 = vpop.f32.mrb[2].mxu0  ;;  %v684_v8 = vpop.f32.mrb[2].mxu1  ;;  %v643_v15 = vadd.f32 %v642_v5, %v464_v58  ;;  %v683_v16 = vadd.f32 %v682_v6, %v504_v2 }
 0x119   : > { %v645_v11 = vadd.f32 %v644_v7, %v469_v60  ;;  %v685_v12 = vadd.f32 %v684_v8, %v509_v1  ;;  %v646_v13 = vpop.f32.mrb[3].mxu0  ;;  %v686_v14 = vpop.f32.mrb[3].mxu1 }
 0x11a   : > { %v647_v17 = vadd.f32 %v646_v13, %v469_v60  ;;  %v687_v18 = vadd.f32 %v686_v14, %v509_v1  ;;  %v539_v7 = vpop.permute.xlu1 %538  ;;  %v534_v8 = vpop.permute.xlu0 %533 }
 0x11b   : > { %v719_v19 = vpack.c.bf16 %v645_v11, %v641_v9  ;;  %v727_v20 = vpack.c.bf16 %v685_v12, %v681_v10 }
 0x11c   : > { %v720_v21 = vpack.c.bf16 %v647_v17, %v643_v15  ;;  %v728_v22 = vpack.c.bf16 %v687_v18, %v683_v16 }
 0x11d   : > { %735 = vst [vmem:[#allocation2] sm:$0xff] %v719_v19  ;;  %743 = vst [vmem:[#allocation2 + $0x40] sm:$0xff] %v727_v20 }
 0x11e   : > { %736 = vst [vmem:[#allocation2 + $0x8] sm:$0xff] %v720_v21  ;;  %744 = vst [vmem:[#allocation2 + $0x48] sm:$0xff] %v728_v22  ;;  %v650_v25 = vpop.f32.mrb[4].mxu0  ;;  %v690_v26 = vpop.f32.mrb[4].mxu1 }
 0x11f   : > { %v652_v27 = vpop.f32.mrb[5].mxu0  ;;  %v692_v28 = vpop.f32.mrb[5].mxu1  ;;  %v651_v31 = vadd.f32 %v650_v25, %v474_v57  ;;  %v691_v32 = vadd.f32 %v690_v26, %v514_v24 }
 0x120   : > { %v654_v29 = vpop.f32.mrb[6].mxu0  ;;  %v694_v30 = vpop.f32.mrb[6].mxu1  ;;  %v653_v37 = vadd.f32 %v652_v27, %v474_v57  ;;  %v693_v38 = vadd.f32 %v692_v28, %v514_v24 }
 0x121   : > { %v655_v33 = vadd.f32 %v654_v29, %v479_v59  ;;  %v695_v34 = vadd.f32 %v694_v30, %v519_v23  ;;  %v656_v35 = vpop.f32.mrb[7].mxu0  ;;  %v696_v36 = vpop.f32.mrb[7].mxu1 }
 0x122   : > { %v657_v39 = vadd.f32 %v656_v35, %v479_v59  ;;  %v697_v40 = vadd.f32 %v696_v36, %v519_v23 }
 0x123   : > { %v721_v41 = vpack.c.bf16 %v655_v33, %v651_v31  ;;  %v729_v42 = vpack.c.bf16 %v695_v34, %v691_v32 }
 0x124   : > { %v722_v43 = vpack.c.bf16 %v657_v39, %v653_v37  ;;  %v730_v44 = vpack.c.bf16 %v697_v40, %v693_v38 }
 0x125   : > { %737 = vst [vmem:[#allocation2 + $0x10] sm:$0xff] %v721_v41  ;;  %745 = vst [vmem:[#allocation2 + $0x50] sm:$0xff] %v729_v42 }
 0x126   : > { %738 = vst [vmem:[#allocation2 + $0x18] sm:$0xff] %v722_v43  ;;  %746 = vst [vmem:[#allocation2 + $0x58] sm:$0xff] %v730_v44  ;;  %v660_v47 = vpop.f32.mrb[8].mxu0  ;;  %v700_v48 = vpop.f32.mrb[8].mxu1 }
 0x127   : > { %v662_v49 = vpop.f32.mrb[9].mxu0  ;;  %v702_v50 = vpop.f32.mrb[9].mxu1  ;;  %v661_v53 = vadd.f32 %v660_v47, %v4366_v62  ;;  %v701_v54 = vadd.f32 %v700_v48, %v524_v46 }
 0x128   : > { %v664_v51 = vpop.f32.mrb[10].mxu0  ;;  %v704_v52 = vpop.f32.mrb[10].mxu1  ;;  %v663_v59 = vadd.f32 %v662_v49, %v4366_v62  ;;  %v703_v60 = vadd.f32 %v702_v50, %v524_v46 }
 0x129   : > { %v665_v55 = vadd.f32 %v664_v51, %v4364_v61  ;;  %v705_v56 = vadd.f32 %v704_v52, %v529_v45  ;;  %v666_v57 = vpop.f32.mrb[11].mxu0  ;;  %v706_v58 = vpop.f32.mrb[11].mxu1 }
 0x12a   : > { %v667_v1 = vadd.f32 %v666_v57, %v4364_v61  ;;  %v707_v2 = vadd.f32 %v706_v58, %v529_v45 }
 0x12b   : > { %v723_v3 = vpack.c.bf16 %v665_v55, %v661_v53  ;;  %v731_v4 = vpack.c.bf16 %v705_v56, %v701_v54 }
 0x12c   : > { %v724_v5 = vpack.c.bf16 %v667_v1, %v663_v59  ;;  %v732_v6 = vpack.c.bf16 %v707_v2, %v703_v60 }
 0x12d   : > { %739 = vst [vmem:[#allocation2 + $0x20] sm:$0xff] %v723_v3  ;;  %747 = vst [vmem:[#allocation2 + $0x60] sm:$0xff] %v731_v4 }
 0x12e   : > { %740 = vst [vmem:[#allocation2 + $0x28] sm:$0xff] %v724_v5  ;;  %748 = vst [vmem:[#allocation2 + $0x68] sm:$0xff] %v732_v6  ;;  %v670_v9 = vpop.f32.mrb[12].mxu0  ;;  %v710_v10 = vpop.f32.mrb[12].mxu1 }
 0x12f   : > { %v672_v11 = vpop.f32.mrb[13].mxu0  ;;  %v712_v12 = vpop.f32.mrb[13].mxu1  ;;  %v671_v14 = vadd.f32 %v670_v9, %v4370_v0  ;;  %v711_v61 = vadd.f32 %v710_v10, %v534_v8 }
 0x130   : > { %v674_v13 = vpop.f32.mrb[14].mxu0  ;;  %v714_v62 = vpop.f32.mrb[14].mxu1  ;;  %v673_v19 = vadd.f32 %v672_v11, %v4370_v0  ;;  %v713_v20 = vadd.f32 %v712_v12, %v534_v8 }
 0x131   : > { %v675_v15 = vadd.f32 %v674_v13, %v4368_v63  ;;  %v715_v16 = vadd.f32 %v714_v62, %v539_v7  ;;  %v676_v17 = vpop.f32.mrb[15].mxu0  ;;  %v716_v18 = vpop.f32.mrb[15].mxu1 }
 0x132   : > { %v677_v21 = vadd.f32 %v676_v17, %v4368_v63  ;;  %v717_v22 = vadd.f32 %v716_v18, %v539_v7 }
 0x133   : > { %v725_v23 = vpack.c.bf16 %v675_v15, %v671_v14  ;;  %v733_v24 = vpack.c.bf16 %v715_v16, %v711_v61 }
 0x134   : > { %v726_v25 = vpack.c.bf16 %v677_v21, %v673_v19  ;;  %v734_v26 = vpack.c.bf16 %v717_v22, %v713_v20 }
 0x135   : > { %741 = vst [vmem:[#allocation2 + $0x30] sm:$0xff] %v725_v23  ;;  %749 = vst [vmem:[#allocation2 + $0x70] sm:$0xff] %v733_v24 }
 0x136   : > { %742 = vst [vmem:[#allocation2 + $0x38] sm:$0xff] %v726_v25  ;;  %750 = vst [vmem:[#allocation2 + $0x78] sm:$0xff] %v734_v26 }
 0x137 PF: > { %v921_v27 = vld [vmem:[#allocation2] sm:$0xff]  ;;  %v4132_v28 = vmov 0   ;;  %v752_v29 = vld [vmem:[%s4253_s26 + $0x8] sm:$0xff]  ;;  %v753_v30 = vld [vmem:[%s4253_s26 + $0x10] sm:$0xff]  ;;  %vm839_vm1 = vcmask 523264   ;;  %vm957_vm2 = vcmask 130048  }
 0x138   : > { %v771_v63 = vld [vmem:[%s5852_s3] sm:$0xff]  ;;  %925 = vxpose.xlu1.c.b16.start.end [1/1] (short) %v921_v27, 128  ;;  %3801 = vset.pattern.permute.xlu0 %v4132_v28  ;;  %v754_v32 = vld [vmem:[%s4253_s26 + $0x18] sm:$0xff]  ;;  %v772_v33 = vld [vmem:[%s5852_s3 + $0x8] sm:$0xff]  ;;  %s3380_s17 = sshll.u32 (%p4226_p6), %s4117_s30, 4 }
 0x139   : > { %v751_v0 = vld [vmem:[%s4253_s26] sm:$0xff]  ;;  %781 = vperm.xlu0 %3801, %v771_v63   ;;  %v760_v34 = vpack.c.bf16 %v754_v32, %v753_v30  ;;  %v756_v36 = vld [vmem:[%s4253_s26 + $0x28] sm:$0xff]  ;;  %v773_v37 = vld [vmem:[%s5852_s3 + $0x10] sm:$0xff]  ;;  %s3123_s18 = sadd.s32 (%p4226_p6), %s4113_s29, %s3380_s17 }
 0x13a   : > { %v759_v31 = vpack.c.bf16 %v752_v29, %v751_v0  ;;  %v755_v35 = vld [vmem:[%s4253_s26 + $0x20] sm:$0xff]  ;;  %v757_v40 = vld [vmem:[%s4253_s26 + $0x30] sm:$0xff]  ;;  %v758_v41 = vld [vmem:[%s4253_s26 + $0x38] sm:$0xff]  ;;  %s3381_s16 = sshll.u32 (%p4226_p6), %s3123_s18, 3 }
 0x13b   : > { %v3803_v38 = vld [vmem:[%s5851_s2] sm:$0xff]   ;;  %v761_v39 = vpack.c.bf16 %v756_v36, %v755_v35  ;;  %v774_v42 = vld [vmem:[%s5852_s3 + $0x18] sm:$0xff]  ;;  %v762_v43 = vpack.c.bf16 %v758_v41, %v757_v40  ;;  %v3804_v44 = vld [vmem:[%s5851_s2 + $0x8] sm:$0xff]   ;;  %s3125_s22 = scalar_lea.vmem (%p4226_p6), %s5857_s8, %s3381_s16 }
 0x13c   : > { %3557 = vmatprep.subr.bf16.mxu0 %v759_v31  ;;  %3565 = vmatprep.mubr.msk.bf16.mxu0 %vm839_vm1, %v3803_v38  ;;  %v3805_v45 = vld [vmem:[%s5851_s2 + $0x10] sm:$0xff]   ;;  %v3806_v46 = vld [vmem:[%s5851_s2 + $0x18] sm:$0xff]   ;;  %v922_v47 = vld [vmem:[#allocation2 + $0x8] sm:$0xff] }
 0x13d   : > { %3558 = vmatpush3.bf16.msra.mxu0 %v759_v31  ;;  %786 = vperm.xlu0 %3801, %v772_v33   ;;  %v1429_v48 = vld [vmem:[#allocation2 + $0x10] sm:$0xff]  ;;  %v1430_v49 = vld [vmem:[#allocation2 + $0x18] sm:$0xff]  ;;  %v775_v50 = vld [vmem:[%s5852_s3 + $0x20] sm:$0xff] }
 0x13e   : > { %3559 = vmatprep.subr.bf16.mxu0 %v760_v34  ;;  %v776_v51 = vld [vmem:[%s5852_s3 + $0x28] sm:$0xff]  ;;  %v1936_v54 = vld [vmem:[#allocation2 + $0x20] sm:$0xff]  ;;  %v777_v4 = vld [vmem:[%s5852_s3 + $0x30] sm:$0xff] }
 0x13f   : > { %v1937_v58 = vld [vmem:[#allocation2 + $0x28] sm:$0xff]  ;;  %v778_v6 = vld [vmem:[%s5852_s3 + $0x38] sm:$0xff]  ;;  %v2443_v62 = vld [vmem:[#allocation2 + $0x30] sm:$0xff] }
 0x140   : > { %v2962_v25 = vld [vmem:[%s5856_s7] sm:$0xff]  ;;  %v2964_v63 = vld [vmem:[%s5856_s7 + $0x10] sm:$0xff] }
 0x141   : > { %3560 = vmatpush3.bf16.msra.mxu0 %v760_v34  ;;  %791 = vperm.xlu0 %3801, %v773_v37   ;;  %v2966_v30 = vld [vmem:[%s5856_s7 + $0x20] sm:$0xff]  ;;  %v2968_v33 = vld [vmem:[%s5856_s7 + $0x30] sm:$0xff] }
 0x142   : > { %3561 = vmatprep.subr.bf16.mxu0 %v761_v39 }
 0x145   : > { %3562 = vmatpush3.bf16.msra.mxu0 %v761_v39  ;;  %796 = vperm.xlu0 %3801, %v774_v42  }
 0x146   : > { %3563 = vmatprep.subr.bf16.mxu0 %v762_v43 }
 0x149   : > { %3564 = vmatpush3.bf16.msra.mxu0 %v762_v43 }
 0x14c   : > { %3566 = vmatmul.mubr.msk.bf16.vlgmr.msra.gmra.mrb[0].mxu0 %vm839_vm1, %v3804_v44 }
 0x14d   : > { %3569 = vmatprep.mubr.msk.bf16.mxu0 %vm839_vm1, %v3805_v45 }
 0x154   : > { %3570 = vmatmul.mubr.msk.bf16.gmra.mrb[4].mxu0 %vm839_vm1, %v3806_v46 }
 0x155   : > { %941 = vxpose.xlu1.c.b16.start.end [1/1] (short) %v922_v47, 128 }
 0x163   : > { %1433 = vxpose.xlu0.c.b16.start.end [1/1] (short) %v1429_v48, 128 }
 0x172   : > { %1449 = vxpose.xlu1.c.b16.start.end [1/1] (short) %v1430_v49, 128 }
 0x176   : > { %3802 = vset.pattern.permute.xlu1 %v4132_v28  ;;  %v2965_v28 = vld [vmem:[%s5856_s7 + $0x18] sm:$0xff] }
 0x188   : > { %801 = vperm.xlu0 %3801, %v775_v50  }
 0x192   : > { %806 = vperm.xlu1 %3802, %v776_v51  }
 0x19e   : > { %v933_v52 = vpop.trf.xlu1 }
 0x19f   : > { %3575 = vmatprep.mubr.msk.bf16.mxu1 %vm957_vm2, %v933_v52 }
 0x1a2   : > { %v4422_v53 = vpop.trf.xlu1 }
 0x1a6   : > { %1940 = vxpose.xlu0.c.b16.start.end [1/1] (short) %v1936_v54, 128  ;;  %v4424_v55 = vpop.trf.xlu1 }
 0x1aa   : > { %v4427_v56 = vpop.trf.xlu1 }
 0x1ae   : > { %v4429_v57 = vpop.trf.xlu1 }
 0x1b2   : > { %v4431_v59 = vpop.trf.xlu1 }
 0x1b5   : > { %1956 = vxpose.xlu1.c.b16.start.end [1/1] (short) %v1937_v58, 128 }
 0x1b6   : > { %v4433_v60 = vpop.trf.xlu1 }
 0x1b8   : > { %v782_v8 = vpop.permute.xlu0 %781 }
 0x1ba   : > { %v4435_v1 = vpop.trf.xlu1 }
 0x1bc   : > { %v787_v10 = vpop.permute.xlu0 %786 }
 0x1be   : > { %v4437_v2 = vpop.trf.xlu1 }
 0x1c0   : > { %v792_v12 = vpop.permute.xlu0 %791 }
 0x1c2   : > { %v4439_v3 = vpop.trf.xlu1 }
 0x1c4   : > { %v797_v14 = vpop.permute.xlu0 %796 }
 0x1c6   : > { %v4444_v5 = vpop.trf.xlu1 }
 0x1c9   : > { %v4459_v15 = vpop.trf.xlu0 }
 0x1ca   : > { %v4449_v7 = vpop.trf.xlu1 }
 0x1cb   : > { %811 = vperm.xlu0 %3801, %v777_v4  }
 0x1cd   : > { %v4463_v17 = vpop.trf.xlu0 }
 0x1ce   : > { %v4451_v9 = vpop.trf.xlu1 }
 0x1d1   : > { %v4467_v19 = vpop.trf.xlu0 }
 0x1d2   : > { %v4453_v11 = vpop.trf.xlu1 }
 0x1d5   : > { %816 = vperm.xlu1 %3802, %v778_v6   ;;  %v4471_v21 = vpop.trf.xlu0 }
 0x1d6   : > { %v4455_v13 = vpop.trf.xlu1 }
 0x1d9   : > { %v4475_v23 = vpop.trf.xlu0 }
 0x1da   : > { %v4457_v61 = vpop.trf.xlu1 }
 0x1dd   : > { %v4482_v26 = vpop.trf.xlu0 }
 0x1de   : > { %v4461_v16 = vpop.trf.xlu1 }
 0x1e1   : > { %v4489_v0 = vpop.trf.xlu0 }
 0x1e2   : > { %v4465_v18 = vpop.trf.xlu1 }
 0x1e5   : > { %v4499_v31 = vpop.trf.xlu0 }
 0x1e6   : > { %v4469_v20 = vpop.trf.xlu1 }
 0x1e9   : > { %2447 = vxpose.xlu0.c.b16.start.end [1/1] (short) %v2443_v62, 128 }
 0x1ea   : > { %v4473_v22 = vpop.trf.xlu1 }
 0x1ee   : > { %v4477_v24 = vpop.trf.xlu1 }
 0x1f2   : > { %v4484_v27 = vpop.trf.xlu1 }
 0x1f6   : > { %v4494_v29 = vpop.trf.xlu1 }
 0x1f7   : > { %5861 = vst [vmem:[#allocation6_spill] sm:$0xff] %v4494_v29 }
 0x1fa   : > { %v4501_v32 = vpop.trf.xlu1 }
 0x1fb   : > { %5862 = vst [vmem:[#allocation7_spill] sm:$0xff] %v4501_v32 }
 0x207   : > { %v802_v34 = vpop.permute.xlu0 %801 }
 0x20c   : > { %v4506_v44 = vpop.trf.xlu0 }
 0x20d   : > { %5863 = vst [vmem:[#allocation8_spill] sm:$0xff] %v4506_v44 }
 0x20e   : > { %2972 = vperm.xlu0 %3801, %v2962_v25  }
 0x210   : > { %v4512_v51 = vpop.trf.xlu0 }
 0x211   : > { %v807_v38 = vpop.permute.xlu1 %806  ;;  %5865 = vst [vmem:[#allocation10_spill] sm:$0xff] %v4512_v51 }
 0x212   : > { %2982 = vperm.xlu0 %3801, %v2964_v63  }
 0x216   : > { %2987 = vperm.xlu0 %3801, %v2965_v28  }
 0x21a   : > { %2992 = vperm.xlu0 %3801, %v2966_v30  }
 0x21b   : > { %v4510_v47 = vpop.trf.xlu1 }
 0x21c   : > { %5864 = vst [vmem:[#allocation9_spill] sm:$0xff] %v4510_v47 }
 0x21e   : > { %3002 = vperm.xlu0 %3801, %v2968_v33  }
 0x21f   : > { %v3567_v35 = vpop.f32.mrb[0].mxu0  ;;  %v4516_v4 = vpop.trf.xlu1 }
 0x220   : > { %v886_v36 = vpop.f32.mrb[1].mxu0  ;;  %v895_v39 = vadd.f32 %v3567_v35, %v792_v12  ;;  %5866 = vst [vmem:[#allocation11_spill] sm:$0xff] %v4516_v4 }
 0x221   : > { %v3568_v37 = vpop.f32.mrb[2].mxu0  ;;  %v887_v42 = vadd.f32 %v886_v36, %v782_v8  ;;  %v4522_v8 = vpop.trf.xlu0 }
 0x222   : > { %v898_v40 = vadd.f32 %v3568_v37, %v797_v14  ;;  %v889_v41 = vpop.f32.mrb[3].mxu0  ;;  %5868 = vst [vmem:[#allocation13_spill] sm:$0xff] %v4522_v8 }
 0x223   : > { %v890_v43 = vadd.f32 %v889_v41, %v787_v10  ;;  %v4524_v10 = vpop.trf.xlu1 }
 0x224   : > { %v4508_v45 = vpack.c.bf16 %v898_v40, %v895_v39  ;;  %5869 = vst [vmem:[#allocation14_spill] sm:$0xff] %v4524_v10 }
 0x225   : > { %v917_v46 = vpack.c.bf16 %v890_v43, %v887_v42  ;;  %v4530_v12 = vpop.trf.xlu0 }
 0x226   : > { %5870 = vst [vmem:[#allocation15_spill] sm:$0xff] %v4530_v12 }
 0x227   : > { %v3571_v48 = vpop.f32.mrb[4].mxu0  ;;  %3573 = vmatprep.subr.bf16.mxu1 %v917_v46 }
 0x228   : > { %v902_v49 = vpop.f32.mrb[5].mxu0  ;;  %3574 = vmatpush3.bf16.msra.mxu1 %v917_v46 }
 0x229   : > { %v3572_v50 = vpop.f32.mrb[6].mxu0  ;;  %v903_v54 = vadd.f32 %v902_v49, %v802_v34 }
 0x22a   : > { %v905_v52 = vpop.f32.mrb[7].mxu0 }
 0x22b   : > { %v906_v58 = vadd.f32 %v905_v52, %v807_v38  ;;  %3576 = vmatmul.mubr.msk.bf16.vlgmr.msra.gmra.mrb[0].mxu1 %vm957_vm2, %v4422_v53  ;;  %v4532_v53 = vpop.trf.xlu1 }
 0x22c   : > { %3579 = vmatprep.mubr.msk.bf16.mxu1 %vm957_vm2, %v4424_v55  ;;  %5871 = vst [vmem:[#allocation16_spill] sm:$0xff] %v4532_v53  ;;  %v4536_v55 = vpop.trf.xlu0 }
 0x22d   : > { %v4520_v6 = vpack.c.bf16 %v906_v58, %v903_v54  ;;  %5872 = vst [vmem:[#allocation17_spill] sm:$0xff] %v4536_v55 }
 0x22f   : > { %5867 = vst [vmem:[#allocation12_spill] sm:$0xff] %v4520_v6  ;;  %v4540_v62 = vpop.trf.xlu1 }
 0x230   : > { %5873 = vst [vmem:[#allocation18_spill] sm:$0xff] %v4540_v62  ;;  %v4542_v14 = vpop.trf.xlu0 }
 0x231   : > { %5874 = vst [vmem:[#allocation19_spill] sm:$0xff] %v4542_v14 }
 0x233   : > { %3580 = vmatmul.mubr.msk.bf16.gmra.mrb[4].mxu1 %vm957_vm2, %v4427_v56  ;;  %v4546_v56 = vpop.trf.xlu1 }
 0x234   : > { %3583 = vmatprep.mubr.msk.bf16.mxu1 %vm957_vm2, %v4429_v57  ;;  %5875 = vst [vmem:[#allocation20_spill] sm:$0xff] %v4546_v56  ;;  %v4550_v57 = vpop.trf.xlu0 }
 0x235   : > { %5876 = vst [vmem:[#allocation21_spill] sm:$0xff] %v4550_v57 }
 0x23b   : > { %3584 = vmatmul.mubr.msk.bf16.gmra.mrb[8].mxu1 %vm957_vm2, %v4431_v59  ;;  %v4552_v59 = vpop.trf.xlu1 }
 0x23c   : > { %3587 = vmatprep.mubr.msk.bf16.mxu1 %vm957_vm2, %v4433_v60  ;;  %5877 = vst [vmem:[#allocation22_spill] sm:$0xff] %v4552_v59  ;;  %v4558_v60 = vpop.trf.xlu0 }
 0x23d   : > { %5878 = vst [vmem:[#allocation23_spill] sm:$0xff] %v4558_v60 }
 0x23f   : > { %v4560_v25 = vpop.trf.xlu1 }
 0x240   : > { %5879 = vst [vmem:[#allocation24_spill] sm:$0xff] %v4560_v25 }
 0x243   : > { %3588 = vmatmul.mubr.msk.bf16.gmra.mrb[12].mxu1 %vm957_vm2, %v4435_v1 }
 0x244   : > { %3591 = vmatprep.mubr.msk.bf16.mxu1 %vm957_vm2, %v4437_v2 }
 0x24a   : > { %v812_v1 = vpop.permute.xlu0 %811 }
 0x24b   : > { %3592 = vmatmul.mubr.msk.bf16.gmra.mrb[16].mxu1 %vm957_vm2, %v4439_v3  ;;  %v911_v63 = vadd.f32 %v3571_v48, %v812_v1 }
 0x24c   : > { %3595 = vmatprep.mubr.msk.bf16.mxu1 %vm957_vm2, %v4444_v5 }
 0x253   : > { %3596 = vmatmul.mubr.msk.bf16.gmra.mrb[20].mxu1 %vm957_vm2, %v4449_v7 }
 0x254   : > { %3599 = vmatprep.mubr.msk.bf16.mxu1 %vm957_vm2, %v4451_v9  ;;  %v817_v2 = vpop.permute.xlu1 %816 }
 0x255   : > { %v914_v28 = vadd.f32 %v3572_v50, %v817_v2 }
 0x257   : > { %v4566_v30 = vpack.c.bf16 %v914_v28, %v911_v63 }
 0x259   : > { %5880 = vst [vmem:[#allocation25_spill] sm:$0xff] %v4566_v30 }
 0x25b   : > { %3600 = vmatmul.mubr.msk.bf16.gmra.mrb[24].mxu1 %vm957_vm2, %v4453_v11 }
 0x25c   : > { %3603 = vmatprep.mubr.msk.bf16.mxu1 %vm957_vm2, %v4455_v13 }
 0x263   : > { %3604 = vmatmul.mubr.msk.bf16.gmra.mrb[28].mxu1 %vm957_vm2, %v4457_v61 }
 0x2fe   : > { %v4574_v3 = vpop.f32.mrb[0].mxu1 }
 0x2ff   : > { %v4576_v5 = vpop.f32.mrb[1].mxu1 }
 0x300   : > { %v4578_v7 = vpop.f32.mrb[2].mxu1 }
 0x301   : > { %v4580_v9 = vpop.f32.mrb[3].mxu1 }
 0x306   : > { %v4582_v33 = vpop.f32.mrb[4].mxu1 }
 0x307   : > { %v1169_v34 = vmax.f32 %v4574_v3, %v4582_v33  ;;  %v4586_v11 = vpop.f32.mrb[5].mxu1 }
 0x308   : > { %v1167_v13 = vmax.f32 %v4576_v5, %v4586_v11  ;;  %v4590_v35 = vpop.f32.mrb[6].mxu1 }
 0x309   : > { %v1170_v61 = vmax.f32 %v4578_v7, %v4590_v35  ;;  %v4594_v36 = vpop.f32.mrb[7].mxu1 }
 0x30a   : > { %v1168_v37 = vmax.f32 %v4580_v9, %v4594_v36 }
 0x30e   : > { %v4598_v38 = vpop.f32.mrb[8].mxu1 }
 0x30f   : > { %v1173_v39 = vmax.f32 %v1169_v34, %v4598_v38  ;;  %v4601_v40 = vpop.f32.mrb[9].mxu1 }
 0x310   : > { %v1171_v41 = vmax.f32 %v1167_v13, %v4601_v40  ;;  %v4604_v42 = vpop.f32.mrb[10].mxu1 }
 0x311   : > { %v1174_v43 = vmax.f32 %v1170_v61, %v4604_v42  ;;  %v4607_v46 = vpop.f32.mrb[11].mxu1 }
 0x312   : > { %v1172_v48 = vmax.f32 %v1168_v37, %v4607_v46 }
 0x316   : > { %v4610_v49 = vpop.f32.mrb[12].mxu1 }
 0x317   : > { %v1177_v50 = vmax.f32 %v1173_v39, %v4610_v49  ;;  %v4613_v52 = vpop.f32.mrb[13].mxu1 }
 0x318   : > { %v1175_v54 = vmax.f32 %v1171_v41, %v4613_v52  ;;  %v4616_v58 = vpop.f32.mrb[14].mxu1 }
 0x319   : > { %v1178_v1 = vmax.f32 %v1174_v43, %v4616_v58  ;;  %v4619_v2 = vpop.f32.mrb[15].mxu1 }
 0x31a   : > { %v1176_v63 = vmax.f32 %v1172_v48, %v4619_v2 }
 0x31e   : > { %v4622_v28 = vpop.f32.mrb[16].mxu1 }
 0x31f   : > { %v1181_v34 = vmax.f32 %v1177_v50, %v4622_v28  ;;  %v4625_v13 = vpop.f32.mrb[17].mxu1 }
 0x320   : > { %v1179_v61 = vmax.f32 %v1175_v54, %v4625_v13  ;;  %v4628_v37 = vpop.f32.mrb[18].mxu1 }
 0x321   : > { %v1182_v39 = vmax.f32 %v1178_v1, %v4628_v37  ;;  %v4631_v41 = vpop.f32.mrb[19].mxu1 }
 0x322   : > { %v1180_v43 = vmax.f32 %v1176_v63, %v4631_v41 }
 0x326   : > { %v4634_v30 = vpop.f32.mrb[20].mxu1 }
 0x327   : > { %v1185_v48 = vmax.f32 %v1181_v34, %v4634_v30  ;;  %v4637_v25 = vpop.f32.mrb[21].mxu1 }
 0x328   : > { %v1183_v50 = vmax.f32 %v1179_v61, %v4637_v25  ;;  %v4640_v59 = vpop.f32.mrb[22].mxu1 }
 0x329   : > { %v1186_v54 = vmax.f32 %v1182_v39, %v4640_v59  ;;  %v4643_v56 = vpop.f32.mrb[23].mxu1 }
 0x32a   : > { %v1184_v1 = vmax.f32 %v1180_v43, %v4643_v56 }
 0x32e   : > { %v4646_v62 = vpop.f32.mrb[24].mxu1 }
 0x32f   : > { %v1189_v63 = vmax.f32 %v1185_v48, %v4646_v62  ;;  %v4649_v53 = vpop.f32.mrb[25].mxu1 }
 0x330   : > { %v1187_v34 = vmax.f32 %v1183_v50, %v4649_v53  ;;  %v4652_v10 = vpop.f32.mrb[26].mxu1 }
 0x331   : > { %v1190_v61 = vmax.f32 %v1186_v54, %v4652_v10  ;;  %v4655_v4 = vpop.f32.mrb[27].mxu1 }
 0x332   : > { %v1188_v39 = vmax.f32 %v1184_v1, %v4655_v4 }
 0x336   : > { %v4658_v47 = vpop.f32.mrb[28].mxu1 }
 0x337   : > { %v1193_v43 = vmax.f32 %v1189_v63, %v4658_v47  ;;  %v4661_v60 = vpop.f32.mrb[29].mxu1 }
 0x338   : > { %v1191_v48 = vmax.f32 %v1187_v34, %v4661_v60  ;;  %v4664_v57 = vpop.f32.mrb[30].mxu1 }
 0x339   : > { %v1194_v50 = vmax.f32 %v1190_v61, %v4664_v57  ;;  %v4667_v14 = vpop.f32.mrb[31].mxu1 }
 0x33a   : > { %v1192_v54 = vmax.f32 %v1188_v39, %v4667_v14 }
 0x33b   : > { %v1196_v55 = vmax.f32 %v1193_v43, %v1194_v50 }
 0x33c   : > { %v1195_v12 = vmax.f32 %v1191_v48, %v1192_v54 }
 0x33e   : > { %v1197_v8 = vmax.f32 %v1195_v12, %v1196_v55 }
 0x340   : > { %v1198_v1 = vrot.slane %v1197_v8, 4 }
 0x342   : > { %v1199_v51 = vmax.f32 %v1197_v8, %v1198_v1 }
 0x344   : > { %v1200_v44 = vrot.slane %v1199_v51, 2 }
 0x346   : > { %v1201_v6 = vmax.f32 %v1199_v51, %v1200_v44 }
 0x348   : > { %v1202_v63 = vrot.slane %v1201_v6, 1 }
 0x34a   : > { %v4670_v32 = vmax.f32 %v1201_v6, %v1202_v63 }
 0x34c   : > { %v1204_v34 = vsub.f32 %v4576_v5, %v4670_v32  ;;  %v1205_v61 = vsub.f32 %v4580_v9, %v4670_v32  ;;  %v1206_v29 = vsub.f32 %v4574_v3, %v4670_v32  ;;  %v1207_v39 = vsub.f32 %v4578_v7, %v4670_v32 }
 0x34d   : > { %v1208_v8 = vsub.f32 %v4586_v11, %v4670_v32  ;;  %v1209_v44 = vsub.f32 %v4594_v36, %v4670_v32  ;;  %v1210_v51 = vsub.f32 %v4582_v33, %v4670_v32  ;;  %v1211_v6 = vsub.f32 %v4590_v35, %v4670_v32 }
 0x34e   : > { %v1212_v12 = vsub.f32 %v4601_v40, %v4670_v32  ;;  %v1213_v55 = vsub.f32 %v4607_v46, %v4670_v32  ;;  %v1214_v3 = vsub.f32 %v4598_v38, %v4670_v32  ;;  %v1215_v5 = vsub.f32 %v4604_v42, %v4670_v32  ;;  %v924_v42 = vld [vmem:[#allocation2 + $0x48] sm:$0xff] }
 0x34f   : > { %v1216_v7 = vsub.f32 %v4613_v52, %v4670_v32  ;;  %v1217_v9 = vsub.f32 %v4619_v2, %v4670_v32  ;;  %v1218_v33 = vsub.f32 %v4610_v49, %v4670_v32  ;;  %v1219_v11 = vsub.f32 %v4616_v58, %v4670_v32  ;;  %1418 = vmatprep.mubr.bf16.mxu0 %v924_v42 }
 0x350   : > { %v1220_v35 = vsub.f32 %v4625_v13, %v4670_v32  ;;  %v1221_v36 = vsub.f32 %v4631_v41, %v4670_v32  ;;  %v1222_v38 = vsub.f32 %v4622_v28, %v4670_v32  ;;  %v1235_v2 = vsub.f32 %v4664_v57, %v4670_v32 }
 0x351   : > { %v1236_v52 = vmul.f32 1.442695, %v1204_v34  ;;  %v1238_v43 = vmul.f32 1.442695, %v1205_v61  ;;  %v1240_v49 = vmul.f32 1.442695, %v1206_v29 }
 0x352   : > { %v1242_v48 = vmul.f32 1.442695, %v1207_v39  ;;  %v1244_v50 = vmul.f32 1.442695, %v1208_v8  ;;  %v1246_v46 = vmul.f32 1.442695, %v1209_v44 }
 0x353   : > { %3811 = vpow2.f32 %v1236_v52  ;;  %v1248_v54 = vmul.f32 1.442695, %v1210_v51  ;;  %v1250_v1 = vmul.f32 1.442695, %v1211_v6  ;;  %v1252_v34 = vmul.f32 1.442695, %v1212_v12 }
 0x354   : > { %3813 = vpow2.f32 %v1238_v43  ;;  %v1254_v39 = vmul.f32 1.442695, %v1213_v55  ;;  %v1256_v51 = vmul.f32 1.442695, %v1214_v3  ;;  %v1260_v52 = vmul.f32 1.442695, %v1216_v7 }
 0x355   : > { %3815 = vpow2.f32 %v1240_v49  ;;  %v1266_v7 = vmul.f32 1.442695, %v1219_v11 }
 0x356   : > { %3817 = vpow2.f32 %v1242_v48  ;;  %v1262_v48 = vmul.f32 1.442695, %v1217_v9  ;;  %v1268_v9 = vmul.f32 1.442695, %v1220_v35 }
 0x357   : > { %3819 = vpow2.f32 %v1244_v50 }
 0x358   : > { %3821 = vpow2.f32 %v1246_v46  ;;  %v1258_v46 = vmul.f32 1.442695, %v1215_v5 }
 0x359   : > { %3823 = vpow2.f32 %v1248_v54  ;;  %v1264_v54 = vmul.f32 1.442695, %v1218_v33 }
 0x35a   : > { %3825 = vpow2.f32 %v1250_v1 }
 0x35b   : > { %3827 = vpow2.f32 %v1252_v34 }
 0x35c   : > { %3829 = vpow2.f32 %v1254_v39 }
 0x35d   : > { %v4736_v63 = vpop.eup %3811  ;;  %3831 = vpow2.f32 %v1256_v51  ;;  %v1272_v51 = vmul.f32 1.442695, %v1222_v38 }
 0x35e   : > { %v4738_v40 = vpop.eup %3813  ;;  %3833 = vpow2.f32 %v1258_v46 }
 0x35f   : > { %v1300_v29 = vadd.f32 %v4738_v40, %v4736_v63  ;;  %v4742_v61 = vpop.eup %3815  ;;  %3835 = vpow2.f32 %v1260_v52 }
 0x360   : > { %v4745_v44 = vpop.eup %3817  ;;  %3837 = vpow2.f32 %v1262_v48 }
 0x361   : > { %v1301_v8 = vadd.f32 %v4742_v61, %v1300_v29  ;;  %v4748_v42 = vpop.eup %3819  ;;  %3839 = vpow2.f32 %v1264_v54  ;;  %v5884_v54 = vsub.f32 %v4634_v30, %v4670_v32  ;;  %v5887_v30 = vsub.f32 %v4655_v4, %v4670_v32 }
 0x362   : > { %v4751_v49 = vpop.eup %3821  ;;  %3841 = vpow2.f32 %v1266_v7  ;;  %v5890_v4 = vsub.f32 %v4661_v60, %v4670_v32  ;;  %v1298_v60 = vmul.f32 1.442695, %v1235_v2 }
 0x363   : > { %v1302_v6 = vadd.f32 %v4745_v44, %v1301_v8  ;;  %v4754_v43 = vpop.eup %3823  ;;  %v1270_v8 = vmul.f32 1.442695, %v1221_v36  ;;  %3843 = vpow2.f32 %v1268_v9 }
 0x364   : > { %v4757_v50 = vpop.eup %3825 }
 0x365   : > { %v1303_v12 = vadd.f32 %v4748_v42, %v1302_v6  ;;  %v4760_v1 = vpop.eup %3827  ;;  %3845 = vpow2.f32 %v1270_v8  ;;  %v5881_v6 = vsub.f32 %v4628_v37, %v4670_v32  ;;  %v5886_v8 = vsub.f32 %v4649_v53, %v4670_v32 }
 0x366   : > { %v4766_v29 = vpop.eup %3829  ;;  %3847 = vpow2.f32 %v1272_v51  ;;  %v5889_v53 = vsub.f32 %v4652_v10, %v4670_v32  ;;  %v5892_v10 = vsub.f32 %v4658_v47, %v4670_v32 }
 0x367   : > { %v1304_v55 = vadd.f32 %v4751_v49, %v1303_v12  ;;  %v4772_v39 = vpop.eup %3831  ;;  %v1274_v46 = vmul.f32 1.442695, %v5881_v6  ;;  %v5882_v12 = vsub.f32 %v4637_v25, %v4670_v32  ;;  %v1286_v6 = vmul.f32 1.442695, %v5887_v30 }
 0x368   : > { %v4778_v11 = vpop.eup %3833 }
 0x369   : > { %v1305_v3 = vadd.f32 %v4754_v43, %v1304_v55  ;;  %v4784_v35 = vpop.eup %3835  ;;  %v1276_v52 = vmul.f32 1.442695, %v5882_v12  ;;  %3849 = vpow2.f32 %v1274_v46  ;;  %v5883_v55 = vsub.f32 %v4643_v56, %v4670_v32 }
 0x36a   : > { %v4790_v36 = vpop.eup %3837 }
 0x36b   : > { %v1306_v5 = vadd.f32 %v4757_v50, %v1305_v3  ;;  %v4796_v38 = vpop.eup %3839  ;;  %v1278_v48 = vmul.f32 1.442695, %v5883_v55  ;;  %3851 = vpow2.f32 %v1276_v52  ;;  %v1290_v55 = vmul.f32 1.442695, %v5889_v53 }
 0x36c   : > { %v4802_v3 = vpop.eup %3841 }
 0x36d   : > { %v1307_v34 = vadd.f32 %v4760_v1, %v1306_v5  ;;  %v1280_v5 = vmul.f32 1.442695, %v5884_v54  ;;  %v3844_v7 = vpop.eup %3843  ;;  %3853 = vpow2.f32 %v1278_v48  ;;  %v1292_v54 = vmul.f32 1.442695, %v5890_v4 }
 0x36f   : > { %v1308_v33 = vadd.f32 %v4766_v29, %v1307_v34  ;;  %v5885_v34 = vsub.f32 %v4640_v59, %v4670_v32  ;;  %v3846_v56 = vpop.eup %3845  ;;  %3855 = vpow2.f32 %v1280_v5  ;;  %v5888_v59 = vsub.f32 %v4646_v62, %v4670_v32 }
 0x370   : > { %v5891_v62 = vsub.f32 %v4667_v14, %v4670_v32 }
 0x371   : > { %v1309_v58 = vadd.f32 %v4772_v39, %v1308_v33  ;;  %v1282_v9 = vmul.f32 1.442695, %v5885_v34  ;;  %v1288_v12 = vmul.f32 1.442695, %v5888_v59 }
 0x372   : > { %v1294_v34 = vmul.f32 1.442695, %v5891_v62 }
 0x373   : > { %v1310_v13 = vadd.f32 %v4778_v11, %v1309_v58  ;;  %v1284_v58 = vmul.f32 1.442695, %v5886_v8  ;;  %3857 = vpow2.f32 %v1282_v9  ;;  %v1296_v8 = vmul.f32 1.442695, %v5892_v10 }
 0x375   : > { %v1311_v41 = vadd.f32 %v4784_v35, %v1310_v13  ;;  %v3848_v13 = vpop.eup %3847  ;;  %3859 = vpow2.f32 %v1284_v58 }
 0x376   : > { %3861 = vpow2.f32 %v1286_v6 }
 0x377   : > { %v1312_v28 = vadd.f32 %v4790_v36, %v1311_v41  ;;  %v3850_v41 = vpop.eup %3849  ;;  %3863 = vpow2.f32 %v1288_v12 }
 0x378   : > { %3865 = vpow2.f32 %v1290_v55 }
 0x379   : > { %v1313_v37 = vadd.f32 %v4796_v38, %v1312_v28  ;;  %v3852_v28 = vpop.eup %3851  ;;  %3867 = vpow2.f32 %v1292_v54 }
 0x37a   : > { %3869 = vpow2.f32 %v1294_v34 }
 0x37b   : > { %v1314_v25 = vadd.f32 %v4802_v3, %v1313_v37  ;;  %v3854_v37 = vpop.eup %3853  ;;  %3871 = vpow2.f32 %v1296_v8 }
 0x37c   : > { %3873 = vpow2.f32 %v1298_v60 }
 0x37d   : > { %v1315_v33 = vadd.f32 %v3844_v7, %v1314_v25  ;;  %v3856_v25 = vpop.eup %3855 }
 0x37f   : > { %v1316_v51 = vadd.f32 %v3846_v56, %v1315_v33  ;;  %v3858_v33 = vpop.eup %3857 }
 0x381   : > { %v1317_v46 = vadd.f32 %v3848_v13, %v1316_v51  ;;  %v3860_v51 = vpop.eup %3859 }
 0x382   : > { %v3862_v6 = vpop.eup %3861 }
 0x383   : > { %v1318_v52 = vadd.f32 %v3850_v41, %v1317_v46  ;;  %v3864_v14 = vpop.eup %3863 }
 0x384   : > { %v3866_v12 = vpop.eup %3865 }
 0x385   : > { %v1319_v48 = vadd.f32 %v3852_v28, %v1318_v52  ;;  %v3868_v53 = vpop.eup %3867 }
 0x386   : > { %v3870_v47 = vpop.eup %3869 }
 0x387   : > { %v1320_v5 = vadd.f32 %v3854_v37, %v1319_v48  ;;  %v3872_v4 = vpop.eup %3871 }
 0x389   : > { %v1321_v9 = vadd.f32 %v3856_v25, %v1320_v5  ;;  %v3874_v5 = vpop.eup %3873 }
 0x38b   : > { %v1322_v58 = vadd.f32 %v3858_v33, %v1321_v9 }
 0x38d   : > { %v1323_v30 = vadd.f32 %v3860_v51, %v1322_v58 }
 0x38f   : > { %v1324_v46 = vadd.f32 %v3862_v6, %v1323_v30 }
 0x391   : > { %v1325_v59 = vadd.f32 %v3864_v14, %v1324_v46 }
 0x393   : > { %v1326_v52 = vadd.f32 %v3866_v12, %v1325_v59 }
 0x395   : > { %v1327_v55 = vadd.f32 %v3868_v53, %v1326_v52 }
 0x397   : > { %v1328_v48 = vadd.f32 %v3870_v47, %v1327_v55 }
 0x399   : > { %v1329_v54 = vadd.f32 %v3872_v4, %v1328_v48 }
 0x39b   : > { %v1330_v62 = vadd.f32 %v3874_v5, %v1329_v54 }
 0x39d   : > { %v1331_v34 = vrot.slane %v1330_v62, 4 }
 0x39f   : > { %v1332_v32 = vadd.f32 %v1331_v34, %v1330_v62 }
 0x3a1   : > { %v1333_v57 = vrot.slane %v1332_v32, 2 }
 0x3a3   : > { %v1334_v2 = vadd.f32 %v1333_v57, %v1332_v32 }
 0x3a5   : > { %v1335_v9 = vrot.slane %v1334_v2, 1 }
 0x3a7   : > { %v1336_v10 = vadd.f32 %v1335_v9, %v1334_v2 }
 0x3a9   : > { %3875 = vrcp.f32 %v1336_v10 }
 0x3b3   : > { %v3876_v8 = vpop.eup %3875 }
 0x3b4   : > { %v1354_v58 = vmul.f32 %v3876_v8, %v3844_v7  ;;  %v1355_v60 = vmul.f32 %v3876_v8, %v3846_v56  ;;  %v1338_v30 = vmul.f32 %v3876_v8, %v4736_v63  ;;  %v1339_v46 = vmul.f32 %v3876_v8, %v4738_v40 }
 0x3b5   : > { %v1356_v59 = vmul.f32 %v3876_v8, %v3848_v13  ;;  %v1357_v52 = vmul.f32 %v3876_v8, %v3850_v41  ;;  %v1340_v55 = vmul.f32 %v3876_v8, %v4742_v61  ;;  %v1341_v48 = vmul.f32 %v3876_v8, %v4745_v44 }
 0x3b6   : > { %v1378_v54 = vpack.c.bf16 %v1355_v60, %v1354_v58  ;;  %v1370_v62 = vpack.c.bf16 %v1339_v46, %v1338_v30  ;;  %v1358_v34 = vmul.f32 %v3876_v8, %v3852_v28  ;;  %v1359_v32 = vmul.f32 %v3876_v8, %v3854_v37 }
 0x3b7   : > { %v1379_v57 = vpack.c.bf16 %v1357_v52, %v1356_v59  ;;  %v1360_v9 = vmul.f32 %v3876_v8, %v3856_v25  ;;  %v1361_v7 = vmul.f32 %v3876_v8, %v3858_v33  ;;  %v1362_v56 = vmul.f32 %v3876_v8, %v3860_v51 }
 0x3b8   : > { %3410 = vmatprep.subr.bf16.mxu0 %v1378_v54  ;;  %v1380_v2 = vpack.c.bf16 %v1359_v32, %v1358_v34  ;;  %v1363_v63 = vmul.f32 %v3876_v8, %v3862_v6  ;;  %v1371_v40 = vpack.c.bf16 %v1341_v48, %v1340_v55  ;;  %v1364_v41 = vmul.f32 %v3876_v8, %v3864_v14 }
 0x3b9   : > { %3411 = vmatpush3.bf16.msra.mxu0 %v1370_v62  ;;  %v1381_v13 = vpack.c.bf16 %v1361_v7, %v1360_v9  ;;  %v1342_v61 = vmul.f32 %v3876_v8, %v4748_v42  ;;  %v1343_v44 = vmul.f32 %v3876_v8, %v4751_v49  ;;  %v1365_v58 = vmul.f32 %v3876_v8, %v3866_v12 }
 0x3ba   : > { %3412 = vmatprep.subr.bf16.mxu0 %v1379_v57  ;;  %v1382_v10 = vpack.c.bf16 %v1363_v63, %v1362_v56  ;;  %v1366_v28 = vmul.f32 %v3876_v8, %v3868_v53  ;;  %v1367_v37 = vmul.f32 %v3876_v8, %v3870_v47  ;;  %v1368_v30 = vmul.f32 %v3876_v8, %v3872_v4 }
 0x3bb   : > { %v1383_v60 = vpack.c.bf16 %v1365_v58, %v1364_v41  ;;  %v1369_v33 = vmul.f32 %v3876_v8, %v3874_v5  ;;  %v1372_v51 = vpack.c.bf16 %v1343_v44, %v1342_v61  ;;  %v1344_v6 = vmul.f32 %v3876_v8, %v4754_v43 }
 0x3bc   : > { %v1384_v25 = vpack.c.bf16 %v1367_v37, %v1366_v28  ;;  %v1345_v46 = vmul.f32 %v3876_v8, %v4757_v50  ;;  %v1346_v49 = vmul.f32 %v3876_v8, %v4760_v1  ;;  %v1347_v12 = vmul.f32 %v3876_v8, %v4766_v29 }
 0x3bd   : > { %3413 = vmatpush3.bf16.msra.mxu0 %v1371_v40  ;;  %v1385_v14 = vpack.c.bf16 %v1369_v33, %v1368_v30  ;;  %v1348_v47 = vmul.f32 %v3876_v8, %v4772_v39  ;;  %v1349_v4 = vmul.f32 %v3876_v8, %v4778_v11  ;;  %v1350_v50 = vmul.f32 %v3876_v8, %v4784_v35  ;;  %v923_v39 = vld [vmem:[#allocation2 + $0x40] sm:$0xff] }
 0x3be   : > { %3414 = vmatprep.subr.bf16.mxu0 %v1380_v2  ;;  %v1373_v42 = vpack.c.bf16 %v1345_v46, %v1344_v6  ;;  %v1374_v53 = vpack.c.bf16 %v1347_v12, %v1346_v49  ;;  %v1351_v5 = vmul.f32 %v3876_v8, %v4790_v36  ;;  %v1352_v1 = vmul.f32 %v3876_v8, %v4796_v38 }
 0x3bf   : > { %v1375_v43 = vpack.c.bf16 %v1349_v4, %v1348_v47  ;;  %v1353_v29 = vmul.f32 %v3876_v8, %v4802_v3 }
 0x3c0   : > { %v1376_v59 = vpack.c.bf16 %v1351_v5, %v1350_v50 }
 0x3c1   : > { %3415 = vmatpush3.bf16.msra.mxu0 %v1372_v51  ;;  %v1377_v52 = vpack.c.bf16 %v1353_v29, %v1352_v1 }
 0x3c2   : > { %3416 = vmatprep.subr.bf16.mxu0 %v1381_v13 }
 0x3c5   : > { %3417 = vmatpush3.bf16.msra.mxu0 %v1373_v42 }
 0x3c6   : > { %3418 = vmatprep.subr.bf16.mxu0 %v1382_v10 }
 0x3c9   : > { %3419 = vmatpush3.bf16.msra.mxu0 %v1374_v53 }
 0x3ca   : > { %3420 = vmatprep.subr.bf16.mxu0 %v1383_v60 }
 0x3cd   : > { %3421 = vmatpush3.bf16.msra.mxu0 %v1375_v43 }
 0x3ce   : > { %3422 = vmatprep.subr.bf16.mxu0 %v1384_v25 }
 0x3d1   : > { %3423 = vmatpush3.bf16.msra.mxu0 %v1376_v59 }
 0x3d2   : > { %3424 = vmatprep.subr.bf16.mxu0 %v1385_v14 }
 0x3d5   : > { %3425 = vmatpush3.bf16.msra.mxu0 %v1377_v52 }
 0x3d6   : > { %3607 = vmatprep.subr.bf16.mxu0 %v4508_v45 }
 0x3d8   : > { %1419 = vmatmul.mubr.bf16.vlgmr.msra.gmra.mrb[8].mxu0 %v923_v39 }
 0x3d9   : > { %3608 = vmatpush3.bf16.msra.mxu0 %v4508_v45  ;;  %3609 = vmatprep.mubr.msk.bf16.mxu0 %vm957_vm2, %v4459_v15  ;;  %v5893_v15 = vld [vmem:[#allocation6_spill] sm:$0xff] }
 0x3e0   : > { %3610 = vmatmul.mubr.msk.bf16.vlgmr.msra.gmra.mrb[12].mxu0 %vm957_vm2, %v4463_v17  ;;  %v5894_v17 = vld [vmem:[#allocation7_spill] sm:$0xff] }
 0x3e1   : > { %3613 = vmatprep.mubr.msk.bf16.mxu0 %vm957_vm2, %v4467_v19  ;;  %v2967_v19 = vld [vmem:[%s5856_s7 + $0x28] sm:$0xff] }
 0x3e8   : > { %3614 = vmatmul.mubr.msk.bf16.gmra.mrb[16].mxu0 %vm957_vm2, %v4471_v21 }
 0x3e9   : > { %3617 = vmatprep.mubr.msk.bf16.mxu0 %vm957_vm2, %v4475_v23 }
 0x3f0   : > { %3618 = vmatmul.mubr.msk.bf16.gmra.mrb[20].mxu0 %vm957_vm2, %v4482_v26 }
 0x3f1   : > { %3621 = vmatprep.mubr.msk.bf16.mxu0 %vm957_vm2, %v4489_v0 }
 0x3f8   : > { %3622 = vmatmul.mubr.msk.bf16.gmra.mrb[24].mxu0 %vm957_vm2, %v4499_v31 }
 0x3f9   : > { %3625 = vmatprep.mubr.msk.bf16.mxu0 %vm957_vm2, %v4461_v16  ;;  %v2444_v16 = vld [vmem:[#allocation2 + $0x38] sm:$0xff] }
 0x3fa   : > { %2463 = vxpose.xlu1.c.b16.start.end [1/1] (short) %v2444_v16, 128 }
 0x400   : > { %3626 = vmatmul.mubr.msk.bf16.gmra.mrb[28].mxu0 %vm957_vm2, %v4465_v18  ;;  %v2963_v18 = vld [vmem:[%s5856_s7 + $0x8] sm:$0xff] }
 0x401   : > { %3629 = vmatprep.mubr.msk.bf16.mxu0 %vm957_vm2, %v4469_v20 }
 0x408   : > { %3630 = vmatmul.mubr.msk.bf16.gmra.mrb[32].mxu0 %vm957_vm2, %v4473_v22 }
 0x409   : > { %3633 = vmatprep.mubr.msk.bf16.mxu0 %vm957_vm2, %v4477_v24  ;;  %v2969_v24 = vld [vmem:[%s5856_s7 + $0x38] sm:$0xff] }
 0x410   : > { %3634 = vmatmul.mubr.msk.bf16.gmra.mrb[36].mxu0 %vm957_vm2, %v4484_v27 }
 0x411   : > { %3637 = vmatprep.mubr.msk.bf16.mxu0 %vm957_vm2, %v5893_v15 }
 0x418   : > { %3638 = vmatmul.mubr.msk.bf16.gmra.mrb[40].mxu0 %vm957_vm2, %v5894_v17 }
 0x41a   : > { %2977 = vperm.xlu1 %3802, %v2963_v18  }
 0x41e   : > { %2997 = vperm.xlu1 %3802, %v2967_v19  }
 0x422   : > { %3007 = vperm.xlu1 %3802, %v2969_v24  }
 0x4ab   : > { %v3426_v20 = vpop.f32.mrb[8].mxu0 }
 0x4ac   : > { %v3427_v21 = vpop.f32.mrb[9].mxu0 }
 0x4ad   : > { %v3428_v22 = vadd.f32 %v3427_v21, %v3426_v20  ;;  %v3429_v23 = vpop.f32.mrb[10].mxu0 }
 0x4ae   : > { %v3430_v26 = vpop.f32.mrb[11].mxu0 }
 0x4af   : > { %v3431_v27 = vadd.f32 %v3430_v26, %v3429_v23 }
 0x4b1   : > { %v4894_v0 = vpack.c.bf16 %v3431_v27, %v3428_v22 }
 0x4b3   : > { %v4896_v31 = vpop.f32.mrb[12].mxu0 }
 0x4b4   : > { %v4898_v45 = vpop.f32.mrb[13].mxu0 }
 0x4b5   : > { %v4900_v11 = vpop.f32.mrb[14].mxu0 }
 0x4b6   : > { %v4902_v35 = vpop.f32.mrb[15].mxu0 }
 0x4bb   : > { %v4904_v36 = vpop.f32.mrb[16].mxu0 }
 0x4bc   : > { %v1676_v38 = vmax.f32 %v4896_v31, %v4904_v36  ;;  %v4908_v3 = vpop.f32.mrb[17].mxu0 }
 0x4bd   : > { %v1674_v8 = vmax.f32 %v4898_v45, %v4908_v3  ;;  %v4912_v55 = vpop.f32.mrb[18].mxu0 }
 0x4be   : > { %v1677_v48 = vmax.f32 %v4900_v11, %v4912_v55  ;;  %v4916_v54 = vpop.f32.mrb[19].mxu0 }
 0x4bf   : > { %v1675_v62 = vmax.f32 %v4902_v35, %v4916_v54 }
 0x4c3   : > { %v4920_v34 = vpop.f32.mrb[20].mxu0 }
 0x4c4   : > { %v1680_v32 = vmax.f32 %v1676_v38, %v4920_v34  ;;  %v4923_v57 = vpop.f32.mrb[21].mxu0 }
 0x4c5   : > { %v1678_v2 = vmax.f32 %v1674_v8, %v4923_v57  ;;  %v4926_v9 = vpop.f32.mrb[22].mxu0 }
 0x4c6   : > { %v1681_v7 = vmax.f32 %v1677_v48, %v4926_v9  ;;  %v4929_v56 = vpop.f32.mrb[23].mxu0 }
 0x4c7   : > { %v1679_v63 = vmax.f32 %v1675_v62, %v4929_v56 }
 0x4cb   : > { %v4932_v40 = vpop.f32.mrb[24].mxu0 }
 0x4cc   : > { %v1684_v13 = vmax.f32 %v1680_v32, %v4932_v40  ;;  %v4935_v41 = vpop.f32.mrb[25].mxu0 }
 0x4cd   : > { %v1682_v61 = vmax.f32 %v1678_v2, %v4935_v41  ;;  %v4938_v44 = vpop.f32.mrb[26].mxu0 }
 0x4ce   : > { %v1685_v10 = vmax.f32 %v1681_v7, %v4938_v44  ;;  %v4941_v58 = vpop.f32.mrb[27].mxu0 }
 0x4cf   : > { %v1683_v28 = vmax.f32 %v1679_v63, %v4941_v58 }
 0x4d3   : > { %v4944_v37 = vpop.f32.mrb[28].mxu0 }
 0x4d4   : > { %v1688_v60 = vmax.f32 %v1684_v13, %v4944_v37  ;;  %v4947_v30 = vpop.f32.mrb[29].mxu0 }
 0x4d5   : > { %v1686_v25 = vmax.f32 %v1682_v61, %v4947_v30  ;;  %v4950_v33 = vpop.f32.mrb[30].mxu0 }
 0x4d6   : > { %v1689_v51 = vmax.f32 %v1685_v10, %v4950_v33  ;;  %v4953_v6 = vpop.f32.mrb[31].mxu0 }
 0x4d7   : > { %v1687_v46 = vmax.f32 %v1683_v28, %v4953_v6 }
 0x4db   : > { %v4956_v14 = vpop.f32.mrb[32].mxu0 }
 0x4dc   : > { %v1692_v42 = vmax.f32 %v1688_v60, %v4956_v14  ;;  %v4959_v49 = vpop.f32.mrb[33].mxu0 }
 0x4dd   : > { %v1690_v12 = vmax.f32 %v1686_v25, %v4959_v49  ;;  %v4962_v53 = vpop.f32.mrb[34].mxu0 }
 0x4de   : > { %v1693_v47 = vmax.f32 %v1689_v51, %v4962_v53  ;;  %v4965_v4 = vpop.f32.mrb[35].mxu0 }
 0x4df   : > { %v1691_v43 = vmax.f32 %v1687_v46, %v4965_v4 }
 0x4e3   : > { %v4968_v50 = vpop.f32.mrb[36].mxu0 }
 0x4e4   : > { %v1696_v5 = vmax.f32 %v1692_v42, %v4968_v50  ;;  %v4971_v59 = vpop.f32.mrb[37].mxu0 }
 0x4e5   : > { %v1694_v1 = vmax.f32 %v1690_v12, %v4971_v59  ;;  %v4974_v29 = vpop.f32.mrb[38].mxu0 }
 0x4e6   : > { %v1697_v52 = vmax.f32 %v1693_v47, %v4974_v29  ;;  %v4977_v39 = vpop.f32.mrb[39].mxu0 }
 0x4e7   : > { %v1695_v15 = vmax.f32 %v1691_v43, %v4977_v39 }
 0x4eb   : > { %v4980_v17 = vpop.f32.mrb[40].mxu0 }
 0x4ec   : > { %v1700_v16 = vmax.f32 %v1696_v5, %v4980_v17  ;;  %v4983_v18 = vpop.f32.mrb[41].mxu0 }
 0x4ed   : > { %v1698_v19 = vmax.f32 %v1694_v1, %v4983_v18  ;;  %v4986_v20 = vpop.f32.mrb[42].mxu0 }
 0x4ee   : > { %v1701_v21 = vmax.f32 %v1697_v52, %v4986_v20  ;;  %v4989_v22 = vpop.f32.mrb[43].mxu0 }
 0x4ef   : > { %v1699_v23 = vmax.f32 %v1695_v15, %v4989_v22 }
 0x4f0   : > { %v1703_v24 = vmax.f32 %v1700_v16, %v1701_v21 }
 0x4f1   : > { %v1702_v26 = vmax.f32 %v1698_v19, %v1699_v23 }
 0x4f3   : > { %v1704_v27 = vmax.f32 %v1702_v26, %v1703_v24 }
 0x4f5   : > { %v1705_v38 = vrot.slane %v1704_v27, 4 }
 0x4f7   : > { %v1706_v8 = vmax.f32 %v1704_v27, %v1705_v38  ;;  %v1432_v27 = vld [vmem:[#allocation2 + $0x58] sm:$0xff] }
 0x4f8   : > { %1925 = vmatprep.mubr.bf16.mxu1 %v1432_v27 }
 0x4f9   : > { %v1707_v48 = vrot.slane %v1706_v8, 2 }
 0x4fb   : > { %v1708_v62 = vmax.f32 %v1706_v8, %v1707_v48 }
 0x4fd   : > { %v1709_v32 = vrot.slane %v1708_v62, 1 }
 0x4ff   : > { %v4992_v2 = vmax.f32 %v1708_v62, %v1709_v32 }
 0x501   : > { %v1711_v7 = vsub.f32 %v4898_v45, %v4992_v2  ;;  %v1712_v63 = vsub.f32 %v4902_v35, %v4992_v2  ;;  %v1713_v13 = vsub.f32 %v4896_v31, %v4992_v2  ;;  %v1714_v61 = vsub.f32 %v4900_v11, %v4992_v2 }
 0x502   : > { %v1715_v10 = vsub.f32 %v4908_v3, %v4992_v2  ;;  %v1716_v28 = vsub.f32 %v4916_v54, %v4992_v2  ;;  %v1717_v60 = vsub.f32 %v4904_v36, %v4992_v2  ;;  %v1718_v45 = vsub.f32 %v4912_v55, %v4992_v2 }
 0x503   : > { %v1719_v35 = vsub.f32 %v4923_v57, %v4992_v2  ;;  %v1720_v31 = vsub.f32 %v4929_v56, %v4992_v2  ;;  %v1721_v11 = vsub.f32 %v4920_v34, %v4992_v2  ;;  %v1722_v3 = vsub.f32 %v4926_v9, %v4992_v2 }
 0x504   : > { %v1723_v54 = vsub.f32 %v4935_v41, %v4992_v2  ;;  %v1724_v36 = vsub.f32 %v4941_v58, %v4992_v2  ;;  %v1725_v55 = vsub.f32 %v4932_v40, %v4992_v2  ;;  %v1726_v57 = vsub.f32 %v4938_v44, %v4992_v2 }
 0x505   : > { %v1727_v56 = vsub.f32 %v4947_v30, %v4992_v2  ;;  %v1728_v34 = vsub.f32 %v4953_v6, %v4992_v2  ;;  %v1729_v9 = vsub.f32 %v4944_v37, %v4992_v2  ;;  %v1730_v41 = vsub.f32 %v4950_v33, %v4992_v2 }
 0x506   : > { %v1731_v58 = vsub.f32 %v4959_v49, %v4992_v2  ;;  %v1732_v40 = vsub.f32 %v4965_v4, %v4992_v2  ;;  %v1733_v25 = vsub.f32 %v4956_v14, %v4992_v2  ;;  %v1734_v51 = vsub.f32 %v4962_v53, %v4992_v2 }
 0x507   : > { %v1735_v46 = vsub.f32 %v4971_v59, %v4992_v2  ;;  %v1736_v42 = vsub.f32 %v4977_v39, %v4992_v2  ;;  %v1737_v12 = vsub.f32 %v4968_v50, %v4992_v2  ;;  %v1738_v47 = vsub.f32 %v4974_v29, %v4992_v2 }
 0x508   : > { %v1739_v43 = vsub.f32 %v4983_v18, %v4992_v2  ;;  %v1740_v5 = vsub.f32 %v4989_v22, %v4992_v2  ;;  %v1741_v1 = vsub.f32 %v4980_v17, %v4992_v2  ;;  %v1742_v52 = vsub.f32 %v4986_v20, %v4992_v2 }
 0x509   : > { %v1743_v15 = vmul.f32 1.442695, %v1711_v7  ;;  %v1745_v16 = vmul.f32 1.442695, %v1712_v63  ;;  %v1747_v19 = vmul.f32 1.442695, %v1713_v13 }
 0x50a   : > { %v1749_v21 = vmul.f32 1.442695, %v1714_v61  ;;  %v1751_v23 = vmul.f32 1.442695, %v1715_v10  ;;  %v1753_v24 = vmul.f32 1.442695, %v1716_v28 }
 0x50b   : > { %3877 = vpow2.f32 %v1743_v15  ;;  %v1755_v26 = vmul.f32 1.442695, %v1717_v60  ;;  %v1757_v38 = vmul.f32 1.442695, %v1718_v45  ;;  %v1759_v62 = vmul.f32 1.442695, %v1719_v35 }
 0x50c   : > { %3879 = vpow2.f32 %v1745_v16  ;;  %v1761_v63 = vmul.f32 1.442695, %v1720_v31  ;;  %v1763_v10 = vmul.f32 1.442695, %v1721_v11  ;;  %v1765_v45 = vmul.f32 1.442695, %v1722_v3 }
 0x50d   : > { %3881 = vpow2.f32 %v1747_v19  ;;  %v1767_v16 = vmul.f32 1.442695, %v1723_v54  ;;  %v1773_v54 = vmul.f32 1.442695, %v1726_v57  ;;  %v1793_v14 = vmul.f32 1.442695, %v1736_v42 }
 0x50e   : > { %3883 = vpow2.f32 %v1749_v21  ;;  %v1769_v21 = vmul.f32 1.442695, %v1724_v36  ;;  %v1775_v36 = vmul.f32 1.442695, %v1727_v56  ;;  %v1795_v53 = vmul.f32 1.442695, %v1737_v12 }
 0x50f   : > { %3885 = vpow2.f32 %v1751_v23  ;;  %v1797_v59 = vmul.f32 1.442695, %v1738_v47  ;;  %v1799_v39 = vmul.f32 1.442695, %v1739_v43  ;;  %v1801_v50 = vmul.f32 1.442695, %v1740_v5 }
 0x510   : > { %3887 = vpow2.f32 %v1753_v24  ;;  %v1771_v24 = vmul.f32 1.442695, %v1725_v55  ;;  %v1803_v29 = vmul.f32 1.442695, %v1741_v1  ;;  %v1805_v18 = vmul.f32 1.442695, %v1742_v52 }
 0x511   : > { %3889 = vpow2.f32 %v1755_v26 }
 0x512   : > { %3891 = vpow2.f32 %v1757_v38 }
 0x513   : > { %3893 = vpow2.f32 %v1759_v62 }
 0x514   : > { %3895 = vpow2.f32 %v1761_v63  ;;  %v1779_v63 = vmul.f32 1.442695, %v1729_v9 }
 0x515   : > { %v5058_v8 = vpop.eup %3877  ;;  %3897 = vpow2.f32 %v1763_v10  ;;  %v1783_v10 = vmul.f32 1.442695, %v1731_v58 }
 0x516   : > { %v5060_v48 = vpop.eup %3879  ;;  %3899 = vpow2.f32 %v1765_v45  ;;  %v1787_v45 = vmul.f32 1.442695, %v1733_v25 }
 0x517   : > { %v1807_v32 = vadd.f32 %v5060_v48, %v5058_v8  ;;  %v5064_v7 = vpop.eup %3881  ;;  %3901 = vpow2.f32 %v1767_v16 }
 0x518   : > { %v5067_v61 = vpop.eup %3883  ;;  %3903 = vpow2.f32 %v1769_v21 }
 0x519   : > { %v1808_v13 = vadd.f32 %v5064_v7, %v1807_v32  ;;  %v5070_v60 = vpop.eup %3885  ;;  %3905 = vpow2.f32 %v1771_v24  ;;  %v1777_v32 = vmul.f32 1.442695, %v1728_v34 }
 0x51a   : > { %v5073_v15 = vpop.eup %3887  ;;  %3907 = vpow2.f32 %v1773_v54 }
 0x51b   : > { %v1809_v28 = vadd.f32 %v5067_v61, %v1808_v13  ;;  %v5076_v19 = vpop.eup %3889  ;;  %3909 = vpow2.f32 %v1775_v36  ;;  %v1781_v13 = vmul.f32 1.442695, %v1730_v41 }
 0x51c   : > { %v5079_v23 = vpop.eup %3891  ;;  %3911 = vpow2.f32 %v1777_v32 }
 0x51d   : > { %v1810_v35 = vadd.f32 %v5070_v60, %v1809_v28  ;;  %v5082_v26 = vpop.eup %3893  ;;  %3913 = vpow2.f32 %v1779_v63  ;;  %v1785_v28 = vmul.f32 1.442695, %v1732_v40  ;;  %v1791_v40 = vmul.f32 1.442695, %v1735_v46 }
 0x51e   : > { %v5088_v38 = vpop.eup %3895  ;;  %3915 = vpow2.f32 %v1781_v13 }
 0x51f   : > { %v1811_v31 = vadd.f32 %v5073_v15, %v1810_v35  ;;  %v5094_v62 = vpop.eup %3897  ;;  %3917 = vpow2.f32 %v1783_v10  ;;  %v1789_v35 = vmul.f32 1.442695, %v1734_v51 }
 0x520   : > { %v5100_v57 = vpop.eup %3899  ;;  %3919 = vpow2.f32 %v1785_v28 }
 0x521   : > { %v1812_v11 = vadd.f32 %v5076_v19, %v1811_v31  ;;  %v5106_v56 = vpop.eup %3901  ;;  %3921 = vpow2.f32 %v1787_v45 }
 0x522   : > { %v5112_v34 = vpop.eup %3903  ;;  %3923 = vpow2.f32 %v1789_v35 }
 0x523   : > { %v1813_v3 = vadd.f32 %v5079_v23, %v1812_v11  ;;  %v5118_v9 = vpop.eup %3905  ;;  %3925 = vpow2.f32 %v1791_v40 }
 0x524   : > { %v5124_v41 = vpop.eup %3907  ;;  %3927 = vpow2.f32 %v1793_v14 }
 0x525   : > { %v1814_v27 = vadd.f32 %v5082_v26, %v1813_v3  ;;  %v3910_v58 = vpop.eup %3909  ;;  %3929 = vpow2.f32 %v1795_v53 }
 0x526   : > { %v3912_v4 = vpop.eup %3911  ;;  %3931 = vpow2.f32 %v1797_v59 }
 0x527   : > { %v1815_v55 = vadd.f32 %v5088_v38, %v1814_v27  ;;  %v3914_v21 = vpop.eup %3913  ;;  %3933 = vpow2.f32 %v1799_v39 }
 0x528   : > { %v3916_v11 = vpop.eup %3915  ;;  %3935 = vpow2.f32 %v1801_v50 }
 0x529   : > { %v1816_v44 = vadd.f32 %v5094_v62, %v1815_v55  ;;  %v3918_v24 = vpop.eup %3917  ;;  %3937 = vpow2.f32 %v1803_v29 }
 0x52a   : > { %v3920_v3 = vpop.eup %3919  ;;  %3939 = vpow2.f32 %v1805_v18 }
 0x52b   : > { %v1817_v30 = vadd.f32 %v5100_v57, %v1816_v44  ;;  %v3922_v54 = vpop.eup %3921 }
 0x52c   : > { %v3924_v27 = vpop.eup %3923 }
 0x52d   : > { %v1818_v6 = vadd.f32 %v5106_v56, %v1817_v30  ;;  %v3926_v36 = vpop.eup %3925 }
 0x52e   : > { %v3928_v55 = vpop.eup %3927 }
 0x52f   : > { %v1819_v37 = vadd.f32 %v5112_v34, %v1818_v6  ;;  %v3930_v22 = vpop.eup %3929 }
 0x530   : > { %v3932_v44 = vpop.eup %3931 }
 0x531   : > { %v1820_v33 = vadd.f32 %v5118_v9, %v1819_v37  ;;  %v3934_v30 = vpop.eup %3933 }
 0x532   : > { %v3936_v17 = vpop.eup %3935 }
 0x533   : > { %v1821_v49 = vadd.f32 %v5124_v41, %v1820_v33  ;;  %v3938_v6 = vpop.eup %3937 }
 0x534   : > { %v3940_v37 = vpop.eup %3939 }
 0x535   : > { %v1822_v16 = vadd.f32 %v3910_v58, %v1821_v49 }
 0x537   : > { %v1823_v31 = vadd.f32 %v3912_v4, %v1822_v16 }
 0x539   : > { %v1824_v25 = vadd.f32 %v3914_v21, %v1823_v31 }
 0x53b   : > { %v1825_v51 = vadd.f32 %v3916_v11, %v1824_v25 }
 0x53d   : > { %v1826_v46 = vadd.f32 %v3918_v24, %v1825_v51 }
 0x53f   : > { %v1827_v42 = vadd.f32 %v3920_v3, %v1826_v46 }
 0x541   : > { %v1828_v12 = vadd.f32 %v3922_v54, %v1827_v42 }
 0x543   : > { %v1829_v47 = vadd.f32 %v3924_v27, %v1828_v12 }
 0x545   : > { %v1830_v43 = vadd.f32 %v3926_v36, %v1829_v47 }
 0x547   : > { %v1831_v32 = vadd.f32 %v3928_v55, %v1830_v43 }
 0x549   : > { %v1832_v5 = vadd.f32 %v3930_v22, %v1831_v32 }
 0x54b   : > { %v1833_v63 = vadd.f32 %v3932_v44, %v1832_v5 }
 0x54d   : > { %v1834_v13 = vadd.f32 %v3934_v30, %v1833_v63 }
 0x54f   : > { %v1835_v1 = vadd.f32 %v3936_v17, %v1834_v13 }
 0x551   : > { %v1836_v10 = vadd.f32 %v3938_v6, %v1835_v1 }
 0x553   : > { %v1837_v28 = vadd.f32 %v3940_v37, %v1836_v10 }
 0x555   : > { %v1838_v33 = vrot.slane %v1837_v28, 4 }
 0x557   : > { %v1839_v20 = vadd.f32 %v1838_v33, %v1837_v28  ;;  %v5901_v28 = vld [vmem:[#allocation19_spill] sm:$0xff]  ;;  %v5902_v33 = vld [vmem:[#allocation21_spill] sm:$0xff] }
 0x559   : > { %v1840_v2 = vrot.slane %v1839_v20, 2 }
 0x55b   : > { %v1841_v52 = vadd.f32 %v1840_v2, %v1839_v20  ;;  %v5903_v20 = vld [vmem:[#allocation23_spill] sm:$0xff]  ;;  %v5904_v2 = vld [vmem:[#allocation9_spill] sm:$0xff] }
 0x55d   : > { %v1842_v45 = vrot.slane %v1841_v52, 1 }
 0x55f   : > { %v1843_v49 = vadd.f32 %v1842_v45, %v1841_v52  ;;  %v5905_v52 = vld [vmem:[#allocation11_spill] sm:$0xff]  ;;  %v5906_v45 = vld [vmem:[#allocation14_spill] sm:$0xff] }
 0x561   : > { %3941 = vrcp.f32 %v1843_v49  ;;  %v5907_v49 = vld [vmem:[#allocation16_spill] sm:$0xff] }
 0x56b   : > { %v3942_v35 = vpop.eup %3941 }
 0x56c   : > { %v1861_v16 = vmul.f32 %v3942_v35, %v3910_v58  ;;  %v1862_v40 = vmul.f32 %v3942_v35, %v3912_v4  ;;  %v1845_v31 = vmul.f32 %v3942_v35, %v5058_v8  ;;  %v1846_v14 = vmul.f32 %v3942_v35, %v5060_v48 }
 0x56d   : > { %v1863_v25 = vmul.f32 %v3942_v35, %v3914_v21  ;;  %v1864_v53 = vmul.f32 %v3942_v35, %v3916_v11  ;;  %v1847_v51 = vmul.f32 %v3942_v35, %v5064_v7  ;;  %v1848_v59 = vmul.f32 %v3942_v35, %v5067_v61 }
 0x56e   : > { %v1885_v46 = vpack.c.bf16 %v1862_v40, %v1861_v16  ;;  %v1877_v39 = vpack.c.bf16 %v1846_v14, %v1845_v31  ;;  %v1865_v42 = vmul.f32 %v3942_v35, %v3918_v24  ;;  %v1866_v50 = vmul.f32 %v3942_v35, %v3920_v3  ;;  %v5909_v16 = vld [vmem:[#allocation20_spill] sm:$0xff]  ;;  %v5910_v40 = vld [vmem:[#allocation22_spill] sm:$0xff] }
 0x56f   : > { %v1886_v12 = vpack.c.bf16 %v1864_v53, %v1863_v25  ;;  %v1867_v47 = vmul.f32 %v3942_v35, %v3922_v54  ;;  %v1868_v58 = vmul.f32 %v3942_v35, %v3924_v27  ;;  %v1869_v4 = vmul.f32 %v3942_v35, %v3926_v36  ;;  %v5911_v31 = vld [vmem:[#allocation24_spill] sm:$0xff] }
 0x570   : > { %3449 = vmatprep.subr.bf16.mxu1 %v1885_v46  ;;  %v1887_v29 = vpack.c.bf16 %v1866_v50, %v1865_v42  ;;  %v1870_v8 = vmul.f32 %v3942_v35, %v3928_v55  ;;  %v1878_v48 = vpack.c.bf16 %v1848_v59, %v1847_v51  ;;  %v1871_v11 = vmul.f32 %v3942_v35, %v3930_v22 }
 0x571   : > { %3450 = vmatpush3.bf16.msra.mxu1 %v1877_v39  ;;  %v1888_v21 = vpack.c.bf16 %v1868_v58, %v1867_v47  ;;  %v1849_v7 = vmul.f32 %v3942_v35, %v5070_v60  ;;  %v1850_v61 = vmul.f32 %v3942_v35, %v5073_v15  ;;  %v1872_v43 = vmul.f32 %v3942_v35, %v3932_v44 }
 0x572   : > { %3451 = vmatprep.subr.bf16.mxu1 %v1886_v12  ;;  %v1889_v18 = vpack.c.bf16 %v1870_v8, %v1869_v4  ;;  %v1873_v24 = vmul.f32 %v3942_v35, %v3934_v30  ;;  %v1874_v3 = vmul.f32 %v3942_v35, %v3936_v17  ;;  %v1875_v5 = vmul.f32 %v3942_v35, %v3938_v6 }
 0x573   : > { %v1890_v32 = vpack.c.bf16 %v1872_v43, %v1871_v11  ;;  %v1876_v27 = vmul.f32 %v3942_v35, %v3940_v37  ;;  %v1879_v36 = vpack.c.bf16 %v1850_v61, %v1849_v7  ;;  %v1851_v55 = vmul.f32 %v3942_v35, %v5076_v19  ;;  %v5898_v37 = vld [vmem:[#allocation13_spill] sm:$0xff] }
 0x574   : > { %v1891_v54 = vpack.c.bf16 %v1874_v3, %v1873_v24  ;;  %v1852_v63 = vmul.f32 %v3942_v35, %v5079_v23  ;;  %v1853_v15 = vmul.f32 %v3942_v35, %v5082_v26  ;;  %v1854_v44 = vmul.f32 %v3942_v35, %v5088_v38 }
 0x575   : > { %3452 = vmatpush3.bf16.msra.mxu1 %v1878_v48  ;;  %v1892_v22 = vpack.c.bf16 %v1876_v27, %v1875_v5  ;;  %v1855_v13 = vmul.f32 %v3942_v35, %v5094_v62  ;;  %v1856_v17 = vmul.f32 %v3942_v35, %v5100_v57  ;;  %v1857_v23 = vmul.f32 %v3942_v35, %v5106_v56  ;;  %v1431_v62 = vld [vmem:[#allocation2 + $0x50] sm:$0xff] }
 0x576   : > { %3453 = vmatprep.subr.bf16.mxu1 %v1887_v29  ;;  %v1880_v60 = vpack.c.bf16 %v1852_v63, %v1851_v55  ;;  %v1881_v30 = vpack.c.bf16 %v1854_v44, %v1853_v15  ;;  %v1858_v1 = vmul.f32 %v3942_v35, %v5112_v34  ;;  %v1859_v26 = vmul.f32 %v3942_v35, %v5118_v9  ;;  %v5895_v57 = vld [vmem:[#allocation12_spill] sm:$0xff]  ;;  %v5897_v34 = vld [vmem:[#allocation10_spill] sm:$0xff]  ;;  %v5899_v9 = vld [vmem:[#allocation15_spill] sm:$0xff] }
 0x577   : > { %v1882_v19 = vpack.c.bf16 %v1856_v17, %v1855_v13  ;;  %v1860_v38 = vmul.f32 %v3942_v35, %v5124_v41  ;;  %v5896_v56 = vld [vmem:[#allocation8_spill] sm:$0xff]  ;;  %v5900_v41 = vld [vmem:[#allocation17_spill] sm:$0xff]  ;;  %v5908_v35 = vld [vmem:[#allocation18_spill] sm:$0xff] }
 0x578   : > { %v1883_v6 = vpack.c.bf16 %v1858_v1, %v1857_v23 }
 0x579   : > { %3454 = vmatpush3.bf16.msra.mxu1 %v1879_v36  ;;  %v1884_v10 = vpack.c.bf16 %v1860_v38, %v1859_v26 }
 0x57a   : > { %3455 = vmatprep.subr.bf16.mxu1 %v1888_v21 }
 0x57d   : > { %3456 = vmatpush3.bf16.msra.mxu1 %v1880_v60 }
 0x57e   : > { %3457 = vmatprep.subr.bf16.mxu1 %v1889_v18 }
 0x581   : > { %3458 = vmatpush3.bf16.msra.mxu1 %v1881_v30 }
 0x582   : > { %3459 = vmatprep.subr.bf16.mxu1 %v1890_v32 }
 0x585   : > { %3460 = vmatpush3.bf16.msra.mxu1 %v1882_v19 }
 0x586   : > { %3461 = vmatprep.subr.bf16.mxu1 %v1891_v54 }
 0x589   : > { %3462 = vmatpush3.bf16.msra.mxu1 %v1883_v6 }
 0x58a   : > { %3463 = vmatprep.subr.bf16.mxu1 %v1892_v22 }
 0x58d   : > { %3464 = vmatpush3.bf16.msra.mxu1 %v1884_v10 }
 0x58e   : > { %3641 = vmatprep.subr.bf16.mxu1 %v5895_v57 }
 0x590   : > { %1926 = vmatmul.mubr.bf16.vlgmr.msra.gmra.mrb[32].mxu1 %v1431_v62 }
 0x591   : > { %3642 = vmatpush3.bf16.msra.mxu1 %v5895_v57  ;;  %3643 = vmatprep.mubr.msk.bf16.mxu1 %vm957_vm2, %v5896_v56 }
 0x598   : > { %3644 = vmatmul.mubr.msk.bf16.vlgmr.msra.gmra.mrb[36].mxu1 %vm957_vm2, %v5897_v34 }
 0x599   : > { %3647 = vmatprep.mubr.msk.bf16.mxu1 %vm957_vm2, %v5898_v37 }
 0x5a0   : > { %3648 = vmatmul.mubr.msk.bf16.gmra.mrb[40].mxu1 %vm957_vm2, %v5899_v9 }
 0x5a1   : > { %3651 = vmatprep.mubr.msk.bf16.mxu1 %vm957_vm2, %v5900_v41 }
 0x5a8   : > { %3652 = vmatmul.mubr.msk.bf16.gmra.mrb[44].mxu1 %vm957_vm2, %v5901_v28 }
 0x5a9   : > { %3655 = vmatprep.mubr.msk.bf16.mxu1 %vm957_vm2, %v5902_v33 }
 0x5b0   : > { %3656 = vmatmul.mubr.msk.bf16.gmra.mrb[48].mxu1 %vm957_vm2, %v5903_v20 }
 0x5b1   : > { %3659 = vmatprep.mubr.msk.bf16.mxu1 %vm957_vm2, %v5904_v2 }
 0x5b8   : > { %3660 = vmatmul.mubr.msk.bf16.gmra.mrb[52].mxu1 %vm957_vm2, %v5905_v52 }
 0x5b9   : > { %3663 = vmatprep.mubr.msk.bf16.mxu1 %vm957_vm2, %v5906_v45 }
 0x5c0   : > { %3664 = vmatmul.mubr.msk.bf16.gmra.mrb[56].mxu1 %vm957_vm2, %v5907_v49 }
 0x5c1   : > { %3667 = vmatprep.mubr.msk.bf16.mxu1 %vm957_vm2, %v5908_v35 }
 0x5c8   : > { %3668 = vmatmul.mubr.msk.bf16.gmra.mrb[60].mxu1 %vm957_vm2, %v5909_v16 }
 0x5c9   : > { %3671 = vmatprep.mubr.msk.bf16.mxu1 %vm957_vm2, %v5910_v40 }
 0x5d0   : > { %3672 = vmatmul.mubr.msk.bf16.gmra.mrb[64].mxu1 %vm957_vm2, %v5911_v31 }
 0x663   : > { %v3465_v14 = vpop.f32.mrb[32].mxu1 }
 0x664   : > { %v3466_v25 = vpop.f32.mrb[33].mxu1 }
 0x665   : > { %v3467_v53 = vadd.f32 %v3466_v25, %v3465_v14  ;;  %v3468_v51 = vpop.f32.mrb[34].mxu1 }
 0x666   : > { %v3469_v59 = vpop.f32.mrb[35].mxu1 }
 0x667   : > { %v3470_v46 = vadd.f32 %v3469_v59, %v3468_v51 }
 0x669   : > { %v5207_v39 = vpack.c.bf16 %v3470_v46, %v3467_v53 }
 0x66b   : > { %v5209_v42 = vpop.f32.mrb[36].mxu1 }
 0x66c   : > { %v5211_v50 = vpop.f32.mrb[37].mxu1 }
 0x66d   : > { %v5213_v12 = vpop.f32.mrb[38].mxu1 }
 0x66e   : > { %v5215_v29 = vpop.f32.mrb[39].mxu1 }
 0x673   : > { %v5217_v47 = vpop.f32.mrb[40].mxu1 }
 0x674   : > { %v2183_v58 = vmax.f32 %v5209_v42, %v5217_v47  ;;  %v5221_v4 = vpop.f32.mrb[41].mxu1 }
 0x675   : > { %v2181_v8 = vmax.f32 %v5211_v50, %v5221_v4  ;;  %v5225_v48 = vpop.f32.mrb[42].mxu1 }
 0x676   : > { %v2184_v21 = vmax.f32 %v5213_v12, %v5225_v48  ;;  %v5229_v11 = vpop.f32.mrb[43].mxu1 }
 0x677   : > { %v2182_v7 = vmax.f32 %v5215_v29, %v5229_v11 }
 0x67b   : > { %v5233_v61 = vpop.f32.mrb[44].mxu1 }
 0x67c   : > { %v2187_v18 = vmax.f32 %v2183_v58, %v5233_v61  ;;  %v5236_v43 = vpop.f32.mrb[45].mxu1 }
 0x67d   : > { %v2185_v24 = vmax.f32 %v2181_v8, %v5236_v43  ;;  %v5239_v3 = vpop.f32.mrb[46].mxu1 }
 0x67e   : > { %v2188_v32 = vmax.f32 %v2184_v21, %v5239_v3  ;;  %v5242_v5 = vpop.f32.mrb[47].mxu1 }
 0x67f   : > { %v2186_v54 = vmax.f32 %v2182_v7, %v5242_v5 }
 0x683   : > { %v5245_v27 = vpop.f32.mrb[48].mxu1 }
 0x684   : > { %v2191_v36 = vmax.f32 %v2187_v18, %v5245_v27  ;;  %v5248_v55 = vpop.f32.mrb[49].mxu1 }
 0x685   : > { %v2189_v63 = vmax.f32 %v2185_v24, %v5248_v55  ;;  %v5251_v22 = vpop.f32.mrb[50].mxu1 }
 0x686   : > { %v2192_v60 = vmax.f32 %v2188_v32, %v5251_v22  ;;  %v5254_v15 = vpop.f32.mrb[51].mxu1 }
 0x687   : > { %v2190_v44 = vmax.f32 %v2186_v54, %v5254_v15 }
 0x68b   : > { %v5257_v30 = vpop.f32.mrb[52].mxu1 }
 0x68c   : > { %v2195_v13 = vmax.f32 %v2191_v36, %v5257_v30  ;;  %v5260_v17 = vpop.f32.mrb[53].mxu1 }
 0x68d   : > { %v2193_v19 = vmax.f32 %v2189_v63, %v5260_v17  ;;  %v5263_v23 = vpop.f32.mrb[54].mxu1 }
 0x68e   : > { %v2196_v1 = vmax.f32 %v2192_v60, %v5263_v23  ;;  %v5266_v6 = vpop.f32.mrb[55].mxu1 }
 0x68f   : > { %v2194_v26 = vmax.f32 %v2190_v44, %v5266_v6 }
 0x693   : > { %v5269_v38 = vpop.f32.mrb[56].mxu1 }
 0x694   : > { %v2199_v10 = vmax.f32 %v2195_v13, %v5269_v38  ;;  %v5272_v62 = vpop.f32.mrb[57].mxu1 }
 0x695   : > { %v2197_v57 = vmax.f32 %v2193_v19, %v5272_v62  ;;  %v5275_v56 = vpop.f32.mrb[58].mxu1 }
 0x696   : > { %v2200_v34 = vmax.f32 %v2196_v1, %v5275_v56  ;;  %v5278_v37 = vpop.f32.mrb[59].mxu1 }
 0x697   : > { %v2198_v9 = vmax.f32 %v2194_v26, %v5278_v37 }
 0x69b   : > { %v5281_v41 = vpop.f32.mrb[60].mxu1 }
 0x69c   : > { %v2203_v28 = vmax.f32 %v2199_v10, %v5281_v41  ;;  %v5284_v33 = vpop.f32.mrb[61].mxu1 }
 0x69d   : > { %v2201_v20 = vmax.f32 %v2197_v57, %v5284_v33  ;;  %v5287_v2 = vpop.f32.mrb[62].mxu1 }
 0x69e   : > { %v2204_v52 = vmax.f32 %v2200_v34, %v5287_v2  ;;  %v5290_v45 = vpop.f32.mrb[63].mxu1 }
 0x69f   : > { %v2202_v49 = vmax.f32 %v2198_v9, %v5290_v45 }
 0x6a3   : > { %v5293_v35 = vpop.f32.mrb[64].mxu1 }
 0x6a4   : > { %v2207_v16 = vmax.f32 %v2203_v28, %v5293_v35  ;;  %v5296_v40 = vpop.f32.mrb[65].mxu1 }
 0x6a5   : > { %v2205_v31 = vmax.f32 %v2201_v20, %v5296_v40  ;;  %v5299_v14 = vpop.f32.mrb[66].mxu1 }
 0x6a6   : > { %v2208_v25 = vmax.f32 %v2204_v52, %v5299_v14  ;;  %v5302_v53 = vpop.f32.mrb[67].mxu1 }
 0x6a7   : > { %v2206_v51 = vmax.f32 %v2202_v49, %v5302_v53 }
 0x6a8   : > { %v2210_v59 = vmax.f32 %v2207_v16, %v2208_v25 }
 0x6a9   : > { %v2209_v46 = vmax.f32 %v2205_v31, %v2206_v51 }
 0x6ab   : > { %v2211_v58 = vmax.f32 %v2209_v46, %v2210_v59 }
 0x6ad   : > { %v2212_v8 = vrot.slane %v2211_v58, 4 }
 0x6af   : > { %v2213_v21 = vmax.f32 %v2211_v58, %v2212_v8  ;;  %v1939_v8 = vld [vmem:[#allocation2 + $0x68] sm:$0xff] }
 0x6b0   : > { %2432 = vmatprep.mubr.bf16.mxu0 %v1939_v8 }
 0x6b1   : > { %v2214_v7 = vrot.slane %v2213_v21, 2 }
 0x6b3   : > { %v2215_v18 = vmax.f32 %v2213_v21, %v2214_v7 }
 0x6b5   : > { %v2216_v24 = vrot.slane %v2215_v18, 1 }
 0x6b7   : > { %v5305_v32 = vmax.f32 %v2215_v18, %v2216_v24 }
 0x6b9   : > { %v2218_v54 = vsub.f32 %v5211_v50, %v5305_v32  ;;  %v2219_v36 = vsub.f32 %v5215_v29, %v5305_v32  ;;  %v2220_v63 = vsub.f32 %v5209_v42, %v5305_v32  ;;  %v2221_v60 = vsub.f32 %v5213_v12, %v5305_v32 }
 0x6ba   : > { %v2222_v44 = vsub.f32 %v5221_v4, %v5305_v32  ;;  %v2223_v13 = vsub.f32 %v5229_v11, %v5305_v32  ;;  %v2224_v19 = vsub.f32 %v5217_v47, %v5305_v32  ;;  %v2225_v50 = vsub.f32 %v5225_v48, %v5305_v32 }
 0x6bb   : > { %v2226_v29 = vsub.f32 %v5236_v43, %v5305_v32  ;;  %v2227_v42 = vsub.f32 %v5242_v5, %v5305_v32  ;;  %v2228_v12 = vsub.f32 %v5233_v61, %v5305_v32  ;;  %v2229_v4 = vsub.f32 %v5239_v3, %v5305_v32 }
 0x6bc   : > { %v2230_v11 = vsub.f32 %v5248_v55, %v5305_v32  ;;  %v2231_v47 = vsub.f32 %v5254_v15, %v5305_v32  ;;  %v2232_v48 = vsub.f32 %v5245_v27, %v5305_v32  ;;  %v2233_v43 = vsub.f32 %v5251_v22, %v5305_v32 }
 0x6bd   : > { %v2234_v5 = vsub.f32 %v5260_v17, %v5305_v32  ;;  %v2235_v61 = vsub.f32 %v5266_v6, %v5305_v32  ;;  %v2236_v3 = vsub.f32 %v5257_v30, %v5305_v32  ;;  %v2237_v55 = vsub.f32 %v5263_v23, %v5305_v32 }
 0x6be   : > { %v2238_v15 = vsub.f32 %v5272_v62, %v5305_v32  ;;  %v2239_v27 = vsub.f32 %v5278_v37, %v5305_v32  ;;  %v2240_v1 = vsub.f32 %v5269_v38, %v5305_v32  ;;  %v2241_v26 = vsub.f32 %v5275_v56, %v5305_v32 }
 0x6bf   : > { %v2242_v10 = vsub.f32 %v5284_v33, %v5305_v32  ;;  %v2243_v57 = vsub.f32 %v5290_v45, %v5305_v32  ;;  %v2244_v34 = vsub.f32 %v5281_v41, %v5305_v32  ;;  %v2245_v9 = vsub.f32 %v5287_v2, %v5305_v32 }
 0x6c0   : > { %v2246_v28 = vsub.f32 %v5296_v40, %v5305_v32  ;;  %v2247_v20 = vsub.f32 %v5302_v53, %v5305_v32  ;;  %v2248_v52 = vsub.f32 %v5293_v35, %v5305_v32  ;;  %v2249_v49 = vsub.f32 %v5299_v14, %v5305_v32 }
 0x6c1   : > { %v2250_v16 = vmul.f32 1.442695, %v2218_v54  ;;  %v2252_v31 = vmul.f32 1.442695, %v2219_v36  ;;  %v2254_v25 = vmul.f32 1.442695, %v2220_v63 }
 0x6c2   : > { %v2256_v51 = vmul.f32 1.442695, %v2221_v60  ;;  %v2258_v59 = vmul.f32 1.442695, %v2222_v44  ;;  %v2260_v46 = vmul.f32 1.442695, %v2223_v13 }
 0x6c3   : > { %3943 = vpow2.f32 %v2250_v16  ;;  %v2262_v58 = vmul.f32 1.442695, %v2224_v19  ;;  %v2264_v21 = vmul.f32 1.442695, %v2225_v50  ;;  %v2266_v24 = vmul.f32 1.442695, %v2226_v29 }
 0x6c4   : > { %3945 = vpow2.f32 %v2252_v31  ;;  %v2268_v63 = vmul.f32 1.442695, %v2227_v42  ;;  %v2270_v13 = vmul.f32 1.442695, %v2228_v12  ;;  %v2272_v16 = vmul.f32 1.442695, %v2229_v4 }
 0x6c5   : > { %3947 = vpow2.f32 %v2254_v25  ;;  %v2274_v25 = vmul.f32 1.442695, %v2230_v11  ;;  %v2280_v11 = vmul.f32 1.442695, %v2233_v43  ;;  %v2300_v38 = vmul.f32 1.442695, %v2243_v57 }
 0x6c6   : > { %3949 = vpow2.f32 %v2256_v51  ;;  %v2302_v56 = vmul.f32 1.442695, %v2244_v34  ;;  %v2304_v33 = vmul.f32 1.442695, %v2245_v9  ;;  %v2306_v45 = vmul.f32 1.442695, %v2246_v28 }
 0x6c7   : > { %3951 = vpow2.f32 %v2258_v59  ;;  %v2276_v59 = vmul.f32 1.442695, %v2231_v47  ;;  %v2282_v47 = vmul.f32 1.442695, %v2234_v5  ;;  %v2308_v41 = vmul.f32 1.442695, %v2247_v20 }
 0x6c8   : > { %3953 = vpow2.f32 %v2260_v46  ;;  %v2310_v2 = vmul.f32 1.442695, %v2248_v52  ;;  %v2312_v40 = vmul.f32 1.442695, %v2249_v49 }
 0x6c9   : > { %3955 = vpow2.f32 %v2262_v58  ;;  %v2278_v58 = vmul.f32 1.442695, %v2232_v48 }
 0x6ca   : > { %3957 = vpow2.f32 %v2264_v21 }
 0x6cb   : > { %3959 = vpow2.f32 %v2266_v24 }
 0x6cc   : > { %3961 = vpow2.f32 %v2268_v63  ;;  %v2284_v63 = vmul.f32 1.442695, %v2235_v61 }
 0x6cd   : > { %v5371_v7 = vpop.eup %3943  ;;  %3963 = vpow2.f32 %v2270_v13  ;;  %v2288_v13 = vmul.f32 1.442695, %v2237_v55 }
 0x6ce   : > { %v5373_v18 = vpop.eup %3945  ;;  %3965 = vpow2.f32 %v2272_v16  ;;  %v2292_v16 = vmul.f32 1.442695, %v2239_v27  ;;  %v2298_v27 = vmul.f32 1.442695, %v2242_v10 }
 0x6cf   : > { %v2314_v54 = vadd.f32 %v5373_v18, %v5371_v7  ;;  %v5377_v36 = vpop.eup %3947  ;;  %3967 = vpow2.f32 %v2274_v25  ;;  %v2296_v25 = vmul.f32 1.442695, %v2241_v26 }
 0x6d0   : > { %v5380_v44 = vpop.eup %3949  ;;  %3969 = vpow2.f32 %v2276_v59 }
 0x6d1   : > { %v2315_v60 = vadd.f32 %v5377_v36, %v2314_v54  ;;  %v5383_v50 = vpop.eup %3951  ;;  %3971 = vpow2.f32 %v2278_v58 }
 0x6d2   : > { %v5386_v31 = vpop.eup %3953  ;;  %3973 = vpow2.f32 %v2280_v11 }
 0x6d3   : > { %v2316_v19 = vadd.f32 %v5380_v44, %v2315_v60  ;;  %v5389_v51 = vpop.eup %3955  ;;  %3975 = vpow2.f32 %v2282_v47  ;;  %v2286_v60 = vmul.f32 1.442695, %v2236_v3 }
 0x6d4   : > { %v5392_v46 = vpop.eup %3957  ;;  %3977 = vpow2.f32 %v2284_v63 }
 0x6d5   : > { %v2317_v29 = vadd.f32 %v5383_v50, %v2316_v19  ;;  %v5395_v8 = vpop.eup %3959  ;;  %3979 = vpow2.f32 %v2286_v60  ;;  %v2290_v19 = vmul.f32 1.442695, %v2238_v15 }
 0x6d6   : > { %v5401_v24 = vpop.eup %3961  ;;  %3981 = vpow2.f32 %v2288_v13 }
 0x6d7   : > { %v2318_v42 = vadd.f32 %v5386_v31, %v2317_v29  ;;  %v5407_v54 = vpop.eup %3963  ;;  %3983 = vpow2.f32 %v2290_v19  ;;  %v2294_v29 = vmul.f32 1.442695, %v2240_v1 }
 0x6d8   : > { %v5413_v43 = vpop.eup %3965  ;;  %3985 = vpow2.f32 %v2292_v16 }
 0x6d9   : > { %v2319_v12 = vadd.f32 %v5389_v51, %v2318_v42  ;;  %v5419_v5 = vpop.eup %3967  ;;  %3987 = vpow2.f32 %v2294_v29 }
 0x6da   : > { %v5425_v61 = vpop.eup %3969  ;;  %3989 = vpow2.f32 %v2296_v25 }
 0x6db   : > { %v2320_v4 = vadd.f32 %v5392_v46, %v2319_v12  ;;  %v5431_v3 = vpop.eup %3971  ;;  %3991 = vpow2.f32 %v2298_v27 }
 0x6dc   : > { %v5437_v55 = vpop.eup %3973  ;;  %3993 = vpow2.f32 %v2300_v38 }
 0x6dd   : > { %v2321_v21 = vadd.f32 %v5395_v8, %v2320_v4  ;;  %v3976_v15 = vpop.eup %3975  ;;  %3995 = vpow2.f32 %v2302_v56 }
 0x6de   : > { %v3978_v37 = vpop.eup %3977  ;;  %3997 = vpow2.f32 %v2304_v33 }
 0x6df   : > { %v2322_v48 = vadd.f32 %v5401_v24, %v2321_v21  ;;  %v3980_v12 = vpop.eup %3979  ;;  %3999 = vpow2.f32 %v2306_v45 }
 0x6e0   : > { %v3982_v58 = vpop.eup %3981  ;;  %4001 = vpow2.f32 %v2308_v41 }
 0x6e1   : > { %v2323_v22 = vadd.f32 %v5407_v54, %v2322_v48  ;;  %v3984_v4 = vpop.eup %3983  ;;  %4003 = vpow2.f32 %v2310_v2 }
 0x6e2   : > { %v3986_v11 = vpop.eup %3985  ;;  %4005 = vpow2.f32 %v2312_v40 }
 0x6e3   : > { %v2324_v17 = vadd.f32 %v5413_v43, %v2323_v22  ;;  %v3988_v21 = vpop.eup %3987 }
 0x6e4   : > { %v3990_v47 = vpop.eup %3989 }
 0x6e5   : > { %v2325_v6 = vadd.f32 %v5419_v5, %v2324_v17  ;;  %v3992_v48 = vpop.eup %3991 }
 0x6e6   : > { %v3994_v63 = vpop.eup %3993 }
 0x6e7   : > { %v2326_v30 = vadd.f32 %v5425_v61, %v2325_v6  ;;  %v3996_v53 = vpop.eup %3995 }
 0x6e8   : > { %v3998_v60 = vpop.eup %3997 }
 0x6e9   : > { %v2327_v23 = vadd.f32 %v5431_v3, %v2326_v30  ;;  %v4000_v13 = vpop.eup %3999 }
 0x6ea   : > { %v4002_v35 = vpop.eup %4001 }
 0x6eb   : > { %v2328_v62 = vadd.f32 %v5437_v55, %v2327_v23  ;;  %v4004_v19 = vpop.eup %4003 }
 0x6ec   : > { %v4006_v16 = vpop.eup %4005 }
 0x6ed   : > { %v2329_v42 = vadd.f32 %v3976_v15, %v2328_v62 }
 0x6ef   : > { %v2330_v59 = vadd.f32 %v3978_v37, %v2329_v42 }
 0x6f1   : > { %v2331_v1 = vadd.f32 %v3980_v12, %v2330_v59 }
 0x6f3   : > { %v2332_v26 = vadd.f32 %v3982_v58, %v2331_v1 }
 0x6f5   : > { %v2333_v10 = vadd.f32 %v3984_v4, %v2332_v26 }
 0x6f7   : > { %v2334_v57 = vadd.f32 %v3986_v11, %v2333_v10 }
 0x6f9   : > { %v2335_v34 = vadd.f32 %v3988_v21, %v2334_v57 }
 0x6fb   : > { %v2336_v9 = vadd.f32 %v3990_v47, %v2335_v34 }
 0x6fd   : > { %v2337_v28 = vadd.f32 %v3992_v48, %v2336_v9 }
 0x6ff   : > { %v2338_v22 = vadd.f32 %v3994_v63, %v2337_v28 }
 0x701   : > { %v2339_v20 = vadd.f32 %v3996_v53, %v2338_v22 }
 0x703   : > { %v2340_v17 = vadd.f32 %v3998_v60, %v2339_v20 }
 0x705   : > { %v2341_v6 = vadd.f32 %v4000_v13, %v2340_v17 }
 0x707   : > { %v2342_v52 = vadd.f32 %v4002_v35, %v2341_v6 }
 0x709   : > { %v2343_v30 = vadd.f32 %v4004_v19, %v2342_v52 }
 0x70b   : > { %v2344_v23 = vadd.f32 %v4006_v16, %v2343_v30  ;;  %v2455_v30 = vpop.trf.xlu0 }
 0x70d   : > { %v2345_v29 = vrot.slane %v2344_v23, 4 }
 0x70f   : > { %v2346_v14 = vadd.f32 %v2345_v29, %v2344_v23  ;;  %v2456_v23 = vpop.trf.xlu0  ;;  %v5912_v29 = vld [vmem:[#allocation25_spill] sm:$0xff] }
 0x711   : > { %v2347_v32 = vrot.slane %v2346_v14, 2 }
 0x713   : > { %v2348_v49 = vadd.f32 %v2347_v32, %v2346_v14  ;;  %v2457_v14 = vpop.trf.xlu0 }
 0x715   : > { %v2349_v62 = vrot.slane %v2348_v49, 1 }
 0x717   : > { %v2350_v25 = vadd.f32 %v2349_v62, %v2348_v49 }
 0x719   : > { %4007 = vrcp.f32 %v2350_v25 }
 0x723   : > { %v4008_v42 = vpop.eup %4007 }
 0x724   : > { %v2368_v27 = vmul.f32 %v4008_v42, %v3976_v15  ;;  %v2369_v59 = vmul.f32 %v4008_v42, %v3978_v37  ;;  %v2352_v38 = vmul.f32 %v4008_v42, %v5371_v7  ;;  %v2353_v1 = vmul.f32 %v4008_v42, %v5373_v18 }
 0x725   : > { %v2370_v56 = vmul.f32 %v4008_v42, %v3980_v12  ;;  %v2371_v26 = vmul.f32 %v4008_v42, %v3982_v58  ;;  %v2354_v33 = vmul.f32 %v4008_v42, %v5377_v36  ;;  %v2355_v10 = vmul.f32 %v4008_v42, %v5380_v44 }
 0x726   : > { %v2392_v45 = vpack.c.bf16 %v2369_v59, %v2368_v27  ;;  %v2384_v57 = vpack.c.bf16 %v2353_v1, %v2352_v38  ;;  %v2372_v41 = vmul.f32 %v4008_v42, %v3984_v4  ;;  %v2373_v34 = vmul.f32 %v4008_v42, %v3986_v11 }
 0x727   : > { %v2393_v2 = vpack.c.bf16 %v2371_v26, %v2370_v56  ;;  %v2374_v40 = vmul.f32 %v4008_v42, %v3988_v21  ;;  %v2375_v15 = vmul.f32 %v4008_v42, %v3990_v47  ;;  %v2376_v37 = vmul.f32 %v4008_v42, %v3992_v48 }
 0x728   : > { %3488 = vmatprep.subr.bf16.mxu0 %v2392_v45  ;;  %v2394_v9 = vpack.c.bf16 %v2373_v34, %v2372_v41  ;;  %v2377_v7 = vmul.f32 %v4008_v42, %v3994_v63  ;;  %v2385_v18 = vpack.c.bf16 %v2355_v10, %v2354_v33  ;;  %v2378_v58 = vmul.f32 %v4008_v42, %v3996_v53 }
 0x729   : > { %3489 = vmatpush3.bf16.msra.mxu0 %v2384_v57  ;;  %v2395_v12 = vpack.c.bf16 %v2375_v15, %v2374_v40  ;;  %v2356_v36 = vmul.f32 %v4008_v42, %v5383_v50  ;;  %v2357_v44 = vmul.f32 %v4008_v42, %v5386_v31  ;;  %v2379_v22 = vmul.f32 %v4008_v42, %v3998_v60 }
 0x72a   : > { %3490 = vmatprep.subr.bf16.mxu0 %v2393_v2  ;;  %v2396_v28 = vpack.c.bf16 %v2377_v7, %v2376_v37  ;;  %v2380_v4 = vmul.f32 %v4008_v42, %v4000_v13  ;;  %v2381_v11 = vmul.f32 %v4008_v42, %v4002_v35  ;;  %v2382_v17 = vmul.f32 %v4008_v42, %v4004_v19 }
 0x72b   : > { %v2397_v20 = vpack.c.bf16 %v2379_v22, %v2378_v58  ;;  %v2383_v47 = vmul.f32 %v4008_v42, %v4006_v16  ;;  %v2386_v48 = vpack.c.bf16 %v2357_v44, %v2356_v36  ;;  %v2358_v63 = vmul.f32 %v4008_v42, %v5389_v51 }
 0x72c   : > { %v2398_v21 = vpack.c.bf16 %v2381_v11, %v2380_v4  ;;  %v2359_v6 = vmul.f32 %v4008_v42, %v5392_v46  ;;  %v2360_v31 = vmul.f32 %v4008_v42, %v5395_v8  ;;  %v2361_v60 = vmul.f32 %v4008_v42, %v5401_v24 }
 0x72d   : > { %3491 = vmatpush3.bf16.msra.mxu0 %v2385_v18  ;;  %v2399_v53 = vpack.c.bf16 %v2383_v47, %v2382_v17  ;;  %v2362_v35 = vmul.f32 %v4008_v42, %v5407_v54  ;;  %v2363_v52 = vmul.f32 %v4008_v42, %v5413_v43  ;;  %v2364_v46 = vmul.f32 %v4008_v42, %v5419_v5  ;;  %v1938_v43 = vld [vmem:[#allocation2 + $0x60] sm:$0xff]  ;;  %v2458_v5 = vpop.trf.xlu0 }
 0x72e   : > { %3492 = vmatprep.subr.bf16.mxu0 %v2394_v9  ;;  %v2387_v50 = vpack.c.bf16 %v2359_v6, %v2358_v63  ;;  %v2388_v13 = vpack.c.bf16 %v2361_v60, %v2360_v31  ;;  %v2365_v19 = vmul.f32 %v4008_v42, %v5425_v61  ;;  %v2366_v24 = vmul.f32 %v4008_v42, %v5431_v3 }
 0x72f   : > { %v2389_v51 = vpack.c.bf16 %v2363_v52, %v2362_v35  ;;  %v2367_v16 = vmul.f32 %v4008_v42, %v5437_v55  ;;  %v2471_v55 = vpop.trf.xlu1 }
 0x730   : > { %v2390_v8 = vpack.c.bf16 %v2365_v19, %v2364_v46 }
 0x731   : > { %3493 = vmatpush3.bf16.msra.mxu0 %v2386_v48  ;;  %v2391_v54 = vpack.c.bf16 %v2367_v16, %v2366_v24  ;;  %v2459_v61 = vpop.trf.xlu0 }
 0x732   : > { %3494 = vmatprep.subr.bf16.mxu0 %v2395_v12 }
 0x733   : > { %v2472_v49 = vpop.trf.xlu1 }
 0x735   : > { %3495 = vmatpush3.bf16.msra.mxu0 %v2387_v50  ;;  %v2460_v3 = vpop.trf.xlu0 }
 0x736   : > { %3496 = vmatprep.subr.bf16.mxu0 %v2396_v28 }
 0x737   : > { %v2473_v25 = vpop.trf.xlu1 }
 0x739   : > { %3497 = vmatpush3.bf16.msra.mxu0 %v2388_v13  ;;  %v2461_v32 = vpop.trf.xlu0 }
 0x73a   : > { %3498 = vmatprep.subr.bf16.mxu0 %v2397_v20 }
 0x73b   : > { %v2474_v42 = vpop.trf.xlu1 }
 0x73d   : > { %3499 = vmatpush3.bf16.msra.mxu0 %v2389_v51  ;;  %v2462_v62 = vpop.trf.xlu0 }
 0x73e   : > { %3500 = vmatprep.subr.bf16.mxu0 %v2398_v21 }
 0x73f   : > { %v2475_v27 = vpop.trf.xlu1 }
 0x741   : > { %3501 = vmatpush3.bf16.msra.mxu0 %v2390_v8 }
 0x742   : > { %3502 = vmatprep.subr.bf16.mxu0 %v2399_v53 }
 0x743   : > { %v2476_v59 = vpop.trf.xlu1 }
 0x745   : > { %3503 = vmatpush3.bf16.msra.mxu0 %v2391_v54 }
 0x746   : > { %3675 = vmatprep.subr.bf16.mxu0 %v5912_v29 }
 0x747   : > { %v2477_v38 = vpop.trf.xlu1 }
 0x748   : > { %2433 = vmatmul.mubr.bf16.vlgmr.msra.gmra.mrb[44].mxu0 %v1938_v43 }
 0x749   : > { %3676 = vmatpush3.bf16.msra.mxu0 %v5912_v29  ;;  %3677 = vmatprep.mubr.msk.bf16.mxu0 %vm957_vm2, %v2455_v30 }
 0x74b   : > { %v2478_v1 = vpop.trf.xlu1 }
 0x750   : > { %3678 = vmatmul.mubr.msk.bf16.vlgmr.msra.gmra.mrb[48].mxu0 %vm957_vm2, %v2456_v23 }
 0x751   : > { %3681 = vmatprep.mubr.msk.bf16.mxu0 %vm957_vm2, %v2457_v14 }
 0x758   : > { %3682 = vmatmul.mubr.msk.bf16.gmra.mrb[52].mxu0 %vm957_vm2, %v2458_v5 }
 0x759   : > { %3685 = vmatprep.mubr.msk.bf16.mxu0 %vm957_vm2, %v2459_v61 }
 0x760   : > { %3686 = vmatmul.mubr.msk.bf16.gmra.mrb[56].mxu0 %vm957_vm2, %v2460_v3 }
 0x761   : > { %3689 = vmatprep.mubr.msk.bf16.mxu0 %vm957_vm2, %v2461_v32 }
 0x768   : > { %3690 = vmatmul.mubr.msk.bf16.gmra.mrb[60].mxu0 %vm957_vm2, %v2462_v62 }
 0x769   : > { %3693 = vmatprep.mubr.msk.bf16.mxu0 %vm957_vm2, %v2471_v55 }
 0x770   : > { %3694 = vmatmul.mubr.msk.bf16.gmra.mrb[64].mxu0 %vm957_vm2, %v2472_v49 }
 0x771   : > { %3697 = vmatprep.mubr.msk.bf16.mxu0 %vm957_vm2, %v2473_v25 }
 0x778   : > { %3698 = vmatmul.mubr.msk.bf16.gmra.mrb[68].mxu0 %vm957_vm2, %v2474_v42 }
 0x779   : > { %3701 = vmatprep.mubr.msk.bf16.mxu0 %vm957_vm2, %v2475_v27 }
 0x780   : > { %3702 = vmatmul.mubr.msk.bf16.gmra.mrb[72].mxu0 %vm957_vm2, %v2476_v59 }
 0x781   : > { %3705 = vmatprep.mubr.msk.bf16.mxu0 %vm957_vm2, %v2477_v38 }
 0x788   : > { %3706 = vmatmul.mubr.msk.bf16.gmra.mrb[76].mxu0 %vm957_vm2, %v2478_v1 }
 0x81b   : > { %v3504_v56 = vpop.f32.mrb[44].mxu0 }
 0x81c   : > { %v3505_v26 = vpop.f32.mrb[45].mxu0 }
 0x81d   : > { %v3506_v33 = vadd.f32 %v3505_v26, %v3504_v56  ;;  %v3507_v10 = vpop.f32.mrb[46].mxu0 }
 0x81e   : > { %v3508_v45 = vpop.f32.mrb[47].mxu0 }
 0x81f   : > { %v3509_v57 = vadd.f32 %v3508_v45, %v3507_v10 }
 0x821   : > { %v5504_v41 = vpack.c.bf16 %v3509_v57, %v3506_v33 }
 0x823   : > { %v5506_v34 = vpop.f32.mrb[48].mxu0 }
 0x824   : > { %v5508_v2 = vpop.f32.mrb[49].mxu0 }
 0x825   : > { %v5510_v9 = vpop.f32.mrb[50].mxu0 }
 0x826   : > { %v5512_v40 = vpop.f32.mrb[51].mxu0 }
 0x82b   : > { %v5514_v15 = vpop.f32.mrb[52].mxu0 }
 0x82c   : > { %v2690_v37 = vmax.f32 %v5506_v34, %v5514_v15  ;;  %v5518_v7 = vpop.f32.mrb[53].mxu0 }
 0x82d   : > { %v2688_v18 = vmax.f32 %v5508_v2, %v5518_v7  ;;  %v5522_v12 = vpop.f32.mrb[54].mxu0 }
 0x82e   : > { %v2691_v58 = vmax.f32 %v5510_v9, %v5522_v12  ;;  %v5526_v36 = vpop.f32.mrb[55].mxu0 }
 0x82f   : > { %v2689_v44 = vmax.f32 %v5512_v40, %v5526_v36 }
 0x833   : > { %v5530_v28 = vpop.f32.mrb[56].mxu0 }
 0x834   : > { %v2694_v22 = vmax.f32 %v2690_v37, %v5530_v28  ;;  %v5533_v4 = vpop.f32.mrb[57].mxu0 }
 0x835   : > { %v2692_v11 = vmax.f32 %v2688_v18, %v5533_v4  ;;  %v5536_v20 = vpop.f32.mrb[58].mxu0 }
 0x836   : > { %v2695_v17 = vmax.f32 %v2691_v58, %v5536_v20  ;;  %v5539_v21 = vpop.f32.mrb[59].mxu0 }
 0x837   : > { %v2693_v47 = vmax.f32 %v2689_v44, %v5539_v21 }
 0x83b   : > { %v5542_v48 = vpop.f32.mrb[60].mxu0 }
 0x83c   : > { %v2698_v63 = vmax.f32 %v2694_v22, %v5542_v48  ;;  %v5545_v6 = vpop.f32.mrb[61].mxu0 }
 0x83d   : > { %v2696_v53 = vmax.f32 %v2692_v11, %v5545_v6  ;;  %v5548_v50 = vpop.f32.mrb[62].mxu0 }
 0x83e   : > { %v2699_v31 = vmax.f32 %v2695_v17, %v5548_v50  ;;  %v5551_v60 = vpop.f32.mrb[63].mxu0 }
 0x83f   : > { %v2697_v13 = vmax.f32 %v2693_v47, %v5551_v60 }
 0x843   : > { %v5554_v35 = vpop.f32.mrb[64].mxu0 }
 0x844   : > { %v2702_v52 = vmax.f32 %v2698_v63, %v5554_v35  ;;  %v5557_v51 = vpop.f32.mrb[65].mxu0 }
 0x845   : > { %v2700_v46 = vmax.f32 %v2696_v53, %v5557_v51  ;;  %v5560_v19 = vpop.f32.mrb[66].mxu0 }
 0x846   : > { %v2703_v30 = vmax.f32 %v2699_v31, %v5560_v19  ;;  %v5563_v8 = vpop.f32.mrb[67].mxu0 }
 0x847   : > { %v2701_v24 = vmax.f32 %v2697_v13, %v5563_v8 }
 0x84b   : > { %v5566_v16 = vpop.f32.mrb[68].mxu0 }
 0x84c   : > { %v2706_v23 = vmax.f32 %v2702_v52, %v5566_v16  ;;  %v5569_v54 = vpop.f32.mrb[69].mxu0 }
 0x84d   : > { %v2704_v43 = vmax.f32 %v2700_v46, %v5569_v54  ;;  %v5572_v29 = vpop.f32.mrb[70].mxu0 }
 0x84e   : > { %v2707_v14 = vmax.f32 %v2703_v30, %v5572_v29  ;;  %v5575_v5 = vpop.f32.mrb[71].mxu0 }
 0x84f   : > { %v2705_v61 = vmax.f32 %v2701_v24, %v5575_v5 }
 0x853   : > { %v5578_v3 = vpop.f32.mrb[72].mxu0 }
 0x854   : > { %v2710_v55 = vmax.f32 %v2706_v23, %v5578_v3  ;;  %v5581_v32 = vpop.f32.mrb[73].mxu0 }
 0x855   : > { %v2708_v49 = vmax.f32 %v2704_v43, %v5581_v32  ;;  %v5584_v62 = vpop.f32.mrb[74].mxu0 }
 0x856   : > { %v2711_v25 = vmax.f32 %v2707_v14, %v5584_v62  ;;  %v5587_v42 = vpop.f32.mrb[75].mxu0 }
 0x857   : > { %v2709_v27 = vmax.f32 %v2705_v61, %v5587_v42 }
 0x85b   : > { %v5590_v59 = vpop.f32.mrb[76].mxu0 }
 0x85c   : > { %v2714_v38 = vmax.f32 %v2710_v55, %v5590_v59  ;;  %v5593_v1 = vpop.f32.mrb[77].mxu0 }
 0x85d   : > { %v2712_v56 = vmax.f32 %v2708_v49, %v5593_v1  ;;  %v5596_v26 = vpop.f32.mrb[78].mxu0 }
 0x85e   : > { %v2715_v33 = vmax.f32 %v2711_v25, %v5596_v26  ;;  %v5599_v10 = vpop.f32.mrb[79].mxu0 }
 0x85f   : > { %v2713_v45 = vmax.f32 %v2709_v27, %v5599_v10 }
 0x860   : > { %v2717_v57 = vmax.f32 %v2714_v38, %v2715_v33 }
 0x861   : > { %v2716_v37 = vmax.f32 %v2712_v56, %v2713_v45 }
 0x863   : > { %v2718_v18 = vmax.f32 %v2716_v37, %v2717_v57 }
 0x865   : > { %v2719_v58 = vrot.slane %v2718_v18, 4 }
 0x867   : > { %v2720_v44 = vmax.f32 %v2718_v18, %v2719_v58 }
 0x869   : > { %v2721_v22 = vrot.slane %v2720_v44, 2 }
 0x86b   : > { %v2722_v11 = vmax.f32 %v2720_v44, %v2721_v22  ;;  %v2446_v44 = vld [vmem:[#allocation2 + $0x78] sm:$0xff] }
 0x86c   : > { %2939 = vmatprep.mubr.bf16.mxu1 %v2446_v44 }
 0x86d   : > { %v2723_v17 = vrot.slane %v2722_v11, 1 }
 0x86f   : > { %v5602_v47 = vmax.f32 %v2722_v11, %v2723_v17 }
 0x871   : > { %v2725_v63 = vsub.f32 %v5508_v2, %v5602_v47  ;;  %v2726_v53 = vsub.f32 %v5512_v40, %v5602_v47  ;;  %v2727_v31 = vsub.f32 %v5506_v34, %v5602_v47  ;;  %v2728_v13 = vsub.f32 %v5510_v9, %v5602_v47 }
 0x872   : > { %v2729_v52 = vsub.f32 %v5518_v7, %v5602_v47  ;;  %v2730_v46 = vsub.f32 %v5526_v36, %v5602_v47  ;;  %v2731_v30 = vsub.f32 %v5514_v15, %v5602_v47  ;;  %v2732_v2 = vsub.f32 %v5522_v12, %v5602_v47 }
 0x873   : > { %v2733_v40 = vsub.f32 %v5533_v4, %v5602_v47  ;;  %v2734_v34 = vsub.f32 %v5539_v21, %v5602_v47  ;;  %v2735_v9 = vsub.f32 %v5530_v28, %v5602_v47  ;;  %v2736_v7 = vsub.f32 %v5536_v20, %v5602_v47 }
 0x874   : > { %v2737_v36 = vsub.f32 %v5545_v6, %v5602_v47  ;;  %v2738_v15 = vsub.f32 %v5551_v60, %v5602_v47  ;;  %v2739_v12 = vsub.f32 %v5542_v48, %v5602_v47  ;;  %v2740_v4 = vsub.f32 %v5548_v50, %v5602_v47 }
 0x875   : > { %v2741_v21 = vsub.f32 %v5557_v51, %v5602_v47  ;;  %v2742_v28 = vsub.f32 %v5563_v8, %v5602_v47  ;;  %v2743_v20 = vsub.f32 %v5554_v35, %v5602_v47  ;;  %v2744_v6 = vsub.f32 %v5560_v19, %v5602_v47 }
 0x876   : > { %v2745_v60 = vsub.f32 %v5569_v54, %v5602_v47  ;;  %v2746_v48 = vsub.f32 %v5575_v5, %v5602_v47  ;;  %v2747_v24 = vsub.f32 %v5566_v16, %v5602_v47  ;;  %v2748_v23 = vsub.f32 %v5572_v29, %v5602_v47 }
 0x877   : > { %v2749_v43 = vsub.f32 %v5581_v32, %v5602_v47  ;;  %v2750_v14 = vsub.f32 %v5587_v42, %v5602_v47  ;;  %v2751_v61 = vsub.f32 %v5578_v3, %v5602_v47  ;;  %v2752_v55 = vsub.f32 %v5584_v62, %v5602_v47 }
 0x878   : > { %v2753_v49 = vsub.f32 %v5593_v1, %v5602_v47  ;;  %v2754_v25 = vsub.f32 %v5599_v10, %v5602_v47  ;;  %v2755_v27 = vsub.f32 %v5590_v59, %v5602_v47  ;;  %v2756_v38 = vsub.f32 %v5596_v26, %v5602_v47 }
 0x879   : > { %v2757_v56 = vmul.f32 1.442695, %v2725_v63  ;;  %v2759_v33 = vmul.f32 1.442695, %v2726_v53  ;;  %v2761_v45 = vmul.f32 1.442695, %v2727_v31 }
 0x87a   : > { %v2763_v57 = vmul.f32 1.442695, %v2728_v13  ;;  %v2765_v37 = vmul.f32 1.442695, %v2729_v52  ;;  %v2767_v18 = vmul.f32 1.442695, %v2730_v46 }
 0x87b   : > { %4009 = vpow2.f32 %v2757_v56  ;;  %v2769_v58 = vmul.f32 1.442695, %v2731_v30  ;;  %v2771_v22 = vmul.f32 1.442695, %v2732_v2  ;;  %v2773_v63 = vmul.f32 1.442695, %v2733_v40 }
 0x87c   : > { %4011 = vpow2.f32 %v2759_v33  ;;  %v2775_v13 = vmul.f32 1.442695, %v2734_v34  ;;  %v2777_v30 = vmul.f32 1.442695, %v2735_v9  ;;  %v2779_v33 = vmul.f32 1.442695, %v2736_v7 }
 0x87d   : > { %4013 = vpow2.f32 %v2761_v45  ;;  %v2785_v44 = vmul.f32 1.442695, %v2739_v12  ;;  %v2807_v16 = vmul.f32 1.442695, %v2750_v14  ;;  %v2809_v29 = vmul.f32 1.442695, %v2751_v61 }
 0x87e   : > { %4015 = vpow2.f32 %v2763_v57  ;;  %v2781_v57 = vmul.f32 1.442695, %v2737_v36  ;;  %v2787_v36 = vmul.f32 1.442695, %v2740_v4  ;;  %v2811_v32 = vmul.f32 1.442695, %v2752_v55 }
 0x87f   : > { %4017 = vpow2.f32 %v2765_v37  ;;  %v2813_v42 = vmul.f32 1.442695, %v2753_v49  ;;  %v2815_v3 = vmul.f32 1.442695, %v2754_v25  ;;  %v2817_v62 = vmul.f32 1.442695, %v2755_v27 }
 0x880   : > { %4019 = vpow2.f32 %v2767_v18  ;;  %v2783_v18 = vmul.f32 1.442695, %v2738_v15  ;;  %v2789_v15 = vmul.f32 1.442695, %v2741_v21  ;;  %v2819_v1 = vmul.f32 1.442695, %v2756_v38 }
 0x881   : > { %4021 = vpow2.f32 %v2769_v58 }
 0x882   : > { %4023 = vpow2.f32 %v2771_v22 }
 0x883   : > { %4025 = vpow2.f32 %v2773_v63 }
 0x884   : > { %4027 = vpow2.f32 %v2775_v13 }
 0x885   : > { %v5668_v11 = vpop.eup %4009  ;;  %4029 = vpow2.f32 %v2777_v30  ;;  %v2793_v30 = vmul.f32 1.442695, %v2743_v20 }
 0x886   : > { %v5670_v17 = vpop.eup %4011  ;;  %4031 = vpow2.f32 %v2779_v33  ;;  %v2797_v33 = vmul.f32 1.442695, %v2745_v60 }
 0x887   : > { %v2821_v53 = vadd.f32 %v5670_v17, %v5668_v11  ;;  %v5674_v31 = vpop.eup %4013  ;;  %4033 = vpow2.f32 %v2781_v57  ;;  %v2801_v57 = vmul.f32 1.442695, %v2747_v24 }
 0x888   : > { %v5677_v46 = vpop.eup %4015  ;;  %4035 = vpow2.f32 %v2783_v18 }
 0x889   : > { %v2822_v52 = vadd.f32 %v5674_v31, %v2821_v53  ;;  %v5680_v56 = vpop.eup %4017  ;;  %4037 = vpow2.f32 %v2785_v44 }
 0x88a   : > { %v5683_v45 = vpop.eup %4019  ;;  %4039 = vpow2.f32 %v2787_v36 }
 0x88b   : > { %v2823_v2 = vadd.f32 %v5677_v46, %v2822_v52  ;;  %v5686_v37 = vpop.eup %4021  ;;  %v2791_v52 = vmul.f32 1.442695, %v2742_v28  ;;  %4041 = vpow2.f32 %v2789_v15 }
 0x88c   : > { %v5689_v58 = vpop.eup %4023 }
 0x88d   : > { %v2824_v40 = vadd.f32 %v5680_v56, %v2823_v2  ;;  %v5692_v22 = vpop.eup %4025  ;;  %4043 = vpow2.f32 %v2791_v52  ;;  %v2795_v2 = vmul.f32 1.442695, %v2744_v6 }
 0x88e   : > { %v5698_v53 = vpop.eup %4027  ;;  %4045 = vpow2.f32 %v2793_v30 }
 0x88f   : > { %v2825_v34 = vadd.f32 %v5683_v45, %v2824_v40  ;;  %v5704_v13 = vpop.eup %4029  ;;  %4047 = vpow2.f32 %v2795_v2  ;;  %v2799_v40 = vmul.f32 1.442695, %v2746_v48  ;;  %v2805_v48 = vmul.f32 1.442695, %v2749_v43 }
 0x890   : > { %v5710_v4 = vpop.eup %4031  ;;  %4049 = vpow2.f32 %v2797_v33 }
 0x891   : > { %v2826_v9 = vadd.f32 %v5686_v37, %v2825_v34  ;;  %v5716_v21 = vpop.eup %4033  ;;  %4051 = vpow2.f32 %v2799_v40  ;;  %v2803_v34 = vmul.f32 1.442695, %v2748_v23 }
 0x892   : > { %v5722_v28 = vpop.eup %4035  ;;  %4053 = vpow2.f32 %v2801_v57 }
 0x893   : > { %v2827_v7 = vadd.f32 %v5689_v58, %v2826_v9  ;;  %v5728_v20 = vpop.eup %4037  ;;  %4055 = vpow2.f32 %v2803_v34 }
 0x894   : > { %v5734_v6 = vpop.eup %4039  ;;  %4057 = vpow2.f32 %v2805_v48 }
 0x895   : > { %v2828_v63 = vadd.f32 %v5692_v22, %v2827_v7  ;;  %v4042_v60 = vpop.eup %4041  ;;  %4059 = vpow2.f32 %v2807_v16 }
 0x896   : > { %4061 = vpow2.f32 %v2809_v29 }
 0x897   : > { %v2829_v12 = vadd.f32 %v5698_v53, %v2828_v63  ;;  %v4044_v5 = vpop.eup %4043  ;;  %4063 = vpow2.f32 %v2811_v32 }
 0x898   : > { %v4046_v44 = vpop.eup %4045  ;;  %4065 = vpow2.f32 %v2813_v42 }
 0x899   : > { %v2830_v50 = vadd.f32 %v5704_v13, %v2829_v12  ;;  %v4048_v7 = vpop.eup %4047  ;;  %4067 = vpow2.f32 %v2815_v3 }
 0x89a   : > { %v4050_v36 = vpop.eup %4049  ;;  %4069 = vpow2.f32 %v2817_v62 }
 0x89b   : > { %v2831_v51 = vadd.f32 %v5710_v4, %v2830_v50  ;;  %v4052_v63 = vpop.eup %4051  ;;  %4071 = vpow2.f32 %v2819_v1 }
 0x89c   : > { %v4054_v15 = vpop.eup %4053 }
 0x89d   : > { %v2832_v8 = vadd.f32 %v5716_v21, %v2831_v51  ;;  %v4056_v12 = vpop.eup %4055 }
 0x89e   : > { %v4058_v52 = vpop.eup %4057 }
 0x89f   : > { %v2833_v35 = vadd.f32 %v5722_v28, %v2832_v8  ;;  %v4060_v50 = vpop.eup %4059 }
 0x8a0   : > { %v4062_v10 = vpop.eup %4061 }
 0x8a1   : > { %v2834_v19 = vadd.f32 %v5728_v20, %v2833_v35  ;;  %v4064_v51 = vpop.eup %4063 }
 0x8a2   : > { %v4066_v8 = vpop.eup %4065 }
 0x8a3   : > { %v2835_v54 = vadd.f32 %v5734_v6, %v2834_v19  ;;  %v4068_v59 = vpop.eup %4067 }
 0x8a4   : > { %v4070_v35 = vpop.eup %4069 }
 0x8a5   : > { %v2836_v18 = vadd.f32 %v4042_v60, %v2835_v54  ;;  %v4072_v19 = vpop.eup %4071 }
 0x8a7   : > { %v2837_v9 = vadd.f32 %v4044_v5, %v2836_v18 }
 0x8a9   : > { %v2838_v24 = vadd.f32 %v4046_v44, %v2837_v9 }
 0x8ab   : > { %v2839_v23 = vadd.f32 %v4048_v7, %v2838_v24 }
 0x8ad   : > { %v2840_v43 = vadd.f32 %v4050_v36, %v2839_v23 }
 0x8af   : > { %v2841_v14 = vadd.f32 %v4052_v63, %v2840_v43 }
 0x8b1   : > { %v2842_v61 = vadd.f32 %v4054_v15, %v2841_v14 }
 0x8b3   : > { %v2843_v55 = vadd.f32 %v4056_v12, %v2842_v61 }
 0x8b5   : > { %v2844_v49 = vadd.f32 %v4058_v52, %v2843_v55 }
 0x8b7   : > { %v2845_v30 = vadd.f32 %v4060_v50, %v2844_v49 }
 0x8b9   : > { %v2846_v25 = vadd.f32 %v4062_v10, %v2845_v30 }
 0x8bb   : > { %v2847_v2 = vadd.f32 %v4064_v51, %v2846_v25 }
 0x8bd   : > { %v2848_v33 = vadd.f32 %v4066_v8, %v2847_v2 }
 0x8bf   : > { %v2849_v27 = vadd.f32 %v4068_v59, %v2848_v33 }
 0x8c1   : > { %v2850_v40 = vadd.f32 %v4070_v35, %v2849_v27 }
 0x8c3   : > { %v2851_v57 = vadd.f32 %v4072_v19, %v2850_v40 }
 0x8c5   : > { %v2852_v54 = vrot.slane %v2851_v57, 4 }
 0x8c7   : > { %v2853_v26 = vadd.f32 %v2852_v54, %v2851_v57 }
 0x8c9   : > { %v2854_v47 = vrot.slane %v2853_v26, 2 }
 0x8cb   : > { %v2855_v38 = vadd.f32 %v2854_v47, %v2853_v26  ;;  %v3810_v47 = vld [vmem:[%s5855_s6 + $0x18] sm:$0xff]  }
 0x8cd   : > { %v2856_v34 = vrot.slane %v2855_v38, 1 }
 0x8cf   : > { %v2857_v18 = vadd.f32 %v2856_v34, %v2855_v38  ;;  %v2973_v38 = vpop.permute.xlu0 %2972 }
 0x8d1   : > { %4073 = vrcp.f32 %v2857_v18 }
 0x8d3   : > { %v2983_v34 = vpop.permute.xlu0 %2982 }
 0x8d7   : > { %v2988_v18 = vpop.permute.xlu0 %2987 }
 0x8db   : > { %v4074_v48 = vpop.eup %4073 }
 0x8dc   : > { %v2875_v9 = vmul.f32 %v4074_v48, %v4042_v60  ;;  %v2876_v16 = vmul.f32 %v4074_v48, %v4044_v5  ;;  %v2859_v24 = vmul.f32 %v4074_v48, %v5668_v11  ;;  %v2860_v29 = vmul.f32 %v4074_v48, %v5670_v17 }
 0x8dd   : > { %v2877_v23 = vmul.f32 %v4074_v48, %v4046_v44  ;;  %v2878_v32 = vmul.f32 %v4074_v48, %v4048_v7  ;;  %v2861_v43 = vmul.f32 %v4074_v48, %v5674_v31  ;;  %v2862_v42 = vmul.f32 %v4074_v48, %v5677_v46 }
 0x8de   : > { %v2899_v14 = vpack.c.bf16 %v2876_v16, %v2875_v9  ;;  %v2891_v3 = vpack.c.bf16 %v2860_v29, %v2859_v24  ;;  %v2879_v61 = vmul.f32 %v4074_v48, %v4050_v36  ;;  %v2880_v62 = vmul.f32 %v4074_v48, %v4052_v63  ;;  %v2993_v29 = vpop.permute.xlu0 %2992 }
 0x8df   : > { %v2900_v55 = vpack.c.bf16 %v2878_v32, %v2877_v23  ;;  %v2881_v49 = vmul.f32 %v4074_v48, %v4054_v15  ;;  %v2882_v60 = vmul.f32 %v4074_v48, %v4056_v12  ;;  %v2883_v5 = vmul.f32 %v4074_v48, %v4058_v52 }
 0x8e0   : > { %3527 = vmatprep.subr.bf16.mxu1 %v2899_v14  ;;  %v2901_v1 = vpack.c.bf16 %v2880_v62, %v2879_v61  ;;  %v2884_v11 = vmul.f32 %v4074_v48, %v4060_v50  ;;  %v2892_v17 = vpack.c.bf16 %v2862_v42, %v2861_v43  ;;  %v2885_v7 = vmul.f32 %v4074_v48, %v4062_v10 }
 0x8e1   : > { %3528 = vmatpush3.bf16.msra.mxu1 %v2891_v3  ;;  %v2902_v44 = vpack.c.bf16 %v2882_v60, %v2881_v49  ;;  %v2863_v31 = vmul.f32 %v4074_v48, %v5680_v56  ;;  %v2864_v46 = vmul.f32 %v4074_v48, %v5683_v45  ;;  %v2886_v25 = vmul.f32 %v4074_v48, %v4064_v51 }
 0x8e2   : > { %3529 = vmatprep.subr.bf16.mxu1 %v2900_v55  ;;  %v2903_v30 = vpack.c.bf16 %v2884_v11, %v2883_v5  ;;  %v2887_v36 = vmul.f32 %v4074_v48, %v4066_v8  ;;  %v2888_v63 = vmul.f32 %v4074_v48, %v4068_v59  ;;  %v2889_v33 = vmul.f32 %v4074_v48, %v4070_v35  ;;  %v3003_v61 = vpop.permute.xlu0 %3002 }
 0x8e3   : > { %v2904_v2 = vpack.c.bf16 %v2886_v25, %v2885_v7  ;;  %v2890_v12 = vmul.f32 %v4074_v48, %v4072_v19  ;;  %v2893_v52 = vpack.c.bf16 %v2864_v46, %v2863_v31  ;;  %v2865_v50 = vmul.f32 %v4074_v48, %v5686_v37 }
 0x8e4   : > { %v2905_v15 = vpack.c.bf16 %v2888_v63, %v2887_v36  ;;  %v2866_v27 = vmul.f32 %v4074_v48, %v5689_v58  ;;  %v2867_v45 = vmul.f32 %v4074_v48, %v5692_v22  ;;  %v2868_v51 = vmul.f32 %v4074_v48, %v5698_v53 }
 0x8e5   : > { %3530 = vmatpush3.bf16.msra.mxu1 %v2892_v17  ;;  %v2906_v10 = vpack.c.bf16 %v2890_v12, %v2889_v33  ;;  %v2869_v59 = vmul.f32 %v4074_v48, %v5704_v13  ;;  %v2870_v35 = vmul.f32 %v4074_v48, %v5710_v4  ;;  %v2871_v58 = vmul.f32 %v4074_v48, %v5716_v21  ;;  %v2445_v13 = vld [vmem:[#allocation2 + $0x70] sm:$0xff]  ;;  %v3807_v4 = vld [vmem:[%s5855_s6] sm:$0xff]  }
 0x8e6   : > { %3531 = vmatprep.subr.bf16.mxu1 %v2901_v1  ;;  %v2894_v56 = vpack.c.bf16 %v2866_v27, %v2865_v50  ;;  %v2895_v8 = vpack.c.bf16 %v2868_v51, %v2867_v45  ;;  %v2872_v40 = vmul.f32 %v4074_v48, %v5722_v28  ;;  %v2873_v22 = vmul.f32 %v4074_v48, %v5728_v20 }
 0x8e7   : > { %v2896_v37 = vpack.c.bf16 %v2870_v35, %v2869_v59  ;;  %v2874_v53 = vmul.f32 %v4074_v48, %v5734_v6  ;;  %v2978_v48 = vpop.permute.xlu1 %2977 }
 0x8e8   : > { %v2897_v19 = vpack.c.bf16 %v2872_v40, %v2871_v58 }
 0x8e9   : > { %3532 = vmatpush3.bf16.msra.mxu1 %v2893_v52  ;;  %v2898_v57 = vpack.c.bf16 %v2874_v53, %v2873_v22 }
 0x8ea   : > { %3533 = vmatprep.subr.bf16.mxu1 %v2902_v44 }
 0x8eb   : > { %v2998_v14 = vpop.permute.xlu1 %2997 }
 0x8ed   : > { %3534 = vmatpush3.bf16.msra.mxu1 %v2894_v56 }
 0x8ee   : > { %3535 = vmatprep.subr.bf16.mxu1 %v2903_v30 }
 0x8ef   : > { %v3008_v49 = vpop.permute.xlu1 %3007 }
 0x8f1   : > { %3536 = vmatpush3.bf16.msra.mxu1 %v2895_v8 }
 0x8f2   : > { %3537 = vmatprep.subr.bf16.mxu1 %v2904_v2 }
 0x8f5   : > { %3538 = vmatpush3.bf16.msra.mxu1 %v2896_v37 }
 0x8f6   : > { %3539 = vmatprep.subr.bf16.mxu1 %v2905_v15 }
 0x8f9   : > { %3540 = vmatpush3.bf16.msra.mxu1 %v2897_v19 }
 0x8fa   : > { %3541 = vmatprep.subr.bf16.mxu1 %v2906_v10 }
 0x8fd   : > { %3542 = vmatpush3.bf16.msra.mxu1 %v2898_v57 }
 0x8fe   : > { %3709 = vmatprep.subr.bf16.mxu1 %v4894_v0 }
 0x900   : > { %2940 = vmatmul.mubr.bf16.vlgmr.msra.gmra.mrb[68].mxu1 %v2445_v13 }
 0x901   : > { %3710 = vmatpush3.bf16.msra.mxu1 %v4894_v0  ;;  %3717 = vmatprep.mubr.msk.bf16.mxu1 %vm839_vm1, %v3807_v4 }
 0x902   : > { %3711 = vmatprep.subr.bf16.mxu1 %v5207_v39 }
 0x905   : > { %3712 = vmatpush3.bf16.msra.mxu1 %v5207_v39  ;;  %v3808_v39 = vld [vmem:[%s5855_s6 + $0x8] sm:$0xff]  }
 0x906   : > { %3713 = vmatprep.subr.bf16.mxu1 %v5504_v41 }
 0x909   : > { %3714 = vmatpush3.bf16.msra.mxu1 %v5504_v41  ;;  %v3809_v41 = vld [vmem:[%s5855_s6 + $0x10] sm:$0xff]  }
 0x9d3   : > { %v3543_v21 = vpop.f32.mrb[68].mxu1 }
 0x9d4   : > { %v3544_v28 = vpop.f32.mrb[69].mxu1 }
 0x9d5   : > { %v3545_v20 = vadd.f32 %v3544_v28, %v3543_v21  ;;  %v3546_v6 = vpop.f32.mrb[70].mxu1 }
 0x9d6   : > { %v3547_v54 = vpop.f32.mrb[71].mxu1 }
 0x9d7   : > { %v3548_v0 = vadd.f32 %v3547_v54, %v3546_v6 }
 0x9d9   : > { %v2948_v26 = vpack.c.bf16 %v3548_v0, %v3545_v20 }
 0x9db   : > { %3715 = vmatprep.subr.bf16.mxu1 %v2948_v26 }
 0x9dc   : > { %3716 = vmatpush3.bf16.msra.mxu1 %v2948_v26 }
 0x9df   : > { %3718 = vmatmul.mubr.msk.bf16.vlgmr.msra.gmra.mrb[72].mxu1 %vm839_vm1, %v3808_v39 }
 0x9e0   : > { %3721 = vmatprep.mubr.msk.bf16.mxu1 %vm839_vm1, %v3809_v41 }
 0x9e7   : > { %3722 = vmatmul.mubr.msk.bf16.gmra.mrb[76].mxu1 %vm839_vm1, %v3810_v47 }
 0xab2   : > { %v3719_v9 = vpop.f32.mrb[72].mxu1 }
 0xab3   : > { %v3085_v16 = vadd.f32 %v3719_v9, %v2983_v34  ;;  %v3076_v24 = vpop.f32.mrb[73].mxu1 }
 0xab4   : > { %v3077_v23 = vadd.f32 %v3076_v24, %v2973_v38  ;;  %v3720_v32 = vpop.f32.mrb[74].mxu1 }
 0xab5   : > { %3109 = vst [vmem:[%s4255_s14 + $0x10] sm:$0xff] %v3085_v16  ;;  %v3088_v43 = vadd.f32 %v3720_v32, %v2988_v18  ;;  %v3079_v42 = vpop.f32.mrb[75].mxu1 }
 0xab6   : > { %3107 = vst [vmem:[%s4255_s14] sm:$0xff] %v3077_v23  ;;  %v3080_v3 = vadd.f32 %v3079_v42, %v2978_v48 }
 0xab7   : > { %3110 = vst [vmem:[%s4255_s14 + $0x18] sm:$0xff] %v3088_v43 }
 0xab8   : > { %3108 = vst [vmem:[%s4255_s14 + $0x8] sm:$0xff] %v3080_v3 }
 0xaba   : > { %v3723_v62 = vpop.f32.mrb[76].mxu1  ;;  %3121 = sbr.rel (!%p4226_p6) target bundleno = 2761 (0xac9), region = 98 }
 0xabb   : > { %v3101_v55 = vadd.f32 %v3723_v62, %v3003_v61  ;;  %v3092_v1 = vpop.f32.mrb[77].mxu1 }
 0xabc   : > { %v3093_v60 = vadd.f32 %v3092_v1, %v2993_v29  ;;  %v3724_v5 = vpop.f32.mrb[78].mxu1  ;;  %v3171_v46 = vld [vmem:[%s4255_s14 + $0x10] sm:$0xff] (%p4226_p6) }
 0xabd   : > { %3113 = vst [vmem:[%s4255_s14 + $0x30] sm:$0xff] %v3101_v55  ;;  %v3104_v11 = vadd.f32 %v3724_v5, %v3008_v49  ;;  %v3095_v17 = vpop.f32.mrb[79].mxu1  ;;  %v3167_v7 = vld [vmem:[%s4255_s14] sm:$0xff] (%p4226_p6)  ;;  %3172 = vst [vmem:[%s3125_s22 + $0x20] sm:$0xff] (%p4226_p6), %v3171_v46 }
 0xabe   : > { %3111 = vst [vmem:[%s4255_s14 + $0x20] sm:$0xff] %v3093_v60  ;;  %v3096_v44 = vadd.f32 %v3095_v17, %v2998_v14  ;;  %v3173_v30 = vld [vmem:[%s4255_s14 + $0x18] sm:$0xff] (%p4226_p6)  ;;  %3168 = vst [vmem:[%s3125_s22] sm:$0xff] (%p4226_p6), %v3167_v7 }
 0xabf   : > { %3114 = vst [vmem:[%s4255_s14 + $0x38] sm:$0xff] %v3104_v11  ;;  %v3169_v31 = vld [vmem:[%s4255_s14 + $0x8] sm:$0xff] (%p4226_p6)  ;;  %3174 = vst [vmem:[%s3125_s22 + $0x30] sm:$0xff] (%p4226_p6), %v3173_v30 }
 0xac0   : > { %3112 = vst [vmem:[%s4255_s14 + $0x28] sm:$0xff] %v3096_v44  ;;  %3170 = vst [vmem:[%s3125_s22 + $0x10] sm:$0xff] (%p4226_p6), %v3169_v31 }
 0xac4   : > { %v3179_v63 = vld [vmem:[%s4255_s14 + $0x30] sm:$0xff] }
 0xac5   : > { %v3175_v25 = vld [vmem:[%s4255_s14 + $0x20] sm:$0xff]  ;;  %3180 = vst [vmem:[%s3125_s22 + $0x60] sm:$0xff] %v3179_v63 }
 0xac6   : > { %v3181_v2 = vld [vmem:[%s4255_s14 + $0x38] sm:$0xff]  ;;  %3176 = vst [vmem:[%s3125_s22 + $0x40] sm:$0xff] %v3175_v25 }
 0xac7   : > { %v3177_v36 = vld [vmem:[%s4255_s14 + $0x28] sm:$0xff]  ;;  %3182 = vst [vmem:[%s3125_s22 + $0x70] sm:$0xff] %v3181_v2 }
 0xac8   : > { %3178 = vst [vmem:[%s3125_s22 + $0x50] sm:$0xff] %v3177_v36 }
 0xac9 PF: > { %s18_s11 = sadd.s32 1, %s4129_s11   ;;  %s5913_s27 = smov %s4109_s28 }
 0xaca   : > { %p15_p0 = scmp.ge.s32.totalorder %s18_s11, 6   ;;  %s5914_s28 = smov %s4234_s20 }
 0xacb   : > { %s5915_s29 = smov %s4121_s9  ;;  %s5916_s30 = smov %s4125_s10 }
 0xacc   : > { %s5917_s9 = smov %s5920_s12  ;;  %s5918_s10 = smov %s5924_s13 }
 0xacd   :  { %17 = sbr.rel (!%p15_p0) target bundleno = 4 (0x4), region = 170 }

</bundles_post_ra>
